<compile_context>
chip_gen: v6e
topology: v6e:2x2x1
jax: 0.10.0
libtpu: 0.0.40
codegen_flags: <defaults>
</compile_context>

<pallas_src>
import functools

import jax
import jax.numpy as jnp
from jax.experimental import pallas as pl
from jax.experimental.pallas import tpu as pltpu


# ----------------------------------------------------------------------------
# In-kernel helpers
# ----------------------------------------------------------------------------
def _layer_norm(x, g, b, eps):
    mu = jnp.mean(x, axis=-1, keepdims=True)
    var = jnp.mean(jnp.square(x - mu), axis=-1, keepdims=True)
    return (x - mu) * jax.lax.rsqrt(var + eps) * g + b


# ----------------------------------------------------------------------------
# Fused kernel: one grid step per (batch x frame)
# ----------------------------------------------------------------------------
def _fused_kernel(x_ref, enc_ref, wq_ref, bq_ref, wkv_ref, bkv_ref,
                  wp_ref, bp_ref, ropeq_ref, ropek_ref, norm_ref,
                  o_ref, q_scr, kv_scr, att_scr, *,
                  num_heads, head_dim, q_eps, k_eps, qk_norm):
    H, hd = num_heads, head_dim
    C = H * hd

    # --- projections: bf16 cast on the VMEM tile, fp32 accumulate + bias -----
    q_scr[...] = (
        jnp.dot(x_ref[0, :, :].astype(jnp.bfloat16), wq_ref[...],
                preferred_element_type=jnp.float32) + bq_ref[...])       # [S, C]
    kv_scr[...] = (
        jnp.dot(enc_ref[0, :, :].astype(jnp.bfloat16), wkv_ref[...],
                preferred_element_type=jnp.float32) + bkv_ref[...])      # [Na, 2C]

    cos_q = ropeq_ref[0, :, pl.ds(0, hd)]        # [S,  hd]  (softmax scale folded)
    sin_q = ropeq_ref[0, :, pl.ds(hd, hd)]       # [S,  hd]  (pre-signed + scaled)
    cos_k = ropek_ref[:, pl.ds(0, hd)]           # [Na, hd]
    sin_k = ropek_ref[:, pl.ds(hd, hd)]          # [Na, hd]  (pre-signed)
    qg = norm_ref[pl.ds(0, 1), :]                # [1,  hd]
    qb = norm_ref[pl.ds(1, 1), :]
    kg = norm_ref[pl.ds(2, 1), :]
    kb = norm_ref[pl.ds(3, 1), :]

    def rope(x, cos, sin_signed):
        # De-interleaved RoPE: rotate_half == one lane roll by hd//2 (XLU slot),
        # the sign (and for q the softmax scale) lives in the tables.
        return x * cos + pltpu.roll(x, hd // 2, axis=1) * sin_signed

    for h in range(H):                           # static, unrolled (H small)
        q = q_scr[:, pl.ds(h * hd, hd)]          # [S,  hd] fp32
        k = kv_scr[:, pl.ds(h * hd, hd)]         # [Na, hd]
        v = kv_scr[:, pl.ds(C + h * hd, hd)]     # [Na, hd]

        if qk_norm:
            q = _layer_norm(q, qg, qb, q_eps)
            k = _layer_norm(k, kg, kb, k_eps)
        q = rope(q, cos_q, sin_q)                # scale already folded in
        k = rope(k, cos_k, sin_k)

        s = jax.lax.dot_general(
            q.astype(jnp.bfloat16), k.astype(jnp.bfloat16),
            (((1,), (1,)), ((), ())),
            preferred_element_type=jnp.float32)                         # [S, Na]
        m = jnp.max(s, axis=-1, keepdims=True)
        p = jnp.exp(s - m)
        inv = pl.reciprocal(jnp.sum(p, axis=-1, keepdims=True), approx=True)
        o = jnp.dot(p.astype(jnp.bfloat16), v.astype(jnp.bfloat16),
                    preferred_element_type=jnp.float32) * inv           # [S, hd]
        att_scr[:, pl.ds(h * hd, hd)] = o.astype(att_scr.dtype)         # bf16

    # --- output projection straight off the lane-dense bf16 attention tile ---
    o_ref[0, :, :] = (
        jnp.dot(att_scr[...], wp_ref[...],
                preferred_element_type=jnp.float32) + bp_ref[...])


def fused_multi_attention(x_bsc, enc_bne, rope_q_tab, rope_k_tab, norms, prep,
                          *, num_heads, head_dim, q_eps, k_eps, qk_norm):
    B, S, C = x_bsc.shape
    Na, E = enc_bne.shape[1], enc_bne.shape[2]
    N_t = rope_q_tab.shape[0]
    hd = head_dim

    kern = functools.partial(
        _fused_kernel, num_heads=num_heads, head_dim=hd,
        q_eps=q_eps, k_eps=k_eps, qk_norm=qk_norm)

    flops = 2 * B * (S * C * C                     # q linear
                     + Na * E * 2 * C              # kv linear
                     + num_heads * 2 * S * Na * hd  # attn matmuls
                     + S * C * C)                  # proj linear
    bytes_accessed = (4 * B * S * C * 2            # x in + out (fp32)
                      + 4 * B * Na * E             # encoder states (fp32)
                      + 2 * (C * C + E * 2 * C + C * C)  # bf16 weights
                      + 4 * 4 * C                  # biases
                      + 4 * (N_t * S + Na) * 2 * hd + 4 * 4 * hd)  # rope / norms
    cost = pl.CostEstimate(flops=int(flops),
                           transcendentals=int(B * num_heads * S * Na),
                           bytes_accessed=int(bytes_accessed))

    return pl.pallas_call(
        kern,
        out_shape=jax.ShapeDtypeStruct((B, S, C), jnp.float32),
        grid_spec=pltpu.PrefetchScalarGridSpec(
            num_scalar_prefetch=0,
            grid=(B,),
            in_specs=[
                pl.BlockSpec((1, S, C), lambda b: (b, 0, 0)),            # x
                pl.BlockSpec((1, Na, E), lambda b: (b, 0, 0)),           # enc
                pl.BlockSpec((C, C), lambda b: (0, 0)),                  # Wq^T
                pl.BlockSpec((1, C), lambda b: (0, 0)),                  # bq
                pl.BlockSpec((E, 2 * C), lambda b: (0, 0)),              # Wkv^T
                pl.BlockSpec((1, 2 * C), lambda b: (0, 0)),              # bkv
                pl.BlockSpec((C, C), lambda b: (0, 0)),                  # Wproj^T
                pl.BlockSpec((1, C), lambda b: (0, 0)),                  # bproj
                pl.BlockSpec((1, S, 2 * hd), lambda b: (b % N_t, 0, 0)),  # rope_q
                pl.BlockSpec((Na, 2 * hd), lambda b: (0, 0)),            # rope_k
                pl.BlockSpec((4, hd), lambda b: (0, 0)),                 # norms
            ],
            out_specs=pl.BlockSpec((1, S, C), lambda b: (b, 0, 0)),
            scratch_shapes=[
                pltpu.VMEM((S, C), jnp.float32),        # q projection
                pltpu.VMEM((Na, 2 * C), jnp.float32),   # kv projection
                pltpu.VMEM((S, C), jnp.bfloat16),       # attention output (bf16)
            ]),
        compiler_params=pltpu.CompilerParams(
            dimension_semantics=("parallel",)),
        cost_estimate=cost,
    )(x_bsc, enc_bne, prep["w_q_T"], prep["b_q"], prep["w_kv_T"], prep["b_kv"],
      prep["w_proj_T"], prep["b_proj"], rope_q_tab, rope_k_tab, norms)


# ----------------------------------------------------------------------------
# Plain-JAX glue (positions, rotary tables, parameters)
# ----------------------------------------------------------------------------
def normalize_and_scale(column, source_range, target_range, epsilon=1e-08):
    source_min, source_max = source_range
    new_min, new_max = target_range
    normalized = (column - source_min) / (source_max - source_min + epsilon)
    return normalized * (new_max - new_min) + new_min


def _query_positions(x_ref_attn_map, class_range, class_interval):
    amap = x_ref_attn_map.astype(jnp.float32)
    ci, cr = float(class_interval), float(class_range)
    human1 = normalize_and_scale(amap[0], (amap[0].min(), amap[0].max()),
                                 (0.0, ci))
    human2 = normalize_and_scale(amap[1], (amap[1].min(), amap[1].max()),
                                 (cr - ci, cr))
    back = jnp.full((amap.shape[1],), float(class_range // 2), jnp.float32)
    max_idx = jnp.argmax(amap, axis=0)
    nmap = jnp.stack([human1, human2, back], axis=1)
    return nmap[jnp.arange(amap.shape[1]), max_idx]          # [N_t*S]


def _kv_positions(Na, class_range, class_interval):
    ci, cr = float(class_interval), float(class_range)
    c1 = (0.0 + ci) / 2.0
    c2 = ((cr - ci) + cr) / 2.0
    return jnp.concatenate([jnp.full((Na // 2,), c1, jnp.float32),
                            jnp.full((Na - Na // 2,), c2, jnp.float32)])


def _rope_freqs(hd, base=10000.0):
    return 1.0 / (base ** (jnp.arange(0, hd, 2)[: hd // 2]
                           .astype(jnp.float32) / hd))


def rope_tables_interleaved(pos, hd):
    """Canonical tables (cos/sin repeated in interleaved pairs) — reference."""
    ang = pos.astype(jnp.float32)[:, None] * _rope_freqs(hd)[None, :]
    ang = jnp.repeat(ang, 2, axis=-1)
    return jnp.cos(ang), jnp.sin(ang)


def rope_tables_split(pos, hd, scale=1.0):
    """De-interleaved (even|odd) tables packed as [N, 2*hd] = [cos | sin_signed]
    so rope(x) = x*cos + roll(x, hd//2)*sin_signed in-kernel.  `scale` folds an
    extra amplitude factor (e.g. softmax 1/sqrt(hd)) into the table."""
    ang = pos.astype(jnp.float32)[:, None] * _rope_freqs(hd)[None, :]
    cos, sin = jnp.cos(ang) * scale, jnp.sin(ang) * scale
    return jnp.concatenate([cos, cos, -sin, sin], axis=-1)


def _rotate_half_interleaved(x):
    x2 = x.reshape(*x.shape[:-1], x.shape[-1] // 2, 2)
    return jnp.stack([-x2[..., 1], x2[..., 0]], axis=-1).reshape(x.shape)


def init_params(key, dim, enc_dim, num_heads):
    """PyTorch-style fp32 params ([out, in] weights, LayerNorm defaults)."""
    hd = dim // num_heads
    ks = jax.random.split(key, 6)

    def u(k, shape, fan_in):
        lim = 1.0 / (fan_in ** 0.5)
        return jax.random.uniform(k, shape, jnp.float32, -lim, lim)

    return {
        "w_q": u(ks[0], (dim, dim), dim),
        "b_q": u(ks[1], (dim,), dim),
        "w_kv": u(ks[2], (2 * dim, enc_dim), enc_dim),
        "b_kv": u(ks[3], (2 * dim,), enc_dim),
        "w_proj": u(ks[4], (dim, dim), dim),
        "b_proj": u(ks[5], (dim,), dim),
        "q_norm_g": jnp.ones((hd,), jnp.float32),
        "q_norm_b": jnp.zeros((hd,), jnp.float32),
        "k_norm_g": jnp.ones((hd,), jnp.float32),
        "k_norm_b": jnp.zeros((hd,), jnp.float32),
    }


def prepare_params(raw, num_heads):
    """One-time prep: transpose weights to [in,out] + cast bf16, and fold the
    RoPE de-interleave permutation into the q/k output columns and qk-norm
    params (rotate_half becomes one lane roll in the kernel)."""
    dim = raw["w_q"].shape[0]
    H = num_heads
    hd = dim // H
    perm = jnp.concatenate([jnp.arange(0, hd, 2), jnp.arange(1, hd, 2)])

    def permute_out(w, b):                       # w: [H*hd, in], b: [H*hd]
        wp = w.reshape(H, hd, -1)[:, perm, :].reshape(H * hd, -1)
        bp = b.reshape(H, hd)[:, perm].reshape(H * hd)
        return wp, bp

    w_q_p, b_q_p = permute_out(raw["w_q"], raw["b_q"])
    w_k_p, b_k_p = permute_out(raw["w_kv"][:dim], raw["b_kv"][:dim])
    w_kv_p = jnp.concatenate([w_k_p, raw["w_kv"][dim:]], axis=0)
    b_kv_p = jnp.concatenate([b_k_p, raw["b_kv"][dim:]], axis=0)

    return {
        "w_q_T": jnp.asarray(w_q_p.T, jnp.bfloat16),
        "b_q": jnp.asarray(b_q_p, jnp.float32).reshape(1, -1),
        "w_kv_T": jnp.asarray(w_kv_p.T, jnp.bfloat16),
        "b_kv": jnp.asarray(b_kv_p, jnp.float32).reshape(1, -1),
        "w_proj_T": jnp.asarray(raw["w_proj"].T, jnp.bfloat16),
        "b_proj": jnp.asarray(raw["b_proj"], jnp.float32).reshape(1, -1),
        "qk_norms": jnp.stack(
            [raw["q_norm_g"][perm], raw["q_norm_b"][perm],
             raw["k_norm_g"][perm], raw["k_norm_b"][perm]],
            axis=0).astype(jnp.float32),                          # [4, hd]
    }


# ----------------------------------------------------------------------------
# Forward passes
# ----------------------------------------------------------------------------
def single_stream_multi_attention_pallas(prep, x, encoder_hidden_states,
                                          x_ref_attn_map, *, shape, human_num,
                                          num_heads, class_range=24,
                                          class_interval=4, qk_norm=True,
                                          eps=1e-6):
    # TODO(synk): human_num <= 1 fallback and the generic >2-speaker branch
    #             are not kernelized (only the 2-speaker rotary path).
    assert human_num == 2
    enc = encoder_hidden_states[0]                       # .squeeze(0)
    N_t, _, _ = shape
    B0, NtS, C = x.shape
    S = NtS // N_t
    B = B0 * N_t
    H = num_heads
    hd = C // H
    Na = enc.shape[1]
    scale = float(hd) ** -0.5

    # rotary tables: de-interleaved order, sin pre-signed, packed [cos | sin];
    # the softmax 1/sqrt(hd) is folded into the q table (RoPE is linear).
    pos_q = _query_positions(x_ref_attn_map, class_range, class_interval)
    rope_q = rope_tables_split(pos_q, hd, scale=scale).reshape(N_t, S, 2 * hd)
    rope_k = rope_tables_split(
        _kv_positions(Na, class_range, class_interval), hd)          # [Na, 2hd]

    # q_norm eps = ctor eps (1e-6); add_k_norm uses PyTorch default eps = 1e-5.
    out = fused_multi_attention(
        x.reshape(B, S, C), enc, rope_q, rope_k, prep["qk_norms"], prep,
        num_heads=H, head_dim=hd, q_eps=eps, k_eps=1e-5, qk_norm=qk_norm)
    return out.reshape(B0, NtS, C)


def single_stream_multi_attention_reference(raw, x, encoder_hidden_states,
                                             x_ref_attn_map, *, shape,
                                             human_num, num_heads,
                                             class_range=24, class_interval=4,
                                             qk_norm=True, eps=1e-6):
    """Plain-JAX restatement of the PyTorch module (2-speaker branch), with
    the same bf16 MXU operand precision as the Pallas path."""
    assert human_num == 2
    enc = encoder_hidden_states[0]
    N_t, _, _ = shape
    B0, NtS, C = x.shape
    S = NtS // N_t
    B = B0 * N_t
    H = num_heads
    hd = C // H
    Na = enc.shape[1]

    def lin(a, w, b):
        return jnp.dot(a.astype(jnp.bfloat16), w.T.astype(jnp.bfloat16),
                       preferred_element_type=jnp.float32) + b

    x2d = x.reshape(B * S, C).astype(jnp.float32)
    q = lin(x2d, raw["w_q"], raw["b_q"]).reshape(B, S, H, hd)
    q = q.transpose(0, 2, 1, 3)                                      # [B,H,S,hd]
    if qk_norm:
        q = _layer_norm(q, raw["q_norm_g"], raw["q_norm_b"], eps)

    pos_q = _query_positions(x_ref_attn_map, class_range, class_interval)
    cos_q, sin_q = rope_tables_interleaved(pos_q, hd)                # [N_t*S,hd]
    cos_q = cos_q.reshape(N_t, S, hd)[None, :, None]
    sin_q = sin_q.reshape(N_t, S, hd)[None, :, None]
    q5 = q.reshape(B0, N_t, H, S, hd)
    q5 = q5 * cos_q + _rotate_half_interleaved(q5) * sin_q
    q = q5.reshape(B, H, S, hd)

    kv = lin(enc.reshape(B * Na, -1).astype(jnp.float32),
             raw["w_kv"], raw["b_kv"])
    kv = kv.reshape(B, Na, 2, H, hd).transpose(2, 0, 3, 1, 4)
    k, v = kv[0], kv[1]                                              # [B,H,Na,hd]
    if qk_norm:
        k = _layer_norm(k, raw["k_norm_g"], raw["k_norm_b"], 1e-5)

    cos_k, sin_k = rope_tables_interleaved(
        _kv_positions(Na, class_range, class_interval), hd)          # [Na, hd]
    k = k * cos_k[None, None] + _rotate_half_interleaved(k) * sin_k[None, None]

    scale = float(hd) ** -0.5
    s = jnp.einsum("bhsd,bhnd->bhsn", q.astype(jnp.bfloat16),
                   k.astype(jnp.bfloat16),
                   preferred_element_type=jnp.float32) * scale
    m = jnp.max(s, axis=-1, keepdims=True)
    p = jnp.exp(s - m)
    denom = jnp.sum(p, axis=-1, keepdims=True)
    o = jnp.einsum("bhsn,bhnd->bhsd", p.astype(jnp.bfloat16),
                   v.astype(jnp.bfloat16),
                   preferred_element_type=jnp.float32) / denom
    o = o.transpose(0, 2, 1, 3).reshape(B * S, C)
    out = lin(o, raw["w_proj"], raw["b_proj"])
    return out.reshape(B0, NtS, C)


# ----------------------------------------------------------------------------
if __name__ == "__main__":
    key = jax.random.PRNGKey(0)
    N_t, N_h, N_w = 2, 8, 8          # frames / spatial -> S = 64 tokens/frame
    S = N_h * N_w
    B0 = 1                           # batch
    dim = 512                        # hidden (C)
    enc_dim = 128                    # encoder hidden dim
    num_heads = 4                    # head_dim = 128 (lane-dense)
    N_a = 32                         # audio (encoder) tokens per frame
    human_num = 2

    k_par, kx, ke, ka = jax.random.split(key, 4)
    raw = init_params(k_par, dim, enc_dim, num_heads)
    prep = prepare_params(raw, num_heads)

    x = jax.random.normal(kx, (B0, N_t * S, dim), jnp.float32)
    encoder_hidden_states = jax.random.normal(
        ke, (1, B0 * N_t, N_a, enc_dim), jnp.float32)    # squeezed inside
    x_ref_attn_map = jax.random.uniform(ka, (human_num, N_t * S), jnp.float32)

    fwd = jax.jit(functools.partial(
        single_stream_multi_attention_pallas, shape=(N_t, N_h, N_w),
        human_num=human_num, num_heads=num_heads))
    out = jax.block_until_ready(
        fwd(prep, x, encoder_hidden_states, x_ref_attn_map))

    ref = single_stream_multi_attention_reference(
        raw, x, encoder_hidden_states, x_ref_attn_map,
        shape=(N_t, N_h, N_w), human_num=human_num, num_heads=num_heads)
    ref = jax.block_until_ready(ref)

    assert out.shape == (B0, N_t * S, dim)
    max_err = float(jnp.max(jnp.abs(out - ref)))
    assert jnp.allclose(out, ref, atol=2e-2, rtol=2e-2), max_err
    print("KERNEL_OK")
</pallas_src>

<mosaic_0001>
module attributes {stable_mosaic.version = 11 : i64} {
  func.func @_fused_kernel(%arg0: i32, %arg1: memref<1x64x512xf32, #tpu.memory_space<vmem>>, %arg2: memref<1x32x128xf32, #tpu.memory_space<vmem>>, %arg3: memref<512x512xbf16, #tpu.memory_space<vmem>>, %arg4: memref<1x512xf32, #tpu.memory_space<vmem>>, %arg5: memref<128x1024xbf16, #tpu.memory_space<vmem>>, %arg6: memref<1x1024xf32, #tpu.memory_space<vmem>>, %arg7: memref<512x512xbf16, #tpu.memory_space<vmem>>, %arg8: memref<1x512xf32, #tpu.memory_space<vmem>>, %arg9: memref<1x64x256xf32, #tpu.memory_space<vmem>>, %arg10: memref<32x256xf32, #tpu.memory_space<vmem>>, %arg11: memref<4x128xf32, #tpu.memory_space<vmem>>, %arg12: memref<1x64x512xf32, #tpu.memory_space<vmem>>, %arg13: memref<64x512xf32, #tpu.memory_space<vmem>>, %arg14: memref<32x1024xf32, #tpu.memory_space<vmem>>, %arg15: memref<64x512xbf16, #tpu.memory_space<vmem>>) attributes {dimension_semantics = [#tpu.dimension_semantics<parallel>], iteration_bounds = array<i64: 2>, scalar_prefetch = 0 : i64, scratch_operands = 3 : i64, tpu.core_type = #tpu.core_type<tc>, window_params = [{transform_indices = @transform_0, window_bounds = array<i64: 1, 64, 512>}, {transform_indices = @transform_1, window_bounds = array<i64: 1, 32, 128>}, {pipeline_mode = #tpu.pipeline_mode<synchronous>, transform_indices = @transform_2, window_bounds = array<i64: 512, 512>}, {pipeline_mode = #tpu.pipeline_mode<synchronous>, transform_indices = @transform_3, window_bounds = array<i64: 1, 512>}, {pipeline_mode = #tpu.pipeline_mode<synchronous>, transform_indices = @transform_4, window_bounds = array<i64: 128, 1024>}, {pipeline_mode = #tpu.pipeline_mode<synchronous>, transform_indices = @transform_5, window_bounds = array<i64: 1, 1024>}, {pipeline_mode = #tpu.pipeline_mode<synchronous>, transform_indices = @transform_6, window_bounds = array<i64: 512, 512>}, {pipeline_mode = #tpu.pipeline_mode<synchronous>, transform_indices = @transform_7, window_bounds = array<i64: 1, 512>}, {transform_indices = @transform_8, window_bounds = array<i64: 1, 64, 256>}, {pipeline_mode = #tpu.pipeline_mode<synchronous>, transform_indices = @transform_9, window_bounds = array<i64: 32, 256>}, {pipeline_mode = #tpu.pipeline_mode<synchronous>, transform_indices = @transform_10, window_bounds = array<i64: 4, 128>}, {transform_indices = @transform_11, window_bounds = array<i64: 1, 64, 512>}]} {
    %c0 = arith.constant 0 : index
    %c0_0 = arith.constant 0 : index
    %c0_1 = arith.constant 0 : index
    %0 = vector.load %arg1[%c0, %c0_0, %c0_1] : memref<1x64x512xf32, #tpu.memory_space<vmem>>, vector<1x64x512xf32>
    %1 = vector.shape_cast %0 : vector<1x64x512xf32> to vector<64x512xf32>
    %2 = arith.truncf %1 : vector<64x512xf32> to vector<64x512xbf16>
    %c0_2 = arith.constant 0 : index
    %c0_3 = arith.constant 0 : index
    %3 = vector.load %arg3[%c0_2, %c0_3] : memref<512x512xbf16, #tpu.memory_space<vmem>>, vector<512x512xbf16>
    %cst = arith.constant dense<0.000000e+00> : vector<64x512xf32>
    %4 = tpu.matmul %2, %3, %cst {dimension_numbers = #tpu.dot_dimension_numbers<[1], [0], [0], [1], [0, 0, 1, 1], [], []>} : vector<64x512xbf16>, vector<512x512xbf16>, vector<64x512xf32> -> vector<64x512xf32>
    %c0_4 = arith.constant 0 : index
    %c0_5 = arith.constant 0 : index
    %5 = vector.load %arg4[%c0_4, %c0_5] : memref<1x512xf32, #tpu.memory_space<vmem>>, vector<1x512xf32>
    %6 = vector.broadcast %5 : vector<1x512xf32> to vector<64x512xf32>
    %7 = arith.addf %4, %6 : vector<64x512xf32>
    %c0_6 = arith.constant 0 : index
    %c0_7 = arith.constant 0 : index
    %8 = vector.load %arg13[%c0_6, %c0_7] : memref<64x512xf32, #tpu.memory_space<vmem>>, vector<64x512xf32>
    tpu.vector_store %arg13[%c0_6, %c0_7], %7 {strides = array<i32>} : memref<64x512xf32, #tpu.memory_space<vmem>>, vector<64x512xf32>,
    %c0_8 = arith.constant 0 : index
    %c0_9 = arith.constant 0 : index
    %c0_10 = arith.constant 0 : index
    %9 = vector.load %arg2[%c0_8, %c0_9, %c0_10] : memref<1x32x128xf32, #tpu.memory_space<vmem>>, vector<1x32x128xf32>
    %10 = vector.shape_cast %9 : vector<1x32x128xf32> to vector<32x128xf32>
    %11 = arith.truncf %10 : vector<32x128xf32> to vector<32x128xbf16>
    %c0_11 = arith.constant 0 : index
    %c0_12 = arith.constant 0 : index
    %12 = vector.load %arg5[%c0_11, %c0_12] : memref<128x1024xbf16, #tpu.memory_space<vmem>>, vector<128x1024xbf16>
    %cst_13 = arith.constant dense<0.000000e+00> : vector<32x1024xf32>
    %13 = tpu.matmul %11, %12, %cst_13 {dimension_numbers = #tpu.dot_dimension_numbers<[1], [0], [0], [1], [0, 0, 1, 1], [], []>} : vector<32x128xbf16>, vector<128x1024xbf16>, vector<32x1024xf32> -> vector<32x1024xf32>
    %c0_14 = arith.constant 0 : index
    %c0_15 = arith.constant 0 : index
    %14 = vector.load %arg6[%c0_14, %c0_15] : memref<1x1024xf32, #tpu.memory_space<vmem>>, vector<1x1024xf32>
    %15 = vector.broadcast %14 : vector<1x1024xf32> to vector<32x1024xf32>
    %16 = arith.addf %13, %15 : vector<32x1024xf32>
    %c0_16 = arith.constant 0 : index
    %c0_17 = arith.constant 0 : index
    %17 = vector.load %arg14[%c0_16, %c0_17] : memref<32x1024xf32, #tpu.memory_space<vmem>>, vector<32x1024xf32>
    tpu.vector_store %arg14[%c0_16, %c0_17], %16 {strides = array<i32>} : memref<32x1024xf32, #tpu.memory_space<vmem>>, vector<32x1024xf32>,
    %c0_18 = arith.constant 0 : index
    %c0_19 = arith.constant 0 : index
    %c0_20 = arith.constant 0 : index
    %18 = vector.load %arg9[%c0_18, %c0_19, %c0_20] : memref<1x64x256xf32, #tpu.memory_space<vmem>>, vector<1x64x128xf32>
    %19 = vector.shape_cast %18 : vector<1x64x128xf32> to vector<64x128xf32>
    %c0_21 = arith.constant 0 : index
    %c0_22 = arith.constant 0 : index
    %c128 = arith.constant 128 : index
    %20 = vector.load %arg9[%c0_21, %c0_22, %c128] : memref<1x64x256xf32, #tpu.memory_space<vmem>>, vector<1x64x128xf32>
    %21 = vector.shape_cast %20 : vector<1x64x128xf32> to vector<64x128xf32>
    %c0_23 = arith.constant 0 : index
    %c0_24 = arith.constant 0 : index
    %22 = vector.load %arg10[%c0_23, %c0_24] : memref<32x256xf32, #tpu.memory_space<vmem>>, vector<32x128xf32>
    %c0_25 = arith.constant 0 : index
    %c128_26 = arith.constant 128 : index
    %23 = vector.load %arg10[%c0_25, %c128_26] : memref<32x256xf32, #tpu.memory_space<vmem>>, vector<32x128xf32>
    %c0_27 = arith.constant 0 : index
    %c0_28 = arith.constant 0 : index
    %24 = vector.load %arg11[%c0_27, %c0_28] : memref<4x128xf32, #tpu.memory_space<vmem>>, vector<1x128xf32>
    %c1 = arith.constant 1 : index
    %c0_29 = arith.constant 0 : index
    %25 = vector.load %arg11[%c1, %c0_29] : memref<4x128xf32, #tpu.memory_space<vmem>>, vector<1x128xf32>
    %c2 = arith.constant 2 : index
    %c0_30 = arith.constant 0 : index
    %26 = vector.load %arg11[%c2, %c0_30] : memref<4x128xf32, #tpu.memory_space<vmem>>, vector<1x128xf32>
    %c3 = arith.constant 3 : index
    %c0_31 = arith.constant 0 : index
    %27 = vector.load %arg11[%c3, %c0_31] : memref<4x128xf32, #tpu.memory_space<vmem>>, vector<1x128xf32>
    %c0_32 = arith.constant 0 : index
    %c0_33 = arith.constant 0 : index
    %28 = vector.load %arg13[%c0_32, %c0_33] : memref<64x512xf32, #tpu.memory_space<vmem>>, vector<64x128xf32>
    %c0_34 = arith.constant 0 : index
    %c0_35 = arith.constant 0 : index
    %29 = vector.load %arg14[%c0_34, %c0_35] : memref<32x1024xf32, #tpu.memory_space<vmem>>, vector<32x128xf32>
    %c0_36 = arith.constant 0 : index
    %c512 = arith.constant 512 : index
    %30 = vector.load %arg14[%c0_36, %c512] : memref<32x1024xf32, #tpu.memory_space<vmem>>, vector<32x128xf32>
    %cst_37 = arith.constant dense<0.000000e+00> : vector<64xf32>
    %31 = vector.multi_reduction <add>, %28, %cst_37 [1] : vector<64x128xf32> to vector<64xf32>
    %32 = vector.shape_cast %31 : vector<64xf32> to vector<64x1xf32>
    %cst_38 = arith.constant 1.280000e+02 : f32
    %33 = vector.broadcast %cst_38 : f32 to vector<64x1xf32>
    %34 = arith.divf %32, %33 : vector<64x1xf32>
    %35 = vector.broadcast %34 : vector<64x1xf32> to vector<64x128xf32>
    %36 = arith.subf %28, %35 : vector<64x128xf32>
    %37 = arith.mulf %36, %36 : vector<64x128xf32>
    %cst_39 = arith.constant dense<0.000000e+00> : vector<64xf32>
    %38 = vector.multi_reduction <add>, %37, %cst_39 [1] : vector<64x128xf32> to vector<64xf32>
    %39 = vector.shape_cast %38 : vector<64xf32> to vector<64x1xf32>
    %cst_40 = arith.constant 1.280000e+02 : f32
    %40 = vector.broadcast %cst_40 : f32 to vector<64x1xf32>
    %41 = arith.divf %39, %40 : vector<64x1xf32>
    %42 = vector.broadcast %34 : vector<64x1xf32> to vector<64x128xf32>
    %43 = arith.subf %28, %42 : vector<64x128xf32>
    %cst_41 = arith.constant 9.99999997E-7 : f32
    %44 = vector.broadcast %cst_41 : f32 to vector<64x1xf32>
    %45 = arith.addf %41, %44 : vector<64x1xf32>
    %46 = math.rsqrt %45 : vector<64x1xf32>
    %47 = vector.broadcast %46 : vector<64x1xf32> to vector<64x128xf32>
    %48 = arith.mulf %43, %47 : vector<64x128xf32>
    %49 = vector.broadcast %24 : vector<1x128xf32> to vector<64x128xf32>
    %50 = arith.mulf %48, %49 : vector<64x128xf32>
    %51 = vector.broadcast %25 : vector<1x128xf32> to vector<64x128xf32>
    %52 = arith.addf %50, %51 : vector<64x128xf32>
    %cst_42 = arith.constant dense<0.000000e+00> : vector<32xf32>
    %53 = vector.multi_reduction <add>, %29, %cst_42 [1] : vector<32x128xf32> to vector<32xf32>
    %54 = vector.shape_cast %53 : vector<32xf32> to vector<32x1xf32>
    %cst_43 = arith.constant 1.280000e+02 : f32
    %55 = vector.broadcast %cst_43 : f32 to vector<32x1xf32>
    %56 = arith.divf %54, %55 : vector<32x1xf32>
    %57 = vector.broadcast %56 : vector<32x1xf32> to vector<32x128xf32>
    %58 = arith.subf %29, %57 : vector<32x128xf32>
    %59 = arith.mulf %58, %58 : vector<32x128xf32>
    %cst_44 = arith.constant dense<0.000000e+00> : vector<32xf32>
    %60 = vector.multi_reduction <add>, %59, %cst_44 [1] : vector<32x128xf32> to vector<32xf32>
    %61 = vector.shape_cast %60 : vector<32xf32> to vector<32x1xf32>
    %cst_45 = arith.constant 1.280000e+02 : f32
    %62 = vector.broadcast %cst_45 : f32 to vector<32x1xf32>
    %63 = arith.divf %61, %62 : vector<32x1xf32>
    %64 = vector.broadcast %56 : vector<32x1xf32> to vector<32x128xf32>
    %65 = arith.subf %29, %64 : vector<32x128xf32>
    %cst_46 = arith.constant 9.99999974E-6 : f32
    %66 = vector.broadcast %cst_46 : f32 to vector<32x1xf32>
    %67 = arith.addf %63, %66 : vector<32x1xf32>
    %68 = math.rsqrt %67 : vector<32x1xf32>
    %69 = vector.broadcast %68 : vector<32x1xf32> to vector<32x128xf32>
    %70 = arith.mulf %65, %69 : vector<32x128xf32>
    %71 = vector.broadcast %26 : vector<1x128xf32> to vector<32x128xf32>
    %72 = arith.mulf %70, %71 : vector<32x128xf32>
    %73 = vector.broadcast %27 : vector<1x128xf32> to vector<32x128xf32>
    %74 = arith.addf %72, %73 : vector<32x128xf32>
    %75 = arith.mulf %52, %19 : vector<64x128xf32>
    %c64_i32 = arith.constant 64 : i32
    %76 = tpu.dynamic_rotate %52 by %c64_i32 dim 1 : vector<64x128xf32>, i32 -> vector<64x128xf32>
    %77 = arith.mulf %76, %21 : vector<64x128xf32>
    %78 = arith.addf %75, %77 : vector<64x128xf32>
    %79 = arith.mulf %74, %22 : vector<32x128xf32>
    %c64_i32_47 = arith.constant 64 : i32
    %80 = tpu.dynamic_rotate %74 by %c64_i32_47 dim 1 : vector<32x128xf32>, i32 -> vector<32x128xf32>
    %81 = arith.mulf %80, %23 : vector<32x128xf32>
    %82 = arith.addf %79, %81 : vector<32x128xf32>
    %83 = arith.truncf %78 : vector<64x128xf32> to vector<64x128xbf16>
    %84 = arith.truncf %82 : vector<32x128xf32> to vector<32x128xbf16>
    %cst_48 = arith.constant dense<0.000000e+00> : vector<64x32xf32>
    %85 = tpu.matmul %83, %84, %cst_48 {dimension_numbers = #tpu.dot_dimension_numbers<[1], [1], [0], [0], [0, 0, 1, 0], [], []>} : vector<64x128xbf16>, vector<32x128xbf16>, vector<64x32xf32> -> vector<64x32xf32>
    %cst_49 = arith.constant dense<0xFF800000> : vector<64xf32>
    %86 = vector.multi_reduction <maximumf>, %85, %cst_49 [1] : vector<64x32xf32> to vector<64xf32>
    %87 = vector.shape_cast %86 : vector<64xf32> to vector<64x1xf32>
    %88 = vector.broadcast %87 : vector<64x1xf32> to vector<64x32xf32>
    %89 = arith.subf %85, %88 : vector<64x32xf32>
    %90 = math.exp %89 : vector<64x32xf32>
    %cst_50 = arith.constant dense<0.000000e+00> : vector<64xf32>
    %91 = vector.multi_reduction <add>, %90, %cst_50 [1] : vector<64x32xf32> to vector<64xf32>
    %92 = vector.shape_cast %91 : vector<64xf32> to vector<64x1xf32>
    %93 = tpu.reciprocal %92 {approx = true} : vector<64x1xf32> -> vector<64x1xf32>
    %94 = arith.truncf %90 : vector<64x32xf32> to vector<64x32xbf16>
    %95 = arith.truncf %30 : vector<32x128xf32> to vector<32x128xbf16>
    %cst_51 = arith.constant dense<0.000000e+00> : vector<64x128xf32>
    %96 = tpu.matmul %94, %95, %cst_51 {dimension_numbers = #tpu.dot_dimension_numbers<[1], [0], [0], [1], [0, 0, 1, 1], [], []>} : vector<64x32xbf16>, vector<32x128xbf16>, vector<64x128xf32> -> vector<64x128xf32>
    %97 = vector.broadcast %93 : vector<64x1xf32> to vector<64x128xf32>
    %98 = arith.mulf %96, %97 : vector<64x128xf32>
    %99 = arith.truncf %98 : vector<64x128xf32> to vector<64x128xbf16>
    %c0_52 = arith.constant 0 : index
    %c0_53 = arith.constant 0 : index
    %100 = vector.load %arg15[%c0_52, %c0_53] : memref<64x512xbf16, #tpu.memory_space<vmem>>, vector<64x128xbf16>
    tpu.vector_store %arg15[%c0_52, %c0_53], %99 {strides = array<i32>} : memref<64x512xbf16, #tpu.memory_space<vmem>>, vector<64x128xbf16>,
    %c0_54 = arith.constant 0 : index
    %c128_55 = arith.constant 128 : index
    %101 = vector.load %arg13[%c0_54, %c128_55] : memref<64x512xf32, #tpu.memory_space<vmem>>, vector<64x128xf32>
    %c0_56 = arith.constant 0 : index
    %c128_57 = arith.constant 128 : index
    %102 = vector.load %arg14[%c0_56, %c128_57] : memref<32x1024xf32, #tpu.memory_space<vmem>>, vector<32x128xf32>
    %c0_58 = arith.constant 0 : index
    %c640 = arith.constant 640 : index
    %103 = vector.load %arg14[%c0_58, %c640] : memref<32x1024xf32, #tpu.memory_space<vmem>>, vector<32x128xf32>
    %cst_59 = arith.constant dense<0.000000e+00> : vector<64xf32>
    %104 = vector.multi_reduction <add>, %101, %cst_59 [1] : vector<64x128xf32> to vector<64xf32>
    %105 = vector.shape_cast %104 : vector<64xf32> to vector<64x1xf32>
    %cst_60 = arith.constant 1.280000e+02 : f32
    %106 = vector.broadcast %cst_60 : f32 to vector<64x1xf32>
    %107 = arith.divf %105, %106 : vector<64x1xf32>
    %108 = vector.broadcast %107 : vector<64x1xf32> to vector<64x128xf32>
    %109 = arith.subf %101, %108 : vector<64x128xf32>
    %110 = arith.mulf %109, %109 : vector<64x128xf32>
    %cst_61 = arith.constant dense<0.000000e+00> : vector<64xf32>
    %111 = vector.multi_reduction <add>, %110, %cst_61 [1] : vector<64x128xf32> to vector<64xf32>
    %112 = vector.shape_cast %111 : vector<64xf32> to vector<64x1xf32>
    %cst_62 = arith.constant 1.280000e+02 : f32
    %113 = vector.broadcast %cst_62 : f32 to vector<64x1xf32>
    %114 = arith.divf %112, %113 : vector<64x1xf32>
    %115 = vector.broadcast %107 : vector<64x1xf32> to vector<64x128xf32>
    %116 = arith.subf %101, %115 : vector<64x128xf32>
    %cst_63 = arith.constant 9.99999997E-7 : f32
    %117 = vector.broadcast %cst_63 : f32 to vector<64x1xf32>
    %118 = arith.addf %114, %117 : vector<64x1xf32>
    %119 = math.rsqrt %118 : vector<64x1xf32>
    %120 = vector.broadcast %119 : vector<64x1xf32> to vector<64x128xf32>
    %121 = arith.mulf %116, %120 : vector<64x128xf32>
    %122 = vector.broadcast %24 : vector<1x128xf32> to vector<64x128xf32>
    %123 = arith.mulf %121, %122 : vector<64x128xf32>
    %124 = vector.broadcast %25 : vector<1x128xf32> to vector<64x128xf32>
    %125 = arith.addf %123, %124 : vector<64x128xf32>
    %cst_64 = arith.constant dense<0.000000e+00> : vector<32xf32>
    %126 = vector.multi_reduction <add>, %102, %cst_64 [1] : vector<32x128xf32> to vector<32xf32>
    %127 = vector.shape_cast %126 : vector<32xf32> to vector<32x1xf32>
    %cst_65 = arith.constant 1.280000e+02 : f32
    %128 = vector.broadcast %cst_65 : f32 to vector<32x1xf32>
    %129 = arith.divf %127, %128 : vector<32x1xf32>
    %130 = vector.broadcast %129 : vector<32x1xf32> to vector<32x128xf32>
    %131 = arith.subf %102, %130 : vector<32x128xf32>
    %132 = arith.mulf %131, %131 : vector<32x128xf32>
    %cst_66 = arith.constant dense<0.000000e+00> : vector<32xf32>
    %133 = vector.multi_reduction <add>, %132, %cst_66 [1] : vector<32x128xf32> to vector<32xf32>
    %134 = vector.shape_cast %133 : vector<32xf32> to vector<32x1xf32>
    %cst_67 = arith.constant 1.280000e+02 : f32
    %135 = vector.broadcast %cst_67 : f32 to vector<32x1xf32>
    %136 = arith.divf %134, %135 : vector<32x1xf32>
    %137 = vector.broadcast %129 : vector<32x1xf32> to vector<32x128xf32>
    %138 = arith.subf %102, %137 : vector<32x128xf32>
    %cst_68 = arith.constant 9.99999974E-6 : f32
    %139 = vector.broadcast %cst_68 : f32 to vector<32x1xf32>
    %140 = arith.addf %136, %139 : vector<32x1xf32>
    %141 = math.rsqrt %140 : vector<32x1xf32>
    %142 = vector.broadcast %141 : vector<32x1xf32> to vector<32x128xf32>
    %143 = arith.mulf %138, %142 : vector<32x128xf32>
    %144 = vector.broadcast %26 : vector<1x128xf32> to vector<32x128xf32>
    %145 = arith.mulf %143, %144 : vector<32x128xf32>
    %146 = vector.broadcast %27 : vector<1x128xf32> to vector<32x128xf32>
    %147 = arith.addf %145, %146 : vector<32x128xf32>
    %148 = arith.mulf %125, %19 : vector<64x128xf32>
    %c64_i32_69 = arith.constant 64 : i32
    %149 = tpu.dynamic_rotate %125 by %c64_i32_69 dim 1 : vector<64x128xf32>, i32 -> vector<64x128xf32>
    %150 = arith.mulf %149, %21 : vector<64x128xf32>
    %151 = arith.addf %148, %150 : vector<64x128xf32>
    %152 = arith.mulf %147, %22 : vector<32x128xf32>
    %c64_i32_70 = arith.constant 64 : i32
    %153 = tpu.dynamic_rotate %147 by %c64_i32_70 dim 1 : vector<32x128xf32>, i32 -> vector<32x128xf32>
    %154 = arith.mulf %153, %23 : vector<32x128xf32>
    %155 = arith.addf %152, %154 : vector<32x128xf32>
    %156 = arith.truncf %151 : vector<64x128xf32> to vector<64x128xbf16>
    %157 = arith.truncf %155 : vector<32x128xf32> to vector<32x128xbf16>
    %cst_71 = arith.constant dense<0.000000e+00> : vector<64x32xf32>
    %158 = tpu.matmul %156, %157, %cst_71 {dimension_numbers = #tpu.dot_dimension_numbers<[1], [1], [0], [0], [0, 0, 1, 0], [], []>} : vector<64x128xbf16>, vector<32x128xbf16>, vector<64x32xf32> -> vector<64x32xf32>
    %cst_72 = arith.constant dense<0xFF800000> : vector<64xf32>
    %159 = vector.multi_reduction <maximumf>, %158, %cst_72 [1] : vector<64x32xf32> to vector<64xf32>
    %160 = vector.shape_cast %159 : vector<64xf32> to vector<64x1xf32>
    %161 = vector.broadcast %160 : vector<64x1xf32> to vector<64x32xf32>
    %162 = arith.subf %158, %161 : vector<64x32xf32>
    %163 = math.exp %162 : vector<64x32xf32>
    %cst_73 = arith.constant dense<0.000000e+00> : vector<64xf32>
    %164 = vector.multi_reduction <add>, %163, %cst_73 [1] : vector<64x32xf32> to vector<64xf32>
    %165 = vector.shape_cast %164 : vector<64xf32> to vector<64x1xf32>
    %166 = tpu.reciprocal %165 {approx = true} : vector<64x1xf32> -> vector<64x1xf32>
    %167 = arith.truncf %163 : vector<64x32xf32> to vector<64x32xbf16>
    %168 = arith.truncf %103 : vector<32x128xf32> to vector<32x128xbf16>
    %cst_74 = arith.constant dense<0.000000e+00> : vector<64x128xf32>
    %169 = tpu.matmul %167, %168, %cst_74 {dimension_numbers = #tpu.dot_dimension_numbers<[1], [0], [0], [1], [0, 0, 1, 1], [], []>} : vector<64x32xbf16>, vector<32x128xbf16>, vector<64x128xf32> -> vector<64x128xf32>
    %170 = vector.broadcast %166 : vector<64x1xf32> to vector<64x128xf32>
    %171 = arith.mulf %169, %170 : vector<64x128xf32>
    %172 = arith.truncf %171 : vector<64x128xf32> to vector<64x128xbf16>
    %c0_75 = arith.constant 0 : index
    %c128_76 = arith.constant 128 : index
    %173 = vector.load %arg15[%c0_75, %c128_76] : memref<64x512xbf16, #tpu.memory_space<vmem>>, vector<64x128xbf16>
    tpu.vector_store %arg15[%c0_75, %c128_76], %172 {strides = array<i32>} : memref<64x512xbf16, #tpu.memory_space<vmem>>, vector<64x128xbf16>,
    %c0_77 = arith.constant 0 : index
    %c256 = arith.constant 256 : index
    %174 = vector.load %arg13[%c0_77, %c256] : memref<64x512xf32, #tpu.memory_space<vmem>>, vector<64x128xf32>
    %c0_78 = arith.constant 0 : index
    %c256_79 = arith.constant 256 : index
    %175 = vector.load %arg14[%c0_78, %c256_79] : memref<32x1024xf32, #tpu.memory_space<vmem>>, vector<32x128xf32>
    %c0_80 = arith.constant 0 : index
    %c768 = arith.constant 768 : index
    %176 = vector.load %arg14[%c0_80, %c768] : memref<32x1024xf32, #tpu.memory_space<vmem>>, vector<32x128xf32>
    %cst_81 = arith.constant dense<0.000000e+00> : vector<64xf32>
    %177 = vector.multi_reduction <add>, %174, %cst_81 [1] : vector<64x128xf32> to vector<64xf32>
    %178 = vector.shape_cast %177 : vector<64xf32> to vector<64x1xf32>
    %cst_82 = arith.constant 1.280000e+02 : f32
    %179 = vector.broadcast %cst_82 : f32 to vector<64x1xf32>
    %180 = arith.divf %178, %179 : vector<64x1xf32>
    %181 = vector.broadcast %180 : vector<64x1xf32> to vector<64x128xf32>
    %182 = arith.subf %174, %181 : vector<64x128xf32>
    %183 = arith.mulf %182, %182 : vector<64x128xf32>
    %cst_83 = arith.constant dense<0.000000e+00> : vector<64xf32>
    %184 = vector.multi_reduction <add>, %183, %cst_83 [1] : vector<64x128xf32> to vector<64xf32>
    %185 = vector.shape_cast %184 : vector<64xf32> to vector<64x1xf32>
    %cst_84 = arith.constant 1.280000e+02 : f32
    %186 = vector.broadcast %cst_84 : f32 to vector<64x1xf32>
    %187 = arith.divf %185, %186 : vector<64x1xf32>
    %188 = vector.broadcast %180 : vector<64x1xf32> to vector<64x128xf32>
    %189 = arith.subf %174, %188 : vector<64x128xf32>
    %cst_85 = arith.constant 9.99999997E-7 : f32
    %190 = vector.broadcast %cst_85 : f32 to vector<64x1xf32>
    %191 = arith.addf %187, %190 : vector<64x1xf32>
    %192 = math.rsqrt %191 : vector<64x1xf32>
    %193 = vector.broadcast %192 : vector<64x1xf32> to vector<64x128xf32>
    %194 = arith.mulf %189, %193 : vector<64x128xf32>
    %195 = vector.broadcast %24 : vector<1x128xf32> to vector<64x128xf32>
    %196 = arith.mulf %194, %195 : vector<64x128xf32>
    %197 = vector.broadcast %25 : vector<1x128xf32> to vector<64x128xf32>
    %198 = arith.addf %196, %197 : vector<64x128xf32>
    %cst_86 = arith.constant dense<0.000000e+00> : vector<32xf32>
    %199 = vector.multi_reduction <add>, %175, %cst_86 [1] : vector<32x128xf32> to vector<32xf32>
    %200 = vector.shape_cast %199 : vector<32xf32> to vector<32x1xf32>
    %cst_87 = arith.constant 1.280000e+02 : f32
    %201 = vector.broadcast %cst_87 : f32 to vector<32x1xf32>
    %202 = arith.divf %200, %201 : vector<32x1xf32>
    %203 = vector.broadcast %202 : vector<32x1xf32> to vector<32x128xf32>
    %204 = arith.subf %175, %203 : vector<32x128xf32>
    %205 = arith.mulf %204, %204 : vector<32x128xf32>
    %cst_88 = arith.constant dense<0.000000e+00> : vector<32xf32>
    %206 = vector.multi_reduction <add>, %205, %cst_88 [1] : vector<32x128xf32> to vector<32xf32>
    %207 = vector.shape_cast %206 : vector<32xf32> to vector<32x1xf32>
    %cst_89 = arith.constant 1.280000e+02 : f32
    %208 = vector.broadcast %cst_89 : f32 to vector<32x1xf32>
    %209 = arith.divf %207, %208 : vector<32x1xf32>
    %210 = vector.broadcast %202 : vector<32x1xf32> to vector<32x128xf32>
    %211 = arith.subf %175, %210 : vector<32x128xf32>
    %cst_90 = arith.constant 9.99999974E-6 : f32
    %212 = vector.broadcast %cst_90 : f32 to vector<32x1xf32>
    %213 = arith.addf %209, %212 : vector<32x1xf32>
    %214 = math.rsqrt %213 : vector<32x1xf32>
    %215 = vector.broadcast %214 : vector<32x1xf32> to vector<32x128xf32>
    %216 = arith.mulf %211, %215 : vector<32x128xf32>
    %217 = vector.broadcast %26 : vector<1x128xf32> to vector<32x128xf32>
    %218 = arith.mulf %216, %217 : vector<32x128xf32>
    %219 = vector.broadcast %27 : vector<1x128xf32> to vector<32x128xf32>
    %220 = arith.addf %218, %219 : vector<32x128xf32>
    %221 = arith.mulf %198, %19 : vector<64x128xf32>
    %c64_i32_91 = arith.constant 64 : i32
    %222 = tpu.dynamic_rotate %198 by %c64_i32_91 dim 1 : vector<64x128xf32>, i32 -> vector<64x128xf32>
    %223 = arith.mulf %222, %21 : vector<64x128xf32>
    %224 = arith.addf %221, %223 : vector<64x128xf32>
    %225 = arith.mulf %220, %22 : vector<32x128xf32>
    %c64_i32_92 = arith.constant 64 : i32
    %226 = tpu.dynamic_rotate %220 by %c64_i32_92 dim 1 : vector<32x128xf32>, i32 -> vector<32x128xf32>
    %227 = arith.mulf %226, %23 : vector<32x128xf32>
    %228 = arith.addf %225, %227 : vector<32x128xf32>
    %229 = arith.truncf %224 : vector<64x128xf32> to vector<64x128xbf16>
    %230 = arith.truncf %228 : vector<32x128xf32> to vector<32x128xbf16>
    %cst_93 = arith.constant dense<0.000000e+00> : vector<64x32xf32>
    %231 = tpu.matmul %229, %230, %cst_93 {dimension_numbers = #tpu.dot_dimension_numbers<[1], [1], [0], [0], [0, 0, 1, 0], [], []>} : vector<64x128xbf16>, vector<32x128xbf16>, vector<64x32xf32> -> vector<64x32xf32>
    %cst_94 = arith.constant dense<0xFF800000> : vector<64xf32>
    %232 = vector.multi_reduction <maximumf>, %231, %cst_94 [1] : vector<64x32xf32> to vector<64xf32>
    %233 = vector.shape_cast %232 : vector<64xf32> to vector<64x1xf32>
    %234 = vector.broadcast %233 : vector<64x1xf32> to vector<64x32xf32>
    %235 = arith.subf %231, %234 : vector<64x32xf32>
    %236 = math.exp %235 : vector<64x32xf32>
    %cst_95 = arith.constant dense<0.000000e+00> : vector<64xf32>
    %237 = vector.multi_reduction <add>, %236, %cst_95 [1] : vector<64x32xf32> to vector<64xf32>
    %238 = vector.shape_cast %237 : vector<64xf32> to vector<64x1xf32>
    %239 = tpu.reciprocal %238 {approx = true} : vector<64x1xf32> -> vector<64x1xf32>
    %240 = arith.truncf %236 : vector<64x32xf32> to vector<64x32xbf16>
    %241 = arith.truncf %176 : vector<32x128xf32> to vector<32x128xbf16>
    %cst_96 = arith.constant dense<0.000000e+00> : vector<64x128xf32>
    %242 = tpu.matmul %240, %241, %cst_96 {dimension_numbers = #tpu.dot_dimension_numbers<[1], [0], [0], [1], [0, 0, 1, 1], [], []>} : vector<64x32xbf16>, vector<32x128xbf16>, vector<64x128xf32> -> vector<64x128xf32>
    %243 = vector.broadcast %239 : vector<64x1xf32> to vector<64x128xf32>
    %244 = arith.mulf %242, %243 : vector<64x128xf32>
    %245 = arith.truncf %244 : vector<64x128xf32> to vector<64x128xbf16>
    %c0_97 = arith.constant 0 : index
    %c256_98 = arith.constant 256 : index
    %246 = vector.load %arg15[%c0_97, %c256_98] : memref<64x512xbf16, #tpu.memory_space<vmem>>, vector<64x128xbf16>
    tpu.vector_store %arg15[%c0_97, %c256_98], %245 {strides = array<i32>} : memref<64x512xbf16, #tpu.memory_space<vmem>>, vector<64x128xbf16>,
    %c0_99 = arith.constant 0 : index
    %c384 = arith.constant 384 : index
    %247 = vector.load %arg13[%c0_99, %c384] : memref<64x512xf32, #tpu.memory_space<vmem>>, vector<64x128xf32>
    %c0_100 = arith.constant 0 : index
    %c384_101 = arith.constant 384 : index
    %248 = vector.load %arg14[%c0_100, %c384_101] : memref<32x1024xf32, #tpu.memory_space<vmem>>, vector<32x128xf32>
    %c0_102 = arith.constant 0 : index
    %c896 = arith.constant 896 : index
    %249 = vector.load %arg14[%c0_102, %c896] : memref<32x1024xf32, #tpu.memory_space<vmem>>, vector<32x128xf32>
    %cst_103 = arith.constant dense<0.000000e+00> : vector<64xf32>
    %250 = vector.multi_reduction <add>, %247, %cst_103 [1] : vector<64x128xf32> to vector<64xf32>
    %251 = vector.shape_cast %250 : vector<64xf32> to vector<64x1xf32>
    %cst_104 = arith.constant 1.280000e+02 : f32
    %252 = vector.broadcast %cst_104 : f32 to vector<64x1xf32>
    %253 = arith.divf %251, %252 : vector<64x1xf32>
    %254 = vector.broadcast %253 : vector<64x1xf32> to vector<64x128xf32>
    %255 = arith.subf %247, %254 : vector<64x128xf32>
    %256 = arith.mulf %255, %255 : vector<64x128xf32>
    %cst_105 = arith.constant dense<0.000000e+00> : vector<64xf32>
    %257 = vector.multi_reduction <add>, %256, %cst_105 [1] : vector<64x128xf32> to vector<64xf32>
    %258 = vector.shape_cast %257 : vector<64xf32> to vector<64x1xf32>
    %cst_106 = arith.constant 1.280000e+02 : f32
    %259 = vector.broadcast %cst_106 : f32 to vector<64x1xf32>
    %260 = arith.divf %258, %259 : vector<64x1xf32>
    %261 = vector.broadcast %253 : vector<64x1xf32> to vector<64x128xf32>
    %262 = arith.subf %247, %261 : vector<64x128xf32>
    %cst_107 = arith.constant 9.99999997E-7 : f32
    %263 = vector.broadcast %cst_107 : f32 to vector<64x1xf32>
    %264 = arith.addf %260, %263 : vector<64x1xf32>
    %265 = math.rsqrt %264 : vector<64x1xf32>
    %266 = vector.broadcast %265 : vector<64x1xf32> to vector<64x128xf32>
    %267 = arith.mulf %262, %266 : vector<64x128xf32>
    %268 = vector.broadcast %24 : vector<1x128xf32> to vector<64x128xf32>
    %269 = arith.mulf %267, %268 : vector<64x128xf32>
    %270 = vector.broadcast %25 : vector<1x128xf32> to vector<64x128xf32>
    %271 = arith.addf %269, %270 : vector<64x128xf32>
    %cst_108 = arith.constant dense<0.000000e+00> : vector<32xf32>
    %272 = vector.multi_reduction <add>, %248, %cst_108 [1] : vector<32x128xf32> to vector<32xf32>
    %273 = vector.shape_cast %272 : vector<32xf32> to vector<32x1xf32>
    %cst_109 = arith.constant 1.280000e+02 : f32
    %274 = vector.broadcast %cst_109 : f32 to vector<32x1xf32>
    %275 = arith.divf %273, %274 : vector<32x1xf32>
    %276 = vector.broadcast %275 : vector<32x1xf32> to vector<32x128xf32>
    %277 = arith.subf %248, %276 : vector<32x128xf32>
    %278 = arith.mulf %277, %277 : vector<32x128xf32>
    %cst_110 = arith.constant dense<0.000000e+00> : vector<32xf32>
    %279 = vector.multi_reduction <add>, %278, %cst_110 [1] : vector<32x128xf32> to vector<32xf32>
    %280 = vector.shape_cast %279 : vector<32xf32> to vector<32x1xf32>
    %cst_111 = arith.constant 1.280000e+02 : f32
    %281 = vector.broadcast %cst_111 : f32 to vector<32x1xf32>
    %282 = arith.divf %280, %281 : vector<32x1xf32>
    %283 = vector.broadcast %275 : vector<32x1xf32> to vector<32x128xf32>
    %284 = arith.subf %248, %283 : vector<32x128xf32>
    %cst_112 = arith.constant 9.99999974E-6 : f32
    %285 = vector.broadcast %cst_112 : f32 to vector<32x1xf32>
    %286 = arith.addf %282, %285 : vector<32x1xf32>
    %287 = math.rsqrt %286 : vector<32x1xf32>
    %288 = vector.broadcast %287 : vector<32x1xf32> to vector<32x128xf32>
    %289 = arith.mulf %284, %288 : vector<32x128xf32>
    %290 = vector.broadcast %26 : vector<1x128xf32> to vector<32x128xf32>
    %291 = arith.mulf %289, %290 : vector<32x128xf32>
    %292 = vector.broadcast %27 : vector<1x128xf32> to vector<32x128xf32>
    %293 = arith.addf %291, %292 : vector<32x128xf32>
    %294 = arith.mulf %271, %19 : vector<64x128xf32>
    %c64_i32_113 = arith.constant 64 : i32
    %295 = tpu.dynamic_rotate %271 by %c64_i32_113 dim 1 : vector<64x128xf32>, i32 -> vector<64x128xf32>
    %296 = arith.mulf %295, %21 : vector<64x128xf32>
    %297 = arith.addf %294, %296 : vector<64x128xf32>
    %298 = arith.mulf %293, %22 : vector<32x128xf32>
    %c64_i32_114 = arith.constant 64 : i32
    %299 = tpu.dynamic_rotate %293 by %c64_i32_114 dim 1 : vector<32x128xf32>, i32 -> vector<32x128xf32>
    %300 = arith.mulf %299, %23 : vector<32x128xf32>
    %301 = arith.addf %298, %300 : vector<32x128xf32>
    %302 = arith.truncf %297 : vector<64x128xf32> to vector<64x128xbf16>
    %303 = arith.truncf %301 : vector<32x128xf32> to vector<32x128xbf16>
    %cst_115 = arith.constant dense<0.000000e+00> : vector<64x32xf32>
    %304 = tpu.matmul %302, %303, %cst_115 {dimension_numbers = #tpu.dot_dimension_numbers<[1], [1], [0], [0], [0, 0, 1, 0], [], []>} : vector<64x128xbf16>, vector<32x128xbf16>, vector<64x32xf32> -> vector<64x32xf32>
    %cst_116 = arith.constant dense<0xFF800000> : vector<64xf32>
    %305 = vector.multi_reduction <maximumf>, %304, %cst_116 [1] : vector<64x32xf32> to vector<64xf32>
    %306 = vector.shape_cast %305 : vector<64xf32> to vector<64x1xf32>
    %307 = vector.broadcast %306 : vector<64x1xf32> to vector<64x32xf32>
    %308 = arith.subf %304, %307 : vector<64x32xf32>
    %309 = math.exp %308 : vector<64x32xf32>
    %cst_117 = arith.constant dense<0.000000e+00> : vector<64xf32>
    %310 = vector.multi_reduction <add>, %309, %cst_117 [1] : vector<64x32xf32> to vector<64xf32>
    %311 = vector.shape_cast %310 : vector<64xf32> to vector<64x1xf32>
    %312 = tpu.reciprocal %311 {approx = true} : vector<64x1xf32> -> vector<64x1xf32>
    %313 = arith.truncf %309 : vector<64x32xf32> to vector<64x32xbf16>
    %314 = arith.truncf %249 : vector<32x128xf32> to vector<32x128xbf16>
    %cst_118 = arith.constant dense<0.000000e+00> : vector<64x128xf32>
    %315 = tpu.matmul %313, %314, %cst_118 {dimension_numbers = #tpu.dot_dimension_numbers<[1], [0], [0], [1], [0, 0, 1, 1], [], []>} : vector<64x32xbf16>, vector<32x128xbf16>, vector<64x128xf32> -> vector<64x128xf32>
    %316 = vector.broadcast %312 : vector<64x1xf32> to vector<64x128xf32>
    %317 = arith.mulf %315, %316 : vector<64x128xf32>
    %318 = arith.truncf %317 : vector<64x128xf32> to vector<64x128xbf16>
    %c0_119 = arith.constant 0 : index
    %c384_120 = arith.constant 384 : index
    %319 = vector.load %arg15[%c0_119, %c384_120] : memref<64x512xbf16, #tpu.memory_space<vmem>>, vector<64x128xbf16>
    tpu.vector_store %arg15[%c0_119, %c384_120], %318 {strides = array<i32>} : memref<64x512xbf16, #tpu.memory_space<vmem>>, vector<64x128xbf16>,
    %c0_121 = arith.constant 0 : index
    %c0_122 = arith.constant 0 : index
    %320 = vector.load %arg15[%c0_121, %c0_122] : memref<64x512xbf16, #tpu.memory_space<vmem>>, vector<64x512xbf16>
    %c0_123 = arith.constant 0 : index
    %c0_124 = arith.constant 0 : index
    %321 = vector.load %arg7[%c0_123, %c0_124] : memref<512x512xbf16, #tpu.memory_space<vmem>>, vector<512x512xbf16>
    %cst_125 = arith.constant dense<0.000000e+00> : vector<64x512xf32>
    %322 = tpu.matmul %320, %321, %cst_125 {dimension_numbers = #tpu.dot_dimension_numbers<[1], [0], [0], [1], [0, 0, 1, 1], [], []>} : vector<64x512xbf16>, vector<512x512xbf16>, vector<64x512xf32> -> vector<64x512xf32>
    %c0_126 = arith.constant 0 : index
    %c0_127 = arith.constant 0 : index
    %323 = vector.load %arg8[%c0_126, %c0_127] : memref<1x512xf32, #tpu.memory_space<vmem>>, vector<1x512xf32>
    %324 = vector.broadcast %323 : vector<1x512xf32> to vector<64x512xf32>
    %325 = arith.addf %322, %324 : vector<64x512xf32>
    %c0_128 = arith.constant 0 : index
    %c0_129 = arith.constant 0 : index
    %c0_130 = arith.constant 0 : index
    %326 = vector.load %arg12[%c0_128, %c0_129, %c0_130] : memref<1x64x512xf32, #tpu.memory_space<vmem>>, vector<1x64x512xf32>
    %327 = vector.shape_cast %326 : vector<1x64x512xf32> to vector<64x512xf32>
    %328 = vector.shape_cast %325 : vector<64x512xf32> to vector<1x64x512xf32>
    tpu.vector_store %arg12[%c0_128, %c0_129, %c0_130], %328 {strides = array<i32>} : memref<1x64x512xf32, #tpu.memory_space<vmem>>, vector<1x64x512xf32>,
    return
  }
  func.func @transform_0(%arg0: i32) -> (i32, i32, i32) {
    %c0_i32 = arith.constant 0 : i32
    %c0_i32_0 = arith.constant 0 : i32
    %c0_i32_1 = arith.constant 0 : i32
    return %arg0, %c0_i32, %c0_i32_0 : i32, i32, i32
  }
  func.func @transform_1(%arg0: i32) -> (i32, i32, i32) {
    %c0_i32 = arith.constant 0 : i32
    %c0_i32_0 = arith.constant 0 : i32
    %c0_i32_1 = arith.constant 0 : i32
    return %arg0, %c0_i32, %c0_i32_0 : i32, i32, i32
  }
  func.func @transform_2(%arg0: i32) -> (i32, i32) {
    %c0_i32 = arith.constant 0 : i32
    %c0_i32_0 = arith.constant 0 : i32
    %c0_i32_1 = arith.constant 0 : i32
    return %c0_i32, %c0_i32_0 : i32, i32
  }
  func.func @transform_3(%arg0: i32) -> (i32, i32) {
    %c0_i32 = arith.constant 0 : i32
    %c0_i32_0 = arith.constant 0 : i32
    %c0_i32_1 = arith.constant 0 : i32
    return %c0_i32, %c0_i32_0 : i32, i32
  }
  func.func @transform_4(%arg0: i32) -> (i32, i32) {
    %c0_i32 = arith.constant 0 : i32
    %c0_i32_0 = arith.constant 0 : i32
    %c0_i32_1 = arith.constant 0 : i32
    return %c0_i32, %c0_i32_0 : i32, i32
  }
  func.func @transform_5(%arg0: i32) -> (i32, i32) {
    %c0_i32 = arith.constant 0 : i32
    %c0_i32_0 = arith.constant 0 : i32
    %c0_i32_1 = arith.constant 0 : i32
    return %c0_i32, %c0_i32_0 : i32, i32
  }
  func.func @transform_6(%arg0: i32) -> (i32, i32) {
    %c0_i32 = arith.constant 0 : i32
    %c0_i32_0 = arith.constant 0 : i32
    %c0_i32_1 = arith.constant 0 : i32
    return %c0_i32, %c0_i32_0 : i32, i32
  }
  func.func @transform_7(%arg0: i32) -> (i32, i32) {
    %c0_i32 = arith.constant 0 : i32
    %c0_i32_0 = arith.constant 0 : i32
    %c0_i32_1 = arith.constant 0 : i32
    return %c0_i32, %c0_i32_0 : i32, i32
  }
  func.func @transform_8(%arg0: i32) -> (i32, i32, i32) {
    %c2_i32 = arith.constant 2 : i32
    %c0_i32 = arith.constant 0 : i32
    %0 = arith.cmpi eq, %c2_i32, %c0_i32 : i32
    %c1_i32 = arith.constant 1 : i32
    %1 = arith.select %0, %c1_i32, %c2_i32 : i32
    %2 = arith.remsi %arg0, %1 : i32
    %c0_i32_0 = arith.constant 0 : i32
    %3 = arith.cmpi ne, %2, %c0_i32_0 : i32
    %c0_i32_1 = arith.constant 0 : i32
    %4 = arith.cmpi slt, %2, %c0_i32_1 : i32
    %c0_i32_2 = arith.constant 0 : i32
    %5 = arith.cmpi slt, %1, %c0_i32_2 : i32
    %6 = arith.xori %4, %5 : i1
    %7 = arith.andi %6, %3 : i1
    %8 = arith.addi %2, %1 : i32
    %9 = arith.select %7, %8, %2 : i32
    %c0_i32_3 = arith.constant 0 : i32
    %c0_i32_4 = arith.constant 0 : i32
    %c0_i32_5 = arith.constant 0 : i32
    return %9, %c0_i32_3, %c0_i32_4 : i32, i32, i32
  }
  func.func @transform_9(%arg0: i32) -> (i32, i32) {
    %c0_i32 = arith.constant 0 : i32
    %c0_i32_0 = arith.constant 0 : i32
    %c0_i32_1 = arith.constant 0 : i32
    return %c0_i32, %c0_i32_0 : i32, i32
  }
  func.func @transform_10(%arg0: i32) -> (i32, i32) {
    %c0_i32 = arith.constant 0 : i32
    %c0_i32_0 = arith.constant 0 : i32
    %c0_i32_1 = arith.constant 0 : i32
    return %c0_i32, %c0_i32_0 : i32, i32
  }
  func.func @transform_11(%arg0: i32) -> (i32, i32, i32) {
    %c0_i32 = arith.constant 0 : i32
    %c0_i32_0 = arith.constant 0 : i32
    %c0_i32_1 = arith.constant 0 : i32
    return %arg0, %c0_i32, %c0_i32_0 : i32, i32, i32
  }
}

</mosaic_0001>

<bundles_post_ra>
// kernel: single_stream_multi_attention_pallas.1
= control target key start
LH: loop header
LB: loop body
LE: loop exit
PB: predicated region body
PF: predicated region fallthrough
CT: control target
= control target key end

     0   :  { %s10139_s0 = inlined_call_operand.hbm [shape: f32[2,64,512], index: 0, kind: input, shape index: {}]   ;;  %s10140_s1 = inlined_call_operand.vmem [shape: f32[2,32,128], index: 1, kind: input, shape index: {}]   ;;  %s10141_s2 = inlined_call_operand.vmem [shape: bf16[512,512], index: 2, kind: input, shape index: {}]   ;;  %s10142_s3 = inlined_call_operand.vmem [shape: f32[1,512], index: 3, kind: input, shape index: {}]   ;;  %s10143_s4 = inlined_call_operand.hbm [shape: bf16[128,1024], index: 4, kind: input, shape index: {}]   ;;  %s10144_s5 = inlined_call_operand.vmem [shape: f32[1,1024], index: 5, kind: input, shape index: {}]   ;;  %s10145_s6 = inlined_call_operand.vmem [shape: bf16[512,512], index: 6, kind: input, shape index: {}]   ;;  %s10146_s7 = inlined_call_operand.vmem [shape: f32[1,512], index: 7, kind: input, shape index: {}]   ;;  %s10147_s8 = inlined_call_operand.vmem [shape: f32[2,64,256], index: 8, kind: input, shape index: {}]   ;;  %s10148_s9 = inlined_call_operand.vmem [shape: f32[32,256], index: 9, kind: input, shape index: {}]   ;;  %s10149_s10 = inlined_call_operand.vmem [shape: f32[4,128], index: 10, kind: input, shape index: {}]   ;;  %s10150_s11 = inlined_call_operand.hbm [shape: f32[2,64,512], index: 11, kind: output, shape index: {}]  }
   0x1   :  { %10236 = sst [smem:[#allocation59_spill]] %s10143_s4 }
   0x2   :  { %10237 = sst [smem:[#allocation60_spill]] %s10150_s11 }
   0x3   :  { %16 = vsyncpa [#allocation6], 0 }
   0x4   :  { %18 = vsyncpa [#allocation6 + $0x1], 0 }
   0x5   :  { %19 = vsyncpa [#allocation9], 0 }
   0x6   :  { %20 = vsyncpa [#allocation7], 0 }
   0x7   :  { %22 = vsyncpa [#allocation7 + $0x1], 0  ;;  %s7302_s17 = smov 0   ;;  %s7304_s18 = smov 0  }
   0x8   :  { %s7306_s19 = smov 0   ;;  %s7308_s20 = smov 0  }
   0x9 LB: > { %10238 = sst [smem:[#allocation14_spill]] %s7219_s17  ;;  %s7323_s21 = sadd.s32 4294967295, %s7231_s20   ;;  %s7231_s20 = sphi %s7308_s20, %s10391_s20   ;;  %s7227_s19 = sphi %s7306_s19, %s10394_s19   ;;  %s7223_s18 = sphi %s7304_s18, %s10393_s18   ;;  %s7219_s17 = sphi %s7302_s17, %s10392_s17  }
   0xa   : > { %s5816_s22 = sadd.s32 4294967294, %s7231_s20   ;;  %p48_p0 = scmp.ne.s32.totalorder %s7223_s18, %s7219_s17 }
   0xb   : > { %p10157_p1 = scmp.eq.s32.totalorder %s7323_s21, 0  ;;  %p322_p3 = scmp.eq.s32.totalorder %s5816_s22, 1 }
   0xc   : > { %p5823_p5 = scmp.ge.s32.totalorder %s7231_s20, 1  ;;  %p329_p7 = scmp.lt.s32.totalorder %s7231_s20, 3 }
   0xd   : > { %p7332_p4 = por %p10157_p1, %p48_p0  ;;  %p7337_p6 = por %p322_p3, %p48_p0 }
   0xe   : > { %p7342_p8 = pnand %p5823_p5, %p329_p7  ;;  %s7233_s26 = smov [#allocation8]  }
   0xf   : > { %s10239_s23 = scalar_select %p7332_p4, 1, 0 }
  0x10   : > { %s10240_s24 = scalar_select %p7337_p6, 1, 0 }
  0x11   : > { %s10242_s25 = scalar_select %p7342_p8, 1, 0 }
  0x12   : > { %10241 = sst [smem:[#allocation15_spill]] %s10240_s24  ;;  %s347_s27 = sshll.u32 %s7233_s26, 4  ;;  %s348_s27 = int_to_ptr.vmem [resolvable:$true] %s347_s27 }
  0x13   : > { %p6421_p9 = pneg %p7342_p8  ;;  %s7356_s29 = sadd.s32 1, %s7231_s20  }
  0x14   : > { %10244 = sst [smem:[#allocation16_spill]] %s7356_s29  ;;  %s35_s30 = sadd.s32 1, %s7227_s19 }
  0x15   : > { %p7351_p11 = pnand %p6421_p9, %p10157_p1  ;;  %s32_s12 = ssub.s32 %s7231_s20, %s7356_s29 }
  0x16   : > { %s7120_s13 = scalar_lea.vmem %s348_s27, 8192  ;;  %p7128_p5 = scmp.lt.s32.totalorder %s348_s27, %s348_s27 }
  0x17   : > { %p7111_p12 = pneg %p7351_p11  ;;  %p7121_p13 = scmp.ne.s32.totalorder %s348_s27, %s7120_s13 }
  0x18   : > { %p7129_p7 = scmp.lt.s32.totalorder %s7120_s13, %s7120_s13 }
  0x19   : > { %p7123_p0 = pnand %p7121_p13, %p7111_p12 }
  0x1a   : > { %p7130_p10 = por %p7129_p7, %p7128_p5 }
  0x1b   : > { %p7124_p3 = pneg %p7123_p0 }
  0x1d   : > { %p7131_p2 = pnand %p7130_p10, %p7124_p3 }
  0x1f   : > { %7134 = shalt.err (!%p7131_p2)
}
  0x20   : > { %s10156_s14 = smov 512   ;;  %s10158_s15 = smov 32  }
  0x21   : > { %s10245_s4 = sld [smem:[#allocation59_spill]]  ;;  %p33_p2 = scmp.eq.s32.totalorder %s32_s12, 0 }
  0x22   : > { %p42_p9 = scmp.ne.s32.totalorder %s7227_s19, %s7223_s18  ;;  %p43_p10 = scmp.eq.s32.totalorder %s7231_s20, 0 }
  0x23   : > { %p6434_p12 = scmp.lt.s32.totalorder %s7231_s20, 2  ;;  %p10246_p0 = scmp.eq.s32.totalorder %s7323_s21, 1 }
  0x24   : > { %s7376_s26 = scalar_select %p33_p2, %s7227_s19, %s35_s30  }
  0x25   : > { %p44_p13 = por %p43_p10, %p42_p9  ;;  %p7380_p3 = por %p10246_p0, %p42_p9 }
  0x26   : > { %s376_s28 = sand.u32 1, %s7227_s19   ;;  %s6233_s29 = sshll.u32 %s7231_s20, 12 }
  0x27   : > { %6424 = dma.hbm_to_vmem [thread:$0]  (!%p7351_p11), %s10245_s4, 8192, %s348_s27, [#allocation9], %s10156_s14, %s10156_s14, %s10158_s15  }
  0x28   : > { %s10247_s13 = scalar_select %p7380_p3, 1, 0 }
  0x29   : > { %s5826_s24 = sshll.u32 %s376_s28, 8  ;;  %s7389_s16 = scalar_lea.hbm %s10139_s0, %s6233_s29 }
  0x2a   : > { %s380_s27 = scalar_lea.vmem [#allocation5], %s5826_s24  ;;  %p7391_p11 = pnand %p6434_p12, %p44_p13 }
  0x2b   : > { %s387_s30 = sshll.u32 %s380_s27, 4  ;;  %s7397_s22 = scalar_lea.sflag [#allocation6], %s376_s28  ;;  %s7395_s30 = int_to_ptr.vmem [resolvable:$true] %s387_s30 }
  0x2c   : > { %s7135_s14 = scalar_lea.hbm %s7389_s16, 4096  ;;  %p7137_p7 = pneg %p7391_p11 }
  0x2d   : > { %p7136_p5 = scmp.ne.s32.totalorder %s7389_s16, %s7135_s14  ;;  %s7140_s24 = scalar_lea.hbm %s10139_s0, 8192 }
  0x2e   : > { %p7141_p10 = scmp.lt.s32.totalorder %s7389_s16, %s10139_s0  ;;  %p7142_p12 = scmp.lt.s32.totalorder %s7140_s24, %s7135_s14 }
  0x2f   : > { %p7138_p2 = pnand %p7137_p7, %p7136_p5 }
  0x30   : > { %p7143_p13 = por %p7142_p12, %p7141_p10 }
  0x31   : > { %p7139_p9 = pneg %p7138_p2 }
  0x33   : > { %p7144_p0 = pnand %p7143_p13, %p7139_p9 }
  0x35   : > { %7147 = shalt.err (!%p7144_p0)
}
  0x36   : > { %s7148_s28 = scalar_lea.vmem %s7395_s30, 4096  ;;  %s7236_s15 = smov [#allocation5]  }
  0x37   : > { %p7149_p1 = scmp.ne.s32.totalorder %s7395_s30, %s7148_s28  ;;  %s7153_s4 = sshll.u32 %s7236_s15, 4  ;;  %s7154_s4 = int_to_ptr.vmem [resolvable:$false] %s7153_s4 }
  0x38   : > { %s7155_s11 = scalar_lea.vmem %s7154_s4, 8192  ;;  %p7156_p2 = scmp.lt.s32.totalorder %s7395_s30, %s7154_s4 }
  0x39   : > { %p7151_p6 = pnand %p7149_p1, %p7137_p7  ;;  %p7157_p3 = scmp.lt.s32.totalorder %s7155_s11, %s7148_s28 }
  0x3b   : > { %p7152_p5 = pneg %p7151_p6  ;;  %p7158_p4 = por %p7157_p3, %p7156_p2 }
  0x3d   : > { %p7159_p8 = pnand %p7158_p4, %p7152_p5 }
  0x3f   : > { %7162 = shalt.err (!%p7159_p8)
}
  0x40   : > { %s10249_s14 = smov 32   ;;  %s10250_s17 = smov 512  }
  0x41   : > { %6428 = dma.hbm_to_vmem [thread:$0]  (!%p7391_p11), %s7389_s16, 4096, %s7395_s30, %s7397_s22, %s10250_s17, %s10250_s17, %s10249_s14  }
  0x42   : > { %p10251_p1 = scmp.ne.s32.totalorder %s10242_s25, 0 }
  0x44   : > { %439 = sbr.rel (%p10251_p1) target bundleno = 1837 (0x72d), region = 64 }
  0x49   : > { %s7424_s15 = sand.u32 1, %s7223_s18   ;;  %p10252_p4 = scmp.ne.s32.totalorder %s10239_s23, 0 }
  0x4a   : > { %s5830_s4 = sshll.u32 %s7424_s15, 8  ;;  %s442_s24 = scalar_lea.sflag [#allocation6], %s7424_s15 }
  0x4b   : > { %s7430_s12 = scalar_lea.vmem [#allocation5], %s5830_s4 }
  0x4c   : > { %7206 = dma.done.wait (%p10252_p4), %s442_s24, 4096  }
  0x4d   : > { %7208 = vsyncadd (%p10252_p4), %s442_s24, 4294963200  ;;  %p10253_p6 = scmp.eq.s32.totalorder %s7323_s21, 0 }
  0x4f   : > { %7210 = dma.done.wait (%p10253_p6), [#allocation9], 8192   ;;  %p10254_p8 = pmov %p10253_p6 }
  0x50   : > { %v6476_v0 = vld [vmem:[%s10141_s2 + $0xe4] ss:$16 sps:$4 sm:$0xff]   ;;  %v6480_v2 = vld [vmem:[%s10141_s2 + $0xe0] ss:$16 sps:$4 sm:$0xff]   ;;  %v546_v46 = vld [vmem:[%s7430_s12 + $0x8] sm:$0xff]  ;;  %p510_p3 = scmp.lt.s32.totalorder %s7323_s21, 1 }
  0x51   : > { %7212 = vsyncadd (%p10254_p8), [#allocation9], 4294959104  ;;  %v6478_v1 = vld [vmem:[%s10141_s2 + $0x2e4] ss:$16 sps:$4 sm:$0xff]   ;;  %1383 = vmatprep.subr.bf16.mxu0 %v6476_v0  ;;  %v6481_v3 = vld [vmem:[%s10141_s2 + $0x2e0] ss:$16 sps:$4 sm:$0xff]  }
  0x52   : > { %1456 = vmatprep.subr.bf16.mxu1 %v6478_v1  ;;  %v6482_v4 = vld [vmem:[%s10141_s2 + $0xc4] ss:$16 sps:$4 sm:$0xff]   ;;  %1384 = vmatpush1.bf16.msra.mxu0 %v6480_v2  ;;  %v6486_v6 = vld [vmem:[%s10141_s2 + $0xc0] ss:$16 sps:$4 sm:$0xff]   ;;  %v550_v47 = vld [vmem:[%s7430_s12 + $0x28] sm:$0xff]  ;;  %s511_s17 = scalar_select %p510_p3, %s7323_s21, 1 }
  0x53   : > { %1457 = vmatpush1.bf16.msra.mxu1 %v6481_v3  ;;  %v6484_v5 = vld [vmem:[%s10141_s2 + $0x2c4] ss:$16 sps:$4 sm:$0xff]   ;;  %1385 = vmatprep.subr.bf16.mxu0 %v6482_v4  ;;  %v6487_v7 = vld [vmem:[%s10141_s2 + $0x2c0] ss:$16 sps:$4 sm:$0xff]   ;;  %v548_v48 = vld [vmem:[%s7430_s12 + $0x18] sm:$0xff]  ;;  %v7591_v53 = vpack.c.bf16 %v550_v47, %v546_v46  ;;  %s516_s22 = ssub.s32 0, %s7323_s21 }
  0x54   : > { %1458 = vmatprep.subr.bf16.mxu1 %v6484_v5  ;;  %v6488_v8 = vld [vmem:[%s10141_s2 + $0xa4] ss:$16 sps:$4 sm:$0xff]   ;;  %v6492_v10 = vld [vmem:[%s10141_s2 + $0xa0] ss:$16 sps:$4 sm:$0xff]   ;;  %v552_v49 = vld [vmem:[%s7430_s12 + $0x38] sm:$0xff]  ;;  %s6234_s24 = sshll.u32 %s511_s17, 5 }
  0x55   : > { %v6490_v9 = vld [vmem:[%s10141_s2 + $0x2a4] ss:$16 sps:$4 sm:$0xff]   ;;  %v6493_v11 = vld [vmem:[%s10141_s2 + $0x2a0] ss:$16 sps:$4 sm:$0xff]   ;;  %v7593_v54 = vpack.c.bf16 %v552_v49, %v548_v48  ;;  %1415 = vmatprep.mubr.bf16.mxu0 %v7591_v53  ;;  %v6598_v48 = vld [vmem:[%s10141_s2 + $0x6c] ss:$16 sps:$4 sm:$0xff]   ;;  %s514_s30 = scalar_lea.vmem %s10140_s1, %s6234_s24 }
  0x56   : > { %1386 = vmatpush1.bf16.msra.mxu0 %v6486_v6  ;;  %v6494_v12 = vld [vmem:[%s10141_s2 + $0x84] ss:$16 sps:$4 sm:$0xff]   ;;  %v6498_v14 = vld [vmem:[%s10141_s2 + $0x80] ss:$16 sps:$4 sm:$0xff]   ;;  %s7238_s17 = smov 64   ;;  %p515_p11 = scmp.lt.s32.totalorder %s7323_s21, 0 }
  0x57   : > { %1459 = vmatpush1.bf16.msra.mxu1 %v6487_v7  ;;  %1387 = vmatprep.subr.bf16.mxu0 %v6488_v8  ;;  %v6496_v13 = vld [vmem:[%s10141_s2 + $0x284] ss:$16 sps:$4 sm:$0xff]   ;;  %v6499_v15 = vld [vmem:[%s10141_s2 + $0x280] ss:$16 sps:$4 sm:$0xff]   ;;  %vm2731_vm0 = vcmask 261120   ;;  %p10386_p12 = scmp.ne.s32.totalorder %s10247_s13, 0 }
  0x58   : > { %1460 = vmatprep.subr.bf16.mxu1 %v6490_v9  ;;  %v6500_v16 = vld [vmem:[%s10141_s2 + $0x64] ss:$16 sps:$4 sm:$0xff]   ;;  %v6504_v18 = vld [vmem:[%s10141_s2 + $0x60] ss:$16 sps:$4 sm:$0xff]   ;;  %1488 = vmatprep.mubr.bf16.mxu1 %v7593_v54  ;;  %s7239_s11 = smov [#allocation10]  }
  0x59   : > { %v6502_v17 = vld [vmem:[%s10141_s2 + $0x264] ss:$16 sps:$4 sm:$0xff]   ;;  %v6505_v19 = vld [vmem:[%s10141_s2 + $0x260] ss:$16 sps:$4 sm:$0xff]   ;;  %s7167_s14 = sshll.u32 %s7239_s11, 4  ;;  %s7168_s14 = int_to_ptr.vmem [resolvable:$false] %s7167_s14 }
  0x5a   : > { %1388 = vmatpush1.bf16.msra.mxu0 %v6492_v10  ;;  %v6506_v20 = vld [vmem:[%s10141_s2 + $0x44] ss:$16 sps:$4 sm:$0xff]   ;;  %v6510_v22 = vld [vmem:[%s10141_s2 + $0x40] ss:$16 sps:$4 sm:$0xff]   ;;  %v6574_v10 = vld [vmem:[%s10141_s2 + $0xec] ss:$16 sps:$4 sm:$0xff]  }
  0x5b   : > { %1461 = vmatpush1.bf16.msra.mxu1 %v6493_v11  ;;  %1389 = vmatprep.subr.bf16.mxu0 %v6494_v12  ;;  %v6508_v21 = vld [vmem:[%s10141_s2 + $0x244] ss:$16 sps:$4 sm:$0xff]   ;;  %v6511_v23 = vld [vmem:[%s10141_s2 + $0x240] ss:$16 sps:$4 sm:$0xff]   ;;  %v6577_v11 = vld [vmem:[%s10141_s2 + $0x2ec] ss:$16 sps:$4 sm:$0xff]  }
  0x5c   : > { %1462 = vmatprep.subr.bf16.mxu1 %v6496_v13  ;;  %v6512_v24 = vld [vmem:[%s10141_s2 + $0x24] ss:$16 sps:$4 sm:$0xff]   ;;  %v6516_v26 = vld [vmem:[%s10141_s2 + $0x20] ss:$16 sps:$4 sm:$0xff]   ;;  %v6572_v12 = vld [vmem:[%s10141_s2 + $0xe8] ss:$16 sps:$4 sm:$0xff]  }
  0x5d   : > { %v6514_v25 = vld [vmem:[%s10141_s2 + $0x224] ss:$16 sps:$4 sm:$0xff]   ;;  %v6517_v27 = vld [vmem:[%s10141_s2 + $0x220] ss:$16 sps:$4 sm:$0xff]   ;;  %v6575_v13 = vld [vmem:[%s10141_s2 + $0x2e8] ss:$16 sps:$4 sm:$0xff]  }
  0x5e   : > { %1390 = vmatpush1.bf16.msra.mxu0 %v6498_v14  ;;  %v6518_v28 = vld [vmem:[%s10141_s2 + $0x4] ss:$16 sps:$4 sm:$0xff]   ;;  %v6522_v30 = vld [vmem:[%s10141_s2] ss:$16 sps:$4 sm:$0xff]   ;;  %v554_v14 = vld [vmem:[%s7430_s12 + $0x48] sm:$0xff] }
  0x5f   : > { %1463 = vmatpush1.bf16.msra.mxu1 %v6499_v15  ;;  %1391 = vmatprep.subr.bf16.mxu0 %v6500_v16  ;;  %v6520_v29 = vld [vmem:[%s10141_s2 + $0x204] ss:$16 sps:$4 sm:$0xff]   ;;  %v6523_v31 = vld [vmem:[%s10141_s2 + $0x200] ss:$16 sps:$4 sm:$0xff]  }
  0x60   : > { %1464 = vmatprep.subr.bf16.mxu1 %v6502_v17  ;;  %v6524_v32 = vld [vmem:[%s10141_s2 + $0x1e4] ss:$16 sps:$4 sm:$0xff]   ;;  %v6528_v34 = vld [vmem:[%s10141_s2 + $0x1e0] ss:$16 sps:$4 sm:$0xff]   ;;  %v558_v17 = vld [vmem:[%s7430_s12 + $0x68] sm:$0xff] }
  0x61   : > { %v6526_v33 = vld [vmem:[%s10141_s2 + $0x3e4] ss:$16 sps:$4 sm:$0xff]   ;;  %v6529_v35 = vld [vmem:[%s10141_s2 + $0x3e0] ss:$16 sps:$4 sm:$0xff]  }
  0x62   : > { %1392 = vmatpush1.bf16.msra.mxu0 %v6504_v18  ;;  %v6530_v36 = vld [vmem:[%s10141_s2 + $0x1c4] ss:$16 sps:$4 sm:$0xff]   ;;  %v6534_v38 = vld [vmem:[%s10141_s2 + $0x1c0] ss:$16 sps:$4 sm:$0xff]   ;;  %v556_v18 = vld [vmem:[%s7430_s12 + $0x58] sm:$0xff] }
  0x63   : > { %1465 = vmatpush1.bf16.msra.mxu1 %v6505_v19  ;;  %1393 = vmatprep.subr.bf16.mxu0 %v6506_v20  ;;  %v6532_v37 = vld [vmem:[%s10141_s2 + $0x3c4] ss:$16 sps:$4 sm:$0xff]   ;;  %v6535_v39 = vld [vmem:[%s10141_s2 + $0x3c0] ss:$16 sps:$4 sm:$0xff]   ;;  %v560_v19 = vld [vmem:[%s7430_s12 + $0x78] sm:$0xff] }
  0x64   : > { %1466 = vmatprep.subr.bf16.mxu1 %v6508_v21  ;;  %v6536_v40 = vld [vmem:[%s10141_s2 + $0x1a4] ss:$16 sps:$4 sm:$0xff]   ;;  %v6540_v42 = vld [vmem:[%s10141_s2 + $0x1a0] ss:$16 sps:$4 sm:$0xff]   ;;  %v6580_v20 = vld [vmem:[%s10141_s2 + $0xcc] ss:$16 sps:$4 sm:$0xff]  }
  0x65   : > { %v6538_v41 = vld [vmem:[%s10141_s2 + $0x3a4] ss:$16 sps:$4 sm:$0xff]   ;;  %v6541_v43 = vld [vmem:[%s10141_s2 + $0x3a0] ss:$16 sps:$4 sm:$0xff]   ;;  %v6583_v21 = vld [vmem:[%s10141_s2 + $0x2cc] ss:$16 sps:$4 sm:$0xff]  }
  0x66   : > { %1394 = vmatpush1.bf16.msra.mxu0 %v6510_v22  ;;  %v6542_v44 = vld [vmem:[%s10141_s2 + $0x184] ss:$16 sps:$4 sm:$0xff]   ;;  %v6546_v50 = vld [vmem:[%s10141_s2 + $0x180] ss:$16 sps:$4 sm:$0xff]   ;;  %v6578_v22 = vld [vmem:[%s10141_s2 + $0xc8] ss:$16 sps:$4 sm:$0xff]  }
  0x67   : > { %1467 = vmatpush1.bf16.msra.mxu1 %v6511_v23  ;;  %1395 = vmatprep.subr.bf16.mxu0 %v6512_v24  ;;  %v6544_v45 = vld [vmem:[%s10141_s2 + $0x384] ss:$16 sps:$4 sm:$0xff]   ;;  %v6547_v51 = vld [vmem:[%s10141_s2 + $0x380] ss:$16 sps:$4 sm:$0xff]   ;;  %v6581_v23 = vld [vmem:[%s10141_s2 + $0x2c8] ss:$16 sps:$4 sm:$0xff]   ;;  %v7678_v24 = vpack.c.bf16 %v558_v17, %v554_v14 }
  0x68   : > { %1468 = vmatprep.subr.bf16.mxu1 %v6514_v25  ;;  %v6548_v52 = vld [vmem:[%s10141_s2 + $0x164] ss:$16 sps:$4 sm:$0xff]   ;;  %v6552_v56 = vld [vmem:[%s10141_s2 + $0x160] ss:$16 sps:$4 sm:$0xff]   ;;  %v6616_v14 = vld [vmem:[%s10141_s2 + $0xc] ss:$16 sps:$4 sm:$0xff]  }
  0x69   : > { %v6550_v55 = vld [vmem:[%s10141_s2 + $0x364] ss:$16 sps:$4 sm:$0xff]   ;;  %v6553_v57 = vld [vmem:[%s10141_s2 + $0x360] ss:$16 sps:$4 sm:$0xff]   ;;  %v6619_v17 = vld [vmem:[%s10141_s2 + $0x20c] ss:$16 sps:$4 sm:$0xff]  }
  0x6a   : > { %1396 = vmatpush1.bf16.msra.mxu0 %v6516_v26  ;;  %v6554_v58 = vld [vmem:[%s10141_s2 + $0x144] ss:$16 sps:$4 sm:$0xff]   ;;  %v6558_v60 = vld [vmem:[%s10141_s2 + $0x140] ss:$16 sps:$4 sm:$0xff]   ;;  %v7681_v26 = vpack.c.bf16 %v560_v19, %v556_v18  ;;  %v6614_v18 = vld [vmem:[%s10141_s2 + $0x8] ss:$16 sps:$4 sm:$0xff]  }
  0x6b   : > { %1469 = vmatpush1.bf16.msra.mxu1 %v6517_v27  ;;  %1397 = vmatprep.subr.bf16.mxu0 %v6518_v28  ;;  %v6556_v59 = vld [vmem:[%s10141_s2 + $0x344] ss:$16 sps:$4 sm:$0xff]   ;;  %v6559_v61 = vld [vmem:[%s10141_s2 + $0x340] ss:$16 sps:$4 sm:$0xff]   ;;  %v6586_v28 = vld [vmem:[%s10141_s2 + $0xac] ss:$16 sps:$4 sm:$0xff]  }
  0x6c   : > { %1470 = vmatprep.subr.bf16.mxu1 %v6520_v29  ;;  %v6560_v62 = vld [vmem:[%s10141_s2 + $0x124] ss:$16 sps:$4 sm:$0xff]   ;;  %v6564_v0 = vld [vmem:[%s10141_s2 + $0x120] ss:$16 sps:$4 sm:$0xff]   ;;  %v6617_v19 = vld [vmem:[%s10141_s2 + $0x208] ss:$16 sps:$4 sm:$0xff]  }
  0x6d   : > { %v6562_v63 = vld [vmem:[%s10141_s2 + $0x324] ss:$16 sps:$4 sm:$0xff]   ;;  %v6565_v1 = vld [vmem:[%s10141_s2 + $0x320] ss:$16 sps:$4 sm:$0xff]  }
  0x6e   : > { %1398 = vmatpush1.bf16.msra.mxu0 %v6522_v30  ;;  %v6566_v2 = vld [vmem:[%s10141_s2 + $0x104] ss:$16 sps:$4 sm:$0xff]   ;;  %v6570_v4 = vld [vmem:[%s10141_s2 + $0x100] ss:$16 sps:$4 sm:$0xff]  }
  0x6f   : > { %1471 = vmatpush1.bf16.msra.mxu1 %v6523_v31  ;;  %1399 = vmatprep.subr.bf16.mxu0 %v6524_v32  ;;  %v6568_v3 = vld [vmem:[%s10141_s2 + $0x304] ss:$16 sps:$4 sm:$0xff]   ;;  %v6571_v5 = vld [vmem:[%s10141_s2 + $0x300] ss:$16 sps:$4 sm:$0xff]   ;;  %v6589_v31 = vld [vmem:[%s10141_s2 + $0x2ac] ss:$16 sps:$4 sm:$0xff]  }
  0x70   : > { %1472 = vmatprep.subr.bf16.mxu1 %v6526_v33  ;;  %v545_v6 = vld [vmem:[%s7430_s12] sm:$0xff]  ;;  %v547_v8 = vld [vmem:[%s7430_s12 + $0x10] sm:$0xff]  ;;  %v6584_v32 = vld [vmem:[%s10141_s2 + $0xa8] ss:$16 sps:$4 sm:$0xff]  }
  0x71   : > { %v549_v7 = vld [vmem:[%s7430_s12 + $0x20] sm:$0xff]  ;;  %v551_v9 = vld [vmem:[%s7430_s12 + $0x30] sm:$0xff]  ;;  %v6587_v33 = vld [vmem:[%s10141_s2 + $0x2a8] ss:$16 sps:$4 sm:$0xff]  }
  0x72   : > { %1400 = vmatpush2.bf16.msra.mxu0 %v6528_v34  ;;  %v7659_v15 = vpack.c.bf16 %v549_v7, %v545_v6  ;;  %v7661_v16 = vpack.c.bf16 %v551_v9, %v547_v8  ;;  %v553_v25 = vld [vmem:[%s7430_s12 + $0x40] sm:$0xff]  ;;  %v555_v29 = vld [vmem:[%s7430_s12 + $0x50] sm:$0xff]  ;;  %v562_v34 = vld [vmem:[%s7430_s12 + $0x88] sm:$0xff] }
  0x73   : > { %1473 = vmatpush2.bf16.msra.mxu1 %v6529_v35  ;;  %1401 = vmatprep.subr.bf16.mxu0 %v6530_v36  ;;  %v557_v27 = vld [vmem:[%s7430_s12 + $0x60] sm:$0xff]  ;;  %v559_v30 = vld [vmem:[%s7430_s12 + $0x70] sm:$0xff]  ;;  %v6610_v6 = vld [vmem:[%s10141_s2 + $0x2c] ss:$16 sps:$4 sm:$0xff]  }
  0x74   : > { %1474 = vmatprep.subr.bf16.mxu1 %v6532_v37  ;;  %v7703_v35 = vpack.c.bf16 %v557_v27, %v553_v25  ;;  %v7705_v36 = vpack.c.bf16 %v559_v30, %v555_v29  ;;  %v566_v37 = vld [vmem:[%s7430_s12 + $0xa8] sm:$0xff]  ;;  %v565_v46 = vld [vmem:[%s7430_s12 + $0xa0] sm:$0xff]  ;;  %v563_v49 = vld [vmem:[%s7430_s12 + $0x90] sm:$0xff] }
  0x75   : > { %v571_v7 = vld [vmem:[%s7430_s12 + $0xd0] sm:$0xff]  ;;  %v6613_v9 = vld [vmem:[%s10141_s2 + $0x22c] ss:$16 sps:$4 sm:$0xff]   ;;  %v6629_v27 = vld [vmem:[%s10141_s2 + $0x3c8] ss:$16 sps:$4 sm:$0xff]  }
  0x76   : > { %1402 = vmatpush2.bf16.msra.mxu0 %v6534_v38  ;;  %v564_v38 = vld [vmem:[%s7430_s12 + $0x98] sm:$0xff]  ;;  %v575_v8 = vld [vmem:[%s7430_s12 + $0xf0] sm:$0xff] }
  0x77   : > { %1475 = vmatpush2.bf16.msra.mxu1 %v6535_v39  ;;  %1403 = vmatprep.subr.bf16.mxu0 %v6536_v40  ;;  %v568_v39 = vld [vmem:[%s7430_s12 + $0xb8] sm:$0xff] }
  0x78   : > { %1476 = vmatprep.subr.bf16.mxu1 %v6538_v41  ;;  %v6592_v40 = vld [vmem:[%s10141_s2 + $0x8c] ss:$16 sps:$4 sm:$0xff]   ;;  %v7726_v47 = vpack.c.bf16 %v568_v39, %v564_v38  ;;  %v6632_v30 = vld [vmem:[%s10141_s2 + $0x1a8] ss:$16 sps:$4 sm:$0xff]  }
  0x79   : > { %v6595_v41 = vld [vmem:[%s10141_s2 + $0x28c] ss:$16 sps:$4 sm:$0xff]  }
  0x7a   : > { %1404 = vmatpush2.bf16.msra.mxu0 %v6540_v42  ;;  %v6590_v42 = vld [vmem:[%s10141_s2 + $0x88] ss:$16 sps:$4 sm:$0xff]   ;;  %v6628_v25 = vld [vmem:[%s10141_s2 + $0x1cc] ss:$16 sps:$4 sm:$0xff]  }
  0x7b   : > { %1477 = vmatpush2.bf16.msra.mxu1 %v6541_v43  ;;  %1405 = vmatprep.subr.bf16.mxu0 %v6542_v44  ;;  %v6593_v43 = vld [vmem:[%s10141_s2 + $0x288] ss:$16 sps:$4 sm:$0xff]   ;;  %v7722_v44 = vpack.c.bf16 %v566_v37, %v562_v34  ;;  %v6637_v29 = vld [vmem:[%s10141_s2 + $0x3ac] ss:$16 sps:$4 sm:$0xff]  }
  0x7c   : > { %1478 = vmatprep.subr.bf16.mxu1 %v6544_v45  ;;  %v561_v45 = vld [vmem:[%s7430_s12 + $0x80] sm:$0xff]  ;;  %v6638_v34 = vld [vmem:[%s10141_s2 + $0x188] ss:$16 sps:$4 sm:$0xff]   ;;  %v6646_v38 = vld [vmem:[%s10141_s2 + $0x16c] ss:$16 sps:$4 sm:$0xff]  }
  0x7d   : > { %v6641_v37 = vld [vmem:[%s10141_s2 + $0x388] ss:$16 sps:$4 sm:$0xff]   ;;  %v6649_v39 = vld [vmem:[%s10141_s2 + $0x36c] ss:$16 sps:$4 sm:$0xff]  }
  0x7e   : > { %1406 = vmatpush2.bf16.msra.mxu0 %v6546_v50  ;;  %v567_v50 = vld [vmem:[%s7430_s12 + $0xb0] sm:$0xff] }
  0x7f   : > { %1479 = vmatpush2.bf16.msra.mxu1 %v6547_v51  ;;  %1407 = vmatprep.subr.bf16.mxu0 %v6548_v52  ;;  %v6601_v51 = vld [vmem:[%s10141_s2 + $0x26c] ss:$16 sps:$4 sm:$0xff]   ;;  %v6596_v52 = vld [vmem:[%s10141_s2 + $0x68] ss:$16 sps:$4 sm:$0xff]  }
  0x80   : > { %1480 = vmatprep.subr.bf16.mxu1 %v6550_v55  ;;  %v6599_v55 = vld [vmem:[%s10141_s2 + $0x268] ss:$16 sps:$4 sm:$0xff]  }
  0x82   : > { %1408 = vmatpush2.bf16.msra.mxu0 %v6552_v56  ;;  %v570_v56 = vld [vmem:[%s7430_s12 + $0xc8] sm:$0xff] }
  0x83   : > { %1481 = vmatpush2.bf16.msra.mxu1 %v6553_v57  ;;  %1409 = vmatprep.subr.bf16.mxu0 %v6554_v58  ;;  %v574_v57 = vld [vmem:[%s7430_s12 + $0xe8] sm:$0xff]  ;;  %v7748_v58 = vpack.c.bf16 %v565_v46, %v561_v45 }
  0x84   : > { %1482 = vmatprep.subr.bf16.mxu1 %v6556_v59  ;;  %v7750_v59 = vpack.c.bf16 %v567_v50, %v563_v49  ;;  %v6650_v45 = vld [vmem:[%s10141_s2 + $0x148] ss:$16 sps:$4 sm:$0xff]   ;;  %v6661_v49 = vld [vmem:[%s10141_s2 + $0x32c] ss:$16 sps:$4 sm:$0xff]  }
  0x85   : > { %v6653_v46 = vld [vmem:[%s10141_s2 + $0x348] ss:$16 sps:$4 sm:$0xff]  }
  0x86   : > { %1410 = vmatpush2.bf16.msra.mxu0 %v6558_v60  ;;  %v572_v60 = vld [vmem:[%s7430_s12 + $0xd8] sm:$0xff] }
  0x87   : > { %1483 = vmatpush2.bf16.msra.mxu1 %v6559_v61  ;;  %1411 = vmatprep.subr.bf16.mxu0 %v6560_v62  ;;  %v576_v61 = vld [vmem:[%s7430_s12 + $0xf8] sm:$0xff] }
  0x88   : > { %1484 = vmatprep.subr.bf16.mxu1 %v6562_v63  ;;  %v6604_v62 = vld [vmem:[%s10141_s2 + $0x4c] ss:$16 sps:$4 sm:$0xff]   ;;  %v6656_v50 = vld [vmem:[%s10141_s2 + $0x128] ss:$16 sps:$4 sm:$0xff]  }
  0x89   : > { %v6607_v63 = vld [vmem:[%s10141_s2 + $0x24c] ss:$16 sps:$4 sm:$0xff]  }
  0x8a   : > { %1412 = vmatpush2.bf16.msra.mxu0 %v6564_v0  ;;  %v6602_v0 = vld [vmem:[%s10141_s2 + $0x48] ss:$16 sps:$4 sm:$0xff]  }
  0x8b   : > { %1485 = vmatpush2.bf16.msra.mxu1 %v6565_v1  ;;  %1413 = vmatprep.subr.bf16.mxu0 %v6566_v2  ;;  %v6605_v1 = vld [vmem:[%s10141_s2 + $0x248] ss:$16 sps:$4 sm:$0xff]   ;;  %v7766_v2 = vpack.c.bf16 %v574_v57, %v570_v56  ;;  %v1769_v56 = vld [vmem:[#allocation8 + $0x1c0] sm:$0xff] }
  0x8c   : > { %1486 = vmatprep.subr.bf16.mxu1 %v6568_v3  ;;  %v569_v3 = vld [vmem:[%s7430_s12 + $0xc0] sm:$0xff] }
  0x8d   : > { %v1773_v57 = vld [vmem:[#allocation8 + $0x1e0] sm:$0xff] }
  0x8e   : > { %1414 = vmatpush2.bf16.msra.mxu0 %v6570_v4  ;;  %v573_v4 = vld [vmem:[%s7430_s12 + $0xe0] sm:$0xff]  ;;  %s8568_s12 = smin.u32 %s7323_s21, %s516_s22 }
  0x8f   : > { %1487 = vmatpush2.bf16.msra.mxu1 %v6571_v5  ;;  %1529 = vmatprep.subr.bf16.mxu0 %v6574_v10  ;;  %v7770_v5 = vpack.c.bf16 %v576_v61, %v572_v60  ;;  %v7784_v10 = vpack.c.bf16 %v573_v4, %v569_v3  ;;  %v1770_v60 = vld [vmem:[#allocation8 + $0x1c8] sm:$0xff]  ;;  %s518_s29 = sand.u32 1, %s8568_s12  }
  0x90   : > { %1602 = vmatprep.subr.bf16.mxu1 %v6577_v11  ;;  %v6608_v11 = vld [vmem:[%s10141_s2 + $0x28] ss:$16 sps:$4 sm:$0xff]   ;;  %s519_s27 = ssub.s32 0, %s518_s29 }
  0x91   : > { %1416 = vmatmul.mubr.bf16.vlgmr.msra.gmra.mxu0 %v7659_v15  ;;  %v1774_v61 = vld [vmem:[#allocation8 + $0x1e8] sm:$0xff]  ;;  %s10396_s27 = smov (!%p515_p11, %s519_s27), %s518_s29 }
  0x92   : > { %1489 = vmatmul.mubr.bf16.vlgmr.msra.gmra.mxu1 %v7661_v16  ;;  %1530 = vmatpush1.bf16.msra.mxu0 %v6572_v12  ;;  %v6611_v12 = vld [vmem:[%s10141_s2 + $0x228] ss:$16 sps:$4 sm:$0xff]   ;;  %p5837_p7 = scmp.lt.s32.totalorder %s10396_s27, 0  ;;  %s525_s23 = sadd.s32 2, %s10396_s27 }
  0x93   : > { %1603 = vmatpush1.bf16.msra.mxu1 %v6575_v13  ;;  %1531 = vmatprep.subr.bf16.mxu0 %v6580_v20  ;;  %v7792_v13 = vpack.c.bf16 %v575_v8, %v571_v7  ;;  %v6622_v20 = vld [vmem:[%s10141_s2 + $0x1ec] ss:$16 sps:$4 sm:$0xff]   ;;  %v6027_v7 = vcombine.high %v1770_v60, %v1774_v61  ;;  %v6024_v8 = vcombine.low %v1769_v56, %v1773_v57 }
  0x94   : > { %1604 = vmatprep.subr.bf16.mxu1 %v6583_v21  ;;  %1425 = vmatprep.mubr.bf16.mxu0 %v7678_v24  ;;  %v6625_v21 = vld [vmem:[%s10141_s2 + $0x3ec] ss:$16 sps:$4 sm:$0xff]   ;;  %s10398_s23 = smov (!%p5837_p7, %s525_s23), %s10396_s27  ;;  %s10385_s27 = sld [smem:[#allocation60_spill]] }
  0x95   : > { %1498 = vmatprep.mubr.bf16.mxu1 %v7681_v26  ;;  %v1762_v3 = vld [vmem:[#allocation8 + $0x188] sm:$0xff]  ;;  %p527_p9 = scmp.lt.s32.totalorder %s10398_s23, 1 }
  0x96   : > { %1532 = vmatpush1.bf16.msra.mxu0 %v6578_v22  ;;  %v6620_v22 = vld [vmem:[%s10141_s2 + $0x1e8] ss:$16 sps:$4 sm:$0xff]  }
  0x97   : > { %1605 = vmatpush1.bf16.msra.mxu1 %v6581_v23  ;;  %1533 = vmatprep.subr.bf16.mxu0 %v6586_v28  ;;  %v6623_v23 = vld [vmem:[%s10141_s2 + $0x3e8] ss:$16 sps:$4 sm:$0xff]   ;;  %v6634_v28 = vld [vmem:[%s10141_s2 + $0x1ac] ss:$16 sps:$4 sm:$0xff]   ;;  %s10400_s23 = smov (!%p527_p9, %s10398_s23), 1 }
  0x98   : > { %1606 = vmatprep.subr.bf16.mxu1 %v6589_v31  ;;  %v6635_v31 = vld [vmem:[%s10141_s2 + $0x3a8] ss:$16 sps:$4 sm:$0xff]   ;;  %s6235_s28 = sshll.u32 %s10400_s23, 7 }
  0x99   : > { %1426 = vmatmul.mubr.bf16.gmra.mxu0 %v7703_v35  ;;  %v1766_v4 = vld [vmem:[#allocation8 + $0x1a8] sm:$0xff]  ;;  %s8669_s24 = scalar_lea.vmem %s10147_s8, %s6235_s28 }
  0x9a   : > { %1499 = vmatmul.mubr.bf16.gmra.mxu1 %v7705_v36  ;;  %1534 = vmatpush1.bf16.msra.mxu0 %v6584_v32  ;;  %v6640_v32 = vld [vmem:[%s10141_s2 + $0x18c] ss:$16 sps:$4 sm:$0xff]  }
  0x9b   : > { %1607 = vmatpush1.bf16.msra.mxu1 %v6587_v33  ;;  %1535 = vmatprep.subr.bf16.mxu0 %v6592_v40  ;;  %v6643_v33 = vld [vmem:[%s10141_s2 + $0x38c] ss:$16 sps:$4 sm:$0xff]   ;;  %v6644_v40 = vld [vmem:[%s10141_s2 + $0x168] ss:$16 sps:$4 sm:$0xff]  }
  0x9c   : > { %1608 = vmatprep.subr.bf16.mxu1 %v6595_v41  ;;  %1435 = vmatprep.mubr.bf16.mxu0 %v7722_v44  ;;  %v6647_v41 = vld [vmem:[%s10141_s2 + $0x368] ss:$16 sps:$4 sm:$0xff]  }
  0x9d   : > { %1508 = vmatprep.mubr.bf16.mxu1 %v7726_v47 }
  0x9e   : > { %1536 = vmatpush1.bf16.msra.mxu0 %v6590_v42  ;;  %v6652_v42 = vld [vmem:[%s10141_s2 + $0x14c] ss:$16 sps:$4 sm:$0xff]  }
  0x9f   : > { %1609 = vmatpush1.bf16.msra.mxu1 %v6593_v43  ;;  %1537 = vmatprep.subr.bf16.mxu0 %v6598_v48  ;;  %v6655_v43 = vld [vmem:[%s10141_s2 + $0x34c] ss:$16 sps:$4 sm:$0xff]  }
  0xa0   : > { %1610 = vmatprep.subr.bf16.mxu1 %v6601_v51  ;;  %v6658_v48 = vld [vmem:[%s10141_s2 + $0x12c] ss:$16 sps:$4 sm:$0xff]   ;;  %v6659_v51 = vld [vmem:[%s10141_s2 + $0x328] ss:$16 sps:$4 sm:$0xff]  }
  0xa1   : > { %1436 = vmatmul.mubr.bf16.gmra.mxu0 %v7748_v58 }
  0xa2   : > { %1509 = vmatmul.mubr.bf16.gmra.mxu1 %v7750_v59  ;;  %1538 = vmatpush1.bf16.msra.mxu0 %v6596_v52  ;;  %v6664_v52 = vld [vmem:[%s10141_s2 + $0x10c] ss:$16 sps:$4 sm:$0xff]  }
  0xa3   : > { %1611 = vmatpush1.bf16.msra.mxu1 %v6599_v55  ;;  %1539 = vmatprep.subr.bf16.mxu0 %v6604_v62  ;;  %v6667_v55 = vld [vmem:[%s10141_s2 + $0x30c] ss:$16 sps:$4 sm:$0xff]   ;;  %v6662_v62 = vld [vmem:[%s10141_s2 + $0x108] ss:$16 sps:$4 sm:$0xff]  }
  0xa4   : > { %1612 = vmatprep.subr.bf16.mxu1 %v6607_v63  ;;  %1445 = vmatprep.mubr.bf16.mxu0 %v7766_v2  ;;  %v6665_v63 = vld [vmem:[%s10141_s2 + $0x308] ss:$16 sps:$4 sm:$0xff]  }
  0xa5   : > { %1518 = vmatprep.mubr.bf16.mxu1 %v7770_v5 }
  0xa6   : > { %1540 = vmatpush1.bf16.msra.mxu0 %v6602_v0  ;;  %v1761_v0 = vld [vmem:[#allocation8 + $0x180] sm:$0xff] }
  0xa7   : > { %1613 = vmatpush1.bf16.msra.mxu1 %v6605_v1  ;;  %1541 = vmatprep.subr.bf16.mxu0 %v6610_v6  ;;  %v1765_v1 = vld [vmem:[#allocation8 + $0x1a0] sm:$0xff]  ;;  %v6025_v6 = vcombine.high %v1769_v56, %v1773_v57 }
  0xa8   : > { %1614 = vmatprep.subr.bf16.mxu1 %v6613_v9  ;;  %v6026_v9 = vcombine.low %v1770_v60, %v1774_v61 }
  0xa9   : > { %1446 = vmatmul.mubr.bf16.gmra.mxu0 %v7784_v10 }
  0xaa   : > { %1519 = vmatmul.mubr.bf16.gmra.mxu1 %v7792_v13  ;;  %1542 = vmatpush1.bf16.msra.mxu0 %v6608_v11  ;;  %v1753_v11 = vld [vmem:[#allocation8 + $0x140] sm:$0xff] }
  0xab   : > { %1615 = vmatpush1.bf16.msra.mxu1 %v6611_v12  ;;  %1543 = vmatprep.subr.bf16.mxu0 %v6616_v14  ;;  %v1757_v12 = vld [vmem:[#allocation8 + $0x160] sm:$0xff]  ;;  %v1754_v14 = vld [vmem:[#allocation8 + $0x148] sm:$0xff] }
  0xac   : > { %1616 = vmatprep.subr.bf16.mxu1 %v6619_v17  ;;  %1561 = vmatprep.mubr.bf16.mxu0 %v7591_v53  ;;  %v6631_v53 = vld [vmem:[%s10141_s2 + $0x3cc] ss:$16 sps:$4 sm:$0xff]  }
  0xad   : > { %1634 = vmatprep.mubr.bf16.mxu1 %v7593_v54  ;;  %v6626_v54 = vld [vmem:[%s10141_s2 + $0x1c8] ss:$16 sps:$4 sm:$0xff]  }
  0xae   : > { %1544 = vmatpush1.bf16.msra.mxu0 %v6614_v18  ;;  %v1758_v17 = vld [vmem:[#allocation8 + $0x168] sm:$0xff]  ;;  %v6017_v18 = vcombine.high %v1761_v0, %v1765_v1 }
  0xaf   : > { %1617 = vmatpush1.bf16.msra.mxu1 %v6617_v19  ;;  %1545 = vmatprep.subr.bf16.mxu0 %v6622_v20  ;;  %v6019_v19 = vcombine.high %v1762_v3, %v1766_v4  ;;  %v6016_v20 = vcombine.low %v1761_v0, %v1765_v1  ;;  %v10162_v0 = vmov 0  }
  0xb0   : > { %1618 = vmatprep.subr.bf16.mxu1 %v6625_v21  ;;  %v6018_v21 = vcombine.low %v1762_v3, %v1766_v4  ;;  %v723_v4 = vlaneseq }
  0xb2   : > { %1546 = vmatpush2.bf16.msra.mxu0 %v6620_v22  ;;  %v1745_v22 = vld [vmem:[#allocation8 + $0x100] sm:$0xff] }
  0xb3   : > { %1619 = vmatpush2.bf16.msra.mxu1 %v6623_v23  ;;  %1547 = vmatprep.subr.bf16.mxu0 %v6628_v25  ;;  %v1749_v23 = vld [vmem:[#allocation8 + $0x120] sm:$0xff]  ;;  %v1746_v25 = vld [vmem:[#allocation8 + $0x108] sm:$0xff] }
  0xb4   : > { %1620 = vmatprep.subr.bf16.mxu1 %v6631_v53  ;;  %v1750_v53 = vld [vmem:[#allocation8 + $0x128] sm:$0xff] }
  0xb6   : > { %1548 = vmatpush2.bf16.msra.mxu0 %v6626_v54  ;;  %v6009_v54 = vcombine.high %v1753_v11, %v1757_v12 }
  0xb7   : > { %1621 = vmatpush2.bf16.msra.mxu1 %v6629_v27  ;;  %1549 = vmatprep.subr.bf16.mxu0 %v6634_v28  ;;  %v6011_v27 = vcombine.high %v1754_v14, %v1758_v17  ;;  %v1737_v28 = vld [vmem:[#allocation8 + $0xc0] sm:$0xff] }
  0xb8   : > { %1622 = vmatprep.subr.bf16.mxu1 %v6637_v29  ;;  %v1741_v29 = vld [vmem:[#allocation8 + $0xe0] sm:$0xff] }
  0xba   : > { %1550 = vmatpush2.bf16.msra.mxu0 %v6632_v30  ;;  %v1738_v30 = vld [vmem:[#allocation8 + $0xc8] sm:$0xff] }
  0xbb   : > { %1623 = vmatpush2.bf16.msra.mxu1 %v6635_v31  ;;  %1551 = vmatprep.subr.bf16.mxu0 %v6640_v32  ;;  %v1742_v31 = vld [vmem:[#allocation8 + $0xe8] sm:$0xff]  ;;  %v6001_v32 = vcombine.high %v1745_v22, %v1749_v23 }
  0xbc   : > { %1624 = vmatprep.subr.bf16.mxu1 %v6643_v33  ;;  %v6003_v33 = vcombine.high %v1746_v25, %v1750_v53 }
  0xbe   : > { %1552 = vmatpush2.bf16.msra.mxu0 %v6638_v34  ;;  %v1729_v34 = vld [vmem:[#allocation8 + $0x80] sm:$0xff] }
  0xbf   : > { %1625 = vmatpush2.bf16.msra.mxu1 %v6641_v37  ;;  %1553 = vmatprep.subr.bf16.mxu0 %v6646_v38  ;;  %v1733_v37 = vld [vmem:[#allocation8 + $0xa0] sm:$0xff]  ;;  %v1730_v38 = vld [vmem:[#allocation8 + $0x88] sm:$0xff] }
  0xc0   : > { %1626 = vmatprep.subr.bf16.mxu1 %v6649_v39  ;;  %v1734_v39 = vld [vmem:[#allocation8 + $0xa8] sm:$0xff] }
  0xc2   : > { %1554 = vmatpush2.bf16.msra.mxu0 %v6644_v40  ;;  %v5993_v40 = vcombine.high %v1737_v28, %v1741_v29 }
  0xc3   : > { %1627 = vmatpush2.bf16.msra.mxu1 %v6647_v41  ;;  %1555 = vmatprep.subr.bf16.mxu0 %v6652_v42  ;;  %v5995_v41 = vcombine.high %v1738_v30, %v1742_v31  ;;  %v1721_v42 = vld [vmem:[#allocation8 + $0x40] sm:$0xff] }
  0xc4   : > { %1628 = vmatprep.subr.bf16.mxu1 %v6655_v43  ;;  %v1725_v43 = vld [vmem:[#allocation8 + $0x60] sm:$0xff] }
  0xc5   : > { %v5977_v56 = vcombine.high %v1721_v42, %v1725_v43 }
  0xc6   : > { %1556 = vmatpush2.bf16.msra.mxu0 %v6650_v45  ;;  %v1722_v45 = vld [vmem:[#allocation8 + $0x48] sm:$0xff] }
  0xc7   : > { %1629 = vmatpush2.bf16.msra.mxu1 %v6653_v46  ;;  %1557 = vmatprep.subr.bf16.mxu0 %v6658_v48  ;;  %v1726_v46 = vld [vmem:[#allocation8 + $0x68] sm:$0xff]  ;;  %v5985_v48 = vcombine.high %v1729_v34, %v1733_v37 }
  0xc8   : > { %1630 = vmatprep.subr.bf16.mxu1 %v6661_v49  ;;  %v5987_v49 = vcombine.high %v1730_v38, %v1734_v39  ;;  %v5979_v57 = vcombine.high %v1722_v45, %v1726_v46 }
  0xca   : > { %1558 = vmatpush2.bf16.msra.mxu0 %v6656_v50  ;;  %v1713_v50 = vld [vmem:[#allocation8] sm:$0xff] }
  0xcb   : > { %1631 = vmatpush2.bf16.msra.mxu1 %v6659_v51  ;;  %1559 = vmatprep.subr.bf16.mxu0 %v6664_v52  ;;  %v1717_v51 = vld [vmem:[#allocation8 + $0x20] sm:$0xff]  ;;  %v1714_v52 = vld [vmem:[#allocation8 + $0x8] sm:$0xff] }
  0xcc   : > { %1632 = vmatprep.subr.bf16.mxu1 %v6667_v55  ;;  %v1718_v55 = vld [vmem:[#allocation8 + $0x28] sm:$0xff]  ;;  %v5969_v60 = vcombine.high %v1713_v50, %v1717_v51 }
  0xcd   : > { %v5971_v61 = vcombine.high %v1714_v52, %v1718_v55 }
  0xce   : > { %1560 = vmatpush2.bf16.msra.mxu0 %v6662_v62  ;;  %v1707_v62 = vld [vmem:[%s514_s30] sm:$0xff] }
  0xcf   : > { %1633 = vmatpush2.bf16.msra.mxu1 %v6665_v63  ;;  %2139 = vmatprep.subr.bf16.mxu0 %v6025_v6  ;;  %v1708_v63 = vld [vmem:[%s514_s30 + $0x8] sm:$0xff]  ;;  %v7939_v6 = vshrl.u32 %v723_v4, 7 }
  0xd0   : > { %2192 = vmatprep.subr.bf16.mxu1 %v6027_v7  ;;  %v7927_v1 = vpack.c.bf16 %v1708_v63, %v1707_v62 }
  0xd1   : > { %1562 = vmatmul.mubr.bf16.vlgmr.msra.gmra.mxu0 %v7659_v15  ;;  %v6008_v15 = vcombine.low %v1753_v11, %v1757_v12  ;;  %10257 = vst [vmem:[#allocation19_spill] sm:$0xff] %v7939_v6  ;;  %v7942_v7 = vsub.s32 0, %v7939_v6 }
  0xd2   : > { %1635 = vmatmul.mubr.bf16.vlgmr.msra.gmra.mxu1 %v7661_v16  ;;  %2140 = vmatpush1.bf16.msra.mxu0 %v6024_v8  ;;  %v6010_v16 = vcombine.low %v1754_v14, %v1758_v17  ;;  %10255 = vst [vmem:[#allocation17_spill] sm:$0xff] %v7927_v1  ;;  %v7947_v8 = vld [vmem:[%s10142_s3] sm:$0xf] }
  0xd3   : > { %2193 = vmatpush1.bf16.msra.mxu1 %v6026_v9  ;;  %2141 = vmatprep.subr.bf16.mxu0 %v6017_v18  ;;  %10258 = vst [vmem:[#allocation20_spill] sm:$0xff] %v7942_v7  ;;  %v7950_v9 = vsub.s32 1, %v7939_v6  ;;  %v7954_v11 = vrot.slane %v7947_v8, %v7942_v7 }
  0xd4   : > { %2194 = vmatprep.subr.bf16.mxu1 %v6019_v19  ;;  %1571 = vmatprep.mubr.bf16.mxu0 %v7678_v24  ;;  %v6000_v24 = vcombine.low %v1745_v22, %v1749_v23 }
  0xd5   : > { %1644 = vmatprep.mubr.bf16.mxu1 %v7681_v26  ;;  %v6002_v26 = vcombine.low %v1746_v25, %v1750_v53  ;;  %10259 = vst [vmem:[#allocation21_spill] sm:$0xff] %v7950_v9  ;;  %v7958_v12 = vrot.slane %v7947_v8, %v7950_v9 }
  0xd6   : > { %2142 = vmatpush1.bf16.msra.mxu0 %v6016_v20 }
  0xd7   : > { %2195 = vmatpush1.bf16.msra.mxu1 %v6018_v21  ;;  %2143 = vmatprep.subr.bf16.mxu0 %v6009_v54 }
  0xd8   : > { %2196 = vmatprep.subr.bf16.mxu1 %v6011_v27 }
  0xd9   : > { %1572 = vmatmul.mubr.bf16.gmra.mxu0 %v7703_v35  ;;  %v5992_v35 = vcombine.low %v1737_v28, %v1741_v29 }
  0xda   : > { %1645 = vmatmul.mubr.bf16.gmra.mxu1 %v7705_v36  ;;  %2144 = vmatpush1.bf16.msra.mxu0 %v6008_v15  ;;  %v5994_v36 = vcombine.low %v1738_v30, %v1742_v31 }
  0xdb   : > { %2197 = vmatpush1.bf16.msra.mxu1 %v6010_v16  ;;  %2145 = vmatprep.subr.bf16.mxu0 %v6001_v32 }
  0xdc   : > { %2198 = vmatprep.subr.bf16.mxu1 %v6003_v33  ;;  %1581 = vmatprep.mubr.bf16.mxu0 %v7722_v44  ;;  %v5984_v44 = vcombine.low %v1729_v34, %v1733_v37 }
  0xdd   : > { %1654 = vmatprep.mubr.bf16.mxu1 %v7726_v47  ;;  %v5986_v47 = vcombine.low %v1730_v38, %v1734_v39 }
  0xde   : > { %2146 = vmatpush1.bf16.msra.mxu0 %v6000_v24 }
  0xdf   : > { %2199 = vmatpush1.bf16.msra.mxu1 %v6002_v26  ;;  %2147 = vmatprep.subr.bf16.mxu0 %v5993_v40 }
  0xe0   : > { %2200 = vmatprep.subr.bf16.mxu1 %v5995_v41 }
  0xe1   : > { %1582 = vmatmul.mubr.bf16.gmra.mxu0 %v7748_v58  ;;  %v5976_v58 = vcombine.low %v1721_v42, %v1725_v43 }
  0xe2   : > { %1655 = vmatmul.mubr.bf16.gmra.mxu1 %v7750_v59  ;;  %2148 = vmatpush1.bf16.msra.mxu0 %v5992_v35  ;;  %v5978_v59 = vcombine.low %v1722_v45, %v1726_v46 }
  0xe3   : > { %2201 = vmatpush1.bf16.msra.mxu1 %v5994_v36  ;;  %2149 = vmatprep.subr.bf16.mxu0 %v5985_v48 }
  0xe4   : > { %2202 = vmatprep.subr.bf16.mxu1 %v5987_v49  ;;  %1591 = vmatprep.mubr.bf16.mxu0 %v7766_v2  ;;  %v5968_v2 = vcombine.low %v1713_v50, %v1717_v51 }
  0xe5   : > { %1664 = vmatprep.mubr.bf16.mxu1 %v7770_v5  ;;  %v5970_v5 = vcombine.low %v1714_v52, %v1718_v55 }
  0xe6   : > { %2150 = vmatpush1.bf16.msra.mxu0 %v5984_v44 }
  0xe7   : > { %2203 = vmatpush1.bf16.msra.mxu1 %v5986_v47  ;;  %2151 = vmatprep.subr.bf16.mxu0 %v5977_v56 }
  0xe8   : > { %2204 = vmatprep.subr.bf16.mxu1 %v5979_v57 }
  0xe9   : > { %1592 = vmatmul.mubr.bf16.gmra.mxu0 %v7784_v10  ;;  %v1709_v10 = vld [vmem:[%s514_s30 + $0x10] sm:$0xff] }
  0xea   : > { %1665 = vmatmul.mubr.bf16.gmra.mxu1 %v7792_v13  ;;  %2152 = vmatpush1.bf16.msra.mxu0 %v5976_v58  ;;  %v1710_v13 = vld [vmem:[%s514_s30 + $0x18] sm:$0xff]  ;;  %s10018_s30 = scalar_lea.vmem [#allocation10], %s5830_s4  ;;  %s6268_s4 = sshll.u32 %s7323_s21, 12 }
  0xeb   : > { %2205 = vmatpush1.bf16.msra.mxu1 %v5978_v59  ;;  %2153 = vmatprep.subr.bf16.mxu0 %v5969_v60  ;;  %v7933_v3 = vpack.c.bf16 %v1710_v13, %v1709_v10  ;;  %s5709_s22 = sshll.u32 %s10018_s30, 4  ;;  %s10092_s23 = scalar_lea.hbm %s10385_s27, %s6268_s4  ;;  %s10094_s22 = int_to_ptr.vmem [resolvable:$true] %s5709_s22 }
  0xec   : > { %2206 = vmatprep.subr.bf16.mxu1 %v5971_v61  ;;  %2171 = vmatprep.mubr.bf16.mxu0 %v10162_v0  ;;  %s5696_s21 = scalar_lea.sflag [#allocation7], %s7424_s15  ;;  %s7163_s28 = scalar_lea.vmem %s10094_s22, 4096 }
  0xed   : > { %2224 = vmatprep.mubr.bf16.mxu1 %v10162_v0  ;;  %10256 = vst [vmem:[#allocation18_spill] sm:$0xff] %v7933_v3  ;;  %p7164_p10 = scmp.ne.s32.totalorder %s10094_s22, %s7163_s28  ;;  %p7170_p5 = scmp.lt.s32.totalorder %s10094_s22, %s7168_s14 }
  0xee   : > { %2154 = vmatpush1.bf16.msra.mxu0 %v5968_v2 }
  0xef   : > { %2207 = vmatpush1.bf16.msra.mxu1 %v5970_v5  ;;  %p7165_p13 = pnand %p7164_p10, %p10386_p12 }
  0xf1   : > { %2172 = vmatmul.mubr.bf16.vlgmr.msra.gmra.mxu0 %v7927_v1  ;;  %p7166_p0 = pneg %p7165_p13 }
  0xf2   : > { %2225 = vmatmul.mubr.bf16.vlgmr.msra.gmra.mxu1 %v7927_v1  ;;  %2181 = vmatprep.mubr.bf16.mxu0 %v10162_v0 }
  0xf3   : > { %2234 = vmatprep.mubr.bf16.mxu1 %v10162_v0 }
  0xf9   : > { %2182 = vmatmul.mubr.bf16.gmra.mxu0 %v7933_v3 }
  0xfa   : > { %2235 = vmatmul.mubr.bf16.gmra.mxu1 %v7933_v3  ;;  %2277 = vmatprep.mubr.bf16.mxu0 %v10162_v0 }
  0xfb   : > { %2330 = vmatprep.mubr.bf16.mxu1 %v10162_v0 }
 0x151   : > { %v1417_v14 = vpop.f32.mrf.mxu0 }
 0x152   : > { %v1490_v17 = vpop.f32.mrf.mxu1  ;;  %v1418_v18 = vadd.f32 %v1417_v14, %v7954_v11 }
 0x153   : > { %v1419_v19 = vpop.f32.mrf.mxu0 }
 0x154   : > { %v1492_v20 = vpop.f32.mrf.mxu1  ;;  %v7961_v21 = vadd.f32 %v1490_v17, %v1418_v18  ;;  %v1420_v22 = vadd.f32 %v1419_v19, %v7958_v12 }
 0x155   : > { %v1421_v23 = vpop.f32.mrf.mxu0 }
 0x156   : > { %v1494_v25 = vpop.f32.mrf.mxu1  ;;  %v1422_v53 = vadd.f32 %v1421_v23, %v7954_v11  ;;  %2427 = vadd.xlane.f32.xlu0 %v7961_v21  ;;  %v7966_v15 = vadd.f32 %v1492_v20, %v1420_v22 }
 0x157   : > { %v1423_v54 = vpop.f32.mrf.mxu0 }
 0x158   : > { %v1496_v27 = vpop.f32.mrf.mxu1  ;;  %v7968_v16 = vadd.f32 %v1494_v25, %v1422_v53  ;;  %v1424_v28 = vadd.f32 %v1423_v54, %v7958_v12  ;;  %v8028_v54 = vsub.s32 3, %v7939_v6 }
 0x159   : > { %v1427_v29 = vpop.f32.mrf.mxu0 }
 0x15a   : > { %v1500_v30 = vpop.f32.mrf.mxu1  ;;  %v1428_v31 = vadd.f32 %v1427_v29, %v7954_v11  ;;  %2429 = vadd.xlane.f32.xlu1 %v7968_v16  ;;  %2959 = vadd.xlane.f32.xlu0 %v7966_v15  ;;  %v7974_v24 = vadd.f32 %v1496_v27, %v1424_v28  ;;  %10261 = vst [vmem:[#allocation23_spill] sm:$0xff] %v8028_v54 }
 0x15b   : > { %v1429_v32 = vpop.f32.mrf.mxu0 }
 0x15c   : > { %v1502_v33 = vpop.f32.mrf.mxu1  ;;  %v1430_v26 = vadd.f32 %v1429_v32, %v7958_v12  ;;  %v7977_v34 = vadd.f32 %v1500_v30, %v1428_v31 }
 0x15d   : > { %v1431_v37 = vpop.f32.mrf.mxu0 }
 0x15e   : > { %v1504_v38 = vpop.f32.mrf.mxu1  ;;  %v1432_v39 = vadd.f32 %v1431_v37, %v7954_v11  ;;  %v7980_v40 = vadd.f32 %v1502_v33, %v1430_v26  ;;  %2961 = vadd.xlane.f32.xlu1 %v7974_v24  ;;  %2431 = vadd.xlane.f32.xlu0 %v7977_v34 }
 0x15f   : > { %v1433_v41 = vpop.f32.mrf.mxu0 }
 0x160   : > { %v1506_v35 = vpop.f32.mrf.mxu1  ;;  %v1434_v36 = vadd.f32 %v1433_v41, %v7958_v12  ;;  %v7985_v42 = vadd.f32 %v1504_v38, %v1432_v39 }
 0x161   : > { %v1437_v43 = vpop.f32.mrf.mxu0 }
 0x162   : > { %v1510_v45 = vpop.f32.mrf.mxu1  ;;  %v1438_v46 = vadd.f32 %v1437_v43, %v7954_v11  ;;  %v7988_v48 = vadd.f32 %v1506_v35, %v1434_v36  ;;  %2433 = vadd.xlane.f32.xlu1 %v7985_v42  ;;  %2963 = vadd.xlane.f32.xlu0 %v7980_v40 }
 0x163   : > { %v1439_v49 = vpop.f32.mrf.mxu0 }
 0x164   : > { %v1512_v44 = vpop.f32.mrf.mxu1  ;;  %v1440_v47 = vadd.f32 %v1439_v49, %v7958_v12  ;;  %v7993_v50 = vadd.f32 %v1510_v45, %v1438_v46 }
 0x165   : > { %v1441_v51 = vpop.f32.mrf.mxu0 }
 0x166   : > { %v1514_v52 = vpop.f32.mrf.mxu1  ;;  %v1442_v55 = vadd.f32 %v1441_v51, %v7954_v11  ;;  %v7996_v56 = vadd.f32 %v1512_v44, %v1440_v47  ;;  %2965 = vadd.xlane.f32.xlu1 %v7988_v48  ;;  %2435 = vadd.xlane.f32.xlu0 %v7993_v50 }
 0x167   : > { %v1443_v57 = vpop.f32.mrf.mxu0 }
 0x168   : > { %v1516_v58 = vpop.f32.mrf.mxu1  ;;  %v1444_v59 = vadd.f32 %v1443_v57, %v7958_v12  ;;  %v8001_v60 = vadd.f32 %v1514_v52, %v1442_v55 }
 0x169   : > { %v1447_v61 = vpop.f32.mrf.mxu0 }
 0x16a   : > { %v1520_v2 = vpop.f32.mrf.mxu1  ;;  %v1448_v5 = vadd.f32 %v1447_v61, %v7954_v11  ;;  %v8004_v62 = vadd.f32 %v1516_v58, %v1444_v59  ;;  %2437 = vadd.xlane.f32.xlu1 %v8001_v60  ;;  %2967 = vadd.xlane.f32.xlu0 %v7996_v56 }
 0x16b   : > { %v1449_v63 = vpop.f32.mrf.mxu0 }
 0x16c   : > { %v1522_v10 = vpop.f32.mrf.mxu1  ;;  %v1450_v13 = vadd.f32 %v1449_v63, %v7958_v12  ;;  %v8009_v4 = vadd.f32 %v1520_v2, %v1448_v5 }
 0x16d   : > { %v1451_v14 = vpop.f32.mrf.mxu0 }
 0x16e   : > { %v1524_v17 = vpop.f32.mrf.mxu1  ;;  %v1452_v18 = vadd.f32 %v1451_v14, %v7954_v11  ;;  %v8012_v19 = vadd.f32 %v1522_v10, %v1450_v13  ;;  %2969 = vadd.xlane.f32.xlu1 %v8004_v62  ;;  %2439 = vadd.xlane.f32.xlu0 %v8009_v4  ;;  %v8025_v11 = vsub.s32 2, %v7939_v6 }
 0x16f   : > { %v1453_v20 = vpop.f32.mrf.mxu0 }
 0x170   : > { %v1526_v22 = vpop.f32.mrf.mxu1  ;;  %v8016_v23 = vadd.f32 %v1524_v17, %v1452_v18  ;;  %v1454_v25 = vadd.f32 %v1453_v20, %v7958_v12  ;;  %10260 = vst [vmem:[#allocation22_spill] sm:$0xff] %v8025_v11  ;;  %v8032_v27 = vrot.slane %v7947_v8, %v8025_v11  ;;  %v8036_v12 = vrot.slane %v7947_v8, %v8028_v54 }
 0x172   : > { %2441 = vadd.xlane.f32.xlu1 %v8016_v23  ;;  %2971 = vadd.xlane.f32.xlu0 %v8012_v19  ;;  %v8021_v53 = vadd.f32 %v1526_v22, %v1454_v25 }
 0x176   : > { %2973 = vadd.xlane.f32.xlu1 %v8021_v53 }
 0x191   : > { %v1563_v28 = vpop.f32.mrf.mxu0 }
 0x192   : > { %v1636_v29 = vpop.f32.mrf.mxu1  ;;  %v1564_v30 = vadd.f32 %v1563_v28, %v8032_v27 }
 0x193   : > { %v1565_v31 = vpop.f32.mrf.mxu0 }
 0x194   : > { %v1638_v32 = vpop.f32.mrf.mxu1  ;;  %v8039_v33 = vadd.f32 %v1636_v29, %v1564_v30  ;;  %v1566_v26 = vadd.f32 %v1565_v31, %v8036_v12  ;;  %v1777_v30 = vld [vmem:[%s10144_s5] sm:$0xff] }
 0x195   : > { %v1567_v37 = vpop.f32.mrf.mxu0 }
 0x196   : > { %10262 = vst [vmem:[#allocation24_spill] sm:$0xff] %v8039_v33  ;;  %v1640_v38 = vpop.f32.mrf.mxu1  ;;  %v8042_v39 = vadd.f32 %v1638_v32, %v1566_v26  ;;  %v1568_v41 = vadd.f32 %v1567_v37, %v8032_v27  ;;  %3473 = vadd.xlane.f32.xlu0 %v8039_v33  ;;  %v1782_v26 = vrot.slane %v1777_v30, %v7942_v7 }
 0x197   : > { %v8046_v8 = vpop.f32.mrf.mxu0  ;;  %v8089_v37 = vrot.slane %v1777_v30, %v8025_v11 }
 0x198   : > { %v8048_v35 = vpop.f32.mrf.mxu1  ;;  %v8050_v36 = vadd.f32 %v1640_v38, %v1568_v41 }
 0x199   : > { %v1573_v43 = vpop.f32.mrf.mxu0 }
 0x19a   : > { %10263 = vst [vmem:[#allocation25_spill] sm:$0xff] %v8050_v36  ;;  %v1646_v45 = vpop.f32.mrf.mxu1  ;;  %v1574_v46 = vadd.f32 %v1573_v43, %v8032_v27  ;;  %3475 = vadd.xlane.f32.xlu1 %v8050_v36 }
 0x19b   : > { %v1575_v49 = vpop.f32.mrf.mxu0 }
 0x19c   : > { %v1648_v44 = vpop.f32.mrf.mxu1  ;;  %v8054_v47 = vadd.f32 %v1646_v45, %v1574_v46  ;;  %v1576_v51 = vadd.f32 %v1575_v49, %v8036_v12 }
 0x19d   : > { %v1577_v52 = vpop.f32.mrf.mxu0 }
 0x19e   : > { %10264 = vst [vmem:[#allocation26_spill] sm:$0xff] %v8054_v47  ;;  %v1650_v55 = vpop.f32.mrf.mxu1  ;;  %v8057_v57 = vadd.f32 %v1648_v44, %v1576_v51  ;;  %v1578_v58 = vadd.f32 %v1577_v52, %v8032_v27  ;;  %3477 = vadd.xlane.f32.xlu0 %v8054_v47  ;;  %v8099_v44 = vrot.slane %v1777_v30, %v7950_v9 }
 0x19f   : > { %v8061_v59 = vpop.f32.mrf.mxu0 }
 0x1a0   : > { %v8063_v61 = vpop.f32.mrf.mxu1  ;;  %v8065_v2 = vadd.f32 %v1650_v55, %v1578_v58 }
 0x1a1   : > { %v1583_v5 = vpop.f32.mrf.mxu0 }
 0x1a2   : > { %10265 = vst [vmem:[#allocation27_spill] sm:$0xff] %v8065_v2  ;;  %v8067_v63 = vpop.f32.mrf.mxu1  ;;  %3479 = vadd.xlane.f32.xlu1 %v8065_v2 }
 0x1a3   : > { %v8070_v10 = vpop.f32.mrf.mxu0 }
 0x1a4   : > { %v8072_v13 = vpop.f32.mrf.mxu1 }
 0x1a5   : > { %v1587_v14 = vpop.f32.mrf.mxu0 }
 0x1a6   : > { %v1660_v17 = vpop.f32.mrf.mxu1 }
 0x1a7   : > { %v8074_v18 = vpop.f32.mrf.mxu0 }
 0x1a8   : > { %v8076_v20 = vpop.f32.mrf.mxu1 }
 0x1a9   : > { %v1593_v22 = vpop.f32.mrf.mxu0 }
 0x1aa   : > { %v8078_v25 = vpop.f32.mrf.mxu1 }
 0x1ab   : > { %v8080_v28 = vpop.f32.mrf.mxu0 }
 0x1ac   : > { %v8082_v29 = vpop.f32.mrf.mxu1 }
 0x1ad   : > { %v1597_v31 = vpop.f32.mrf.mxu0 }
 0x1ae   : > { %v1670_v32 = vpop.f32.mrf.mxu1 }
 0x1af   : > { %v1599_v38 = vpop.f32.mrf.mxu0 }
 0x1b0   : > { %v8091_v41 = vpop.f32.mrf.mxu1 }
 0x1b1   : > { %v2173_v43 = vpop.f32.mrf.mxu0 }
 0x1b2   : > { %v2226_v45 = vpop.f32.mrf.mxu1  ;;  %v8093_v46 = vadd.f32 %v2173_v43, %v1782_v26 }
 0x1b3   : > { %v8096_v49 = vadd.f32 %v2226_v45, %v8089_v37  ;;  %v2175_v51 = vpop.f32.mrf.mxu0 }
 0x1b4   : > { %v2228_v52 = vpop.f32.mrf.mxu1  ;;  %2540 = vadd.xlane.f32.xlu1 %v8093_v46  ;;  %v8104_v0 = vadd.f32 %v2175_v51, %v8099_v44 }
 0x1b5   : > { %3577 = vadd.xlane.f32.xlu0 %v8096_v49  ;;  %v2177_v55 = vpop.f32.mrf.mxu0 }
 0x1b6   : > { %v2230_v58 = vpop.f32.mrf.mxu1  ;;  %v8106_v11 = vadd.f32 %v2177_v55, %v1782_v26  ;;  %v1588_v55 = vadd.f32 %v1587_v14, %v8032_v27 }
 0x1b7   : > { %v2179_v43 = vpop.f32.mrf.mxu0  ;;  %v8111_v6 = vadd.f32 %v2230_v58, %v8089_v37 }
 0x1b8   : > { %v2232_v7 = vpop.f32.mrf.mxu1  ;;  %2542 = vadd.xlane.f32.xlu1 %v8106_v11  ;;  %v8122_v1 = vadd.f32 %v2179_v43, %v8099_v44  ;;  %v8129_v58 = vadd.f32 %v1660_v17, %v1588_v55  ;;  %v1570_v17 = vadd.f32 %v8046_v8, %v8036_v12  ;;  %v1580_v43 = vadd.f32 %v8061_v59, %v8036_v12 }
 0x1b9   : > { %3063 = vadd.xlane.f32.xlu0 %v8104_v0  ;;  %v2183_v45 = vpop.f32.mrf.mxu0  ;;  %v1594_v8 = vadd.f32 %v1593_v22, %v8032_v27 }
 0x1ba   : > { %v2236_v9 = vpop.f32.mrf.mxu1  ;;  %v8113_v3 = vadd.f32 %v2183_v45, %v1782_v26  ;;  %v1598_v45 = vadd.f32 %v1597_v31, %v8032_v27  ;;  %v1584_v31 = vadd.f32 %v1583_v5, %v8032_v27  ;;  %v1590_v5 = vadd.f32 %v8074_v18, %v8036_v12 }
 0x1bb   : > { %v8118_v51 = vadd.f32 %v2236_v9, %v8089_v37  ;;  %v2185_v2 = vpop.f32.mrf.mxu0  ;;  %v1794_v9 = vrot.slane %v1777_v30, %v8028_v54  ;;  %v1600_v27 = vadd.f32 %v1599_v38, %v8036_v12  ;;  %v1596_v38 = vadd.f32 %v8080_v28, %v8036_v12  ;;  %v10271_v54 = vld [vmem:[#allocation27_spill] sm:$0xff] }
 0x1bc   : > { %3579 = vadd.xlane.f32.xlu1 %v8111_v6  ;;  %v8125_v47 = vadd.f32 %v2185_v2, %v8099_v44  ;;  %v2238_v36 = vpop.f32.mrf.mxu1  ;;  %v8137_v14 = vadd.f32 %v1670_v32, %v1598_v45  ;;  %v8151_v32 = vadd.f32 %v8048_v35, %v1570_v17  ;;  %v8156_v55 = vadd.f32 %v8067_v63, %v1584_v31 }
 0x1bd   : > { %2544 = vadd.xlane.f32.xlu0 %v8113_v3  ;;  %v8133_v33 = vadd.f32 %v2238_v36, %v1794_v9  ;;  %v2187_v2 = vpop.f32.mrf.mxu0  ;;  %v8144_v30 = vadd.f32 %v2232_v7, %v1794_v9  ;;  %v8162_v7 = vadd.f32 %v8063_v61, %v1580_v43  ;;  %v8167_v35 = vadd.f32 %v8078_v25, %v1594_v8 }
 0x1be   : > { %v8146_v36 = vadd.f32 %v2187_v2, %v1782_v26  ;;  %v8172_v59 = vadd.f32 %v8076_v20, %v1590_v5  ;;  %v8175_v63 = vadd.f32 %v2228_v52, %v1794_v9  ;;  %v8180_v61 = vadd.f32 %v8091_v41, %v1600_v27  ;;  %v2240_v18 = vpop.f32.mrf.mxu1 }
 0x1bf   : > { %v1586_v20 = vadd.f32 %v8070_v10, %v8036_v12  ;;  %v8187_v22 = vadd.f32 %v2240_v18, %v8089_v37  ;;  %v2189_v25 = vpop.f32.mrf.mxu0  ;;  %v8202_v31 = vadd.f32 %v8082_v29, %v1596_v38 }
 0x1c0   : > { %3065 = vadd.xlane.f32.xlu1 %v8122_v1  ;;  %v8197_v52 = vadd.f32 %v2189_v25, %v8099_v44  ;;  %v2242_v45 = vpop.f32.mrf.mxu1 }
 0x1c1   : > { %3581 = vadd.xlane.f32.xlu0 %v8118_v51  ;;  %v8194_v41 = vadd.f32 %v8072_v13, %v1586_v20  ;;  %v8204_v43 = vadd.f32 %v2242_v45, %v1794_v9 }
 0x1c4   : > { %3483 = vadd.xlane.f32.xlu1 %v8129_v58 }
 0x1c5   : > { %3067 = vadd.xlane.f32.xlu0 %v8125_v47 }
 0x1c8   : > { %3487 = vadd.xlane.f32.xlu1 %v8137_v14 }
 0x1c9   : > { %4095 = vadd.xlane.f32.xlu0 %v8133_v33 }
 0x1cc   : > { %4093 = vadd.xlane.f32.xlu1 %v8144_v30 }
 0x1cd   : > { %2546 = vadd.xlane.f32.xlu0 %v8146_v36 }
 0x1d0   : > { %3989 = vadd.xlane.f32.xlu1 %v8151_v32 }
 0x1d1   : > { %3481 = vadd.xlane.f32.xlu0 %v8156_v55 }
 0x1d4   : > { %3993 = vadd.xlane.f32.xlu1 %v8162_v7 }
 0x1d5   : > { %3485 = vadd.xlane.f32.xlu0 %v8167_v35 }
 0x1d8   : > { %3997 = vadd.xlane.f32.xlu1 %v8172_v59 }
 0x1d9   : > { %4091 = vadd.xlane.f32.xlu0 %v8175_v63 }
 0x1dc   : > { %4001 = vadd.xlane.f32.xlu1 %v8180_v61 }
 0x1dd   : > { %3987 = vadd.xlane.f32.xlu0 %v8042_v39 }
 0x1df   : > { %v2428_v26 = vpop.xlane.xlu0 %2427 }
 0x1e0   : > { %3583 = vadd.xlane.f32.xlu1 %v8187_v22  ;;  %v2444_v10 = vmul.f32 0.0078125, %v2428_v26 }
 0x1e1   : > { %3991 = vadd.xlane.f32.xlu0 %v8057_v57 }
 0x1e2   : > { %v8210_v28 = vsub.f32 %v7961_v21, %v2444_v10 }
 0x1e3   : > { %v2430_v2 = vpop.xlane.xlu1 %2429  ;;  %v2960_v37 = vpop.xlane.xlu0 %2959 }
 0x1e4   : > { %v2445_v17 = vmul.f32 0.0078125, %v2430_v2  ;;  %3069 = vadd.xlane.f32.xlu1 %v8197_v52  ;;  %v2975_v12 = vmul.f32 0.0078125, %v2960_v37  ;;  %v2460_v9 = vmul.f32 %v8210_v28, %v8210_v28 }
 0x1e5   : > { %3995 = vadd.xlane.f32.xlu0 %v8194_v41 }
 0x1e6   : > { %v8207_v13 = vsub.f32 %v7968_v16, %v2445_v17  ;;  %v8222_v21 = vsub.f32 %v7966_v15, %v2975_v12 }
 0x1e7   : > { %v2962_v44 = vpop.xlane.xlu1 %2961  ;;  %v2432_v8 = vpop.xlane.xlu0 %2431 }
 0x1e8   : > { %v2976_v5 = vmul.f32 0.0078125, %v2962_v44  ;;  %4097 = vadd.xlane.f32.xlu1 %v8204_v43  ;;  %v2446_v27 = vmul.f32 0.0078125, %v2432_v8  ;;  %v2461_v29 = vmul.f32 %v8207_v13, %v8207_v13  ;;  %v2991_v10 = vmul.f32 %v8222_v21, %v8222_v21 }
 0x1e9   : > { %3999 = vadd.xlane.f32.xlu0 %v8202_v31 }
 0x1ea   : > { %v8219_v16 = vsub.f32 %v7974_v24, %v2976_v5  ;;  %v8225_v26 = vsub.f32 %v7977_v34, %v2446_v27 }
 0x1eb   : > { %v2434_v18 = vpop.xlane.xlu1 %2433  ;;  %v2964_v20 = vpop.xlane.xlu0 %2963 }
 0x1ec   : > { %v2447_v25 = vmul.f32 0.0078125, %v2434_v18  ;;  %2470 = vadd.xlane.f32.xlu1 %v2461_v29  ;;  %v2977_v38 = vmul.f32 0.0078125, %v2964_v20  ;;  %v2992_v45 = vmul.f32 %v8219_v16, %v8219_v16  ;;  %v2462_v17 = vmul.f32 %v8225_v26, %v8225_v26 }
 0x1ed   : > { %2468 = vadd.xlane.f32.xlu0 %v2460_v9 }
 0x1ee   : > { %v8232_v24 = vsub.f32 %v7985_v42, %v2447_v25  ;;  %v8242_v8 = vsub.f32 %v7980_v40, %v2977_v38 }
 0x1ef   : > { %v2966_v15 = vpop.xlane.xlu1 %2965  ;;  %v2436_v2 = vpop.xlane.xlu0 %2435 }
 0x1f0   : > { %v2978_v37 = vmul.f32 0.0078125, %v2966_v15  ;;  %3001 = vadd.xlane.f32.xlu1 %v2992_v45  ;;  %v2448_v34 = vmul.f32 0.0078125, %v2436_v2  ;;  %v2463_v12 = vmul.f32 %v8232_v24, %v8232_v24  ;;  %v2993_v18 = vmul.f32 %v8242_v8, %v8242_v8 }
 0x1f1   : > { %2999 = vadd.xlane.f32.xlu0 %v2991_v10 }
 0x1f2   : > { %v8239_v44 = vsub.f32 %v7988_v48, %v2978_v37  ;;  %v8252_v48 = vsub.f32 %v7993_v50, %v2448_v34 }
 0x1f3   : > { %v2438_v42 = vpop.xlane.xlu1 %2437  ;;  %v2968_v5 = vpop.xlane.xlu0 %2967 }
 0x1f4   : > { %v2449_v27 = vmul.f32 0.0078125, %v2438_v42  ;;  %2474 = vadd.xlane.f32.xlu1 %v2463_v12  ;;  %v2979_v29 = vmul.f32 0.0078125, %v2968_v5  ;;  %v2994_v9 = vmul.f32 %v8239_v44, %v8239_v44  ;;  %v2464_v2 = vmul.f32 %v8252_v48, %v8252_v48 }
 0x1f5   : > { %2472 = vadd.xlane.f32.xlu0 %v2462_v17 }
 0x1f6   : > { %v8249_v20 = vsub.f32 %v8001_v60, %v2449_v27  ;;  %v8255_v45 = vsub.f32 %v7996_v56, %v2979_v29 }
 0x1f7   : > { %v2970_v40 = vpop.xlane.xlu1 %2969  ;;  %v2440_v25 = vpop.xlane.xlu0 %2439 }
 0x1f8   : > { %v2980_v38 = vmul.f32 0.0078125, %v2970_v40  ;;  %3005 = vadd.xlane.f32.xlu1 %v2994_v9  ;;  %v2450_v10 = vmul.f32 0.0078125, %v2440_v25  ;;  %v2465_v15 = vmul.f32 %v8249_v20, %v8249_v20  ;;  %v2995_v34 = vmul.f32 %v8255_v45, %v8255_v45 }
 0x1f9   : > { %3003 = vadd.xlane.f32.xlu0 %v2993_v18 }
 0x1fa   : > { %v8262_v60 = vsub.f32 %v8004_v62, %v2980_v38  ;;  %v8272_v5 = vsub.f32 %v8009_v4, %v2450_v10 }
 0x1fb   : > { %v2442_v50 = vpop.xlane.xlu1 %2441  ;;  %v2972_v37 = vpop.xlane.xlu0 %2971 }
 0x1fc   : > { %v2451_v17 = vmul.f32 0.0078125, %v2442_v50  ;;  %2478 = vadd.xlane.f32.xlu1 %v2465_v15  ;;  %v2981_v56 = vmul.f32 0.0078125, %v2972_v37  ;;  %v2996_v12 = vmul.f32 %v8262_v60, %v8262_v60  ;;  %v2466_v9 = vmul.f32 %v8272_v5, %v8272_v5 }
 0x1fd   : > { %2476 = vadd.xlane.f32.xlu0 %v2464_v2 }
 0x1fe   : > { %v8269_v42 = vsub.f32 %v8016_v23, %v2451_v17  ;;  %v8282_v40 = vsub.f32 %v8012_v19, %v2981_v56 }
 0x1ff   : > { %v2974_v62 = vpop.xlane.xlu1 %2973 }
 0x200   : > { %v2982_v27 = vmul.f32 0.0078125, %v2974_v62  ;;  %3009 = vadd.xlane.f32.xlu1 %v2996_v12  ;;  %v2467_v29 = vmul.f32 %v8269_v42, %v8269_v42  ;;  %v2997_v23 = vmul.f32 %v8282_v40, %v8282_v40 }
 0x201   : > { %3007 = vadd.xlane.f32.xlu0 %v2995_v34 }
 0x202   : > { %v8279_v18 = vsub.f32 %v8021_v53, %v2982_v27 }
 0x204   : > { %10266 = vst [vmem:[#allocation28_spill] sm:$0xff] %v8279_v18  ;;  %2482 = vadd.xlane.f32.xlu1 %v2467_v29  ;;  %v2998_v4 = vmul.f32 %v8279_v18, %v8279_v18 }
 0x205   : > { %2480 = vadd.xlane.f32.xlu0 %v2466_v9 }
 0x208   : > { %3013 = vadd.xlane.f32.xlu1 %v2998_v4 }
 0x209   : > { %3011 = vadd.xlane.f32.xlu0 %v2997_v23 }
 0x21f   : > { %v3474_v25 = vpop.xlane.xlu0 %3473 }
 0x223   : > { %v3476_v38 = vpop.xlane.xlu1 %3475 }
 0x227   : > { %v3478_v10 = vpop.xlane.xlu0 %3477 }
 0x22b   : > { %v3480_v15 = vpop.xlane.xlu1 %3479 }
 0x23d   : > { %v2541_v2 = vpop.xlane.xlu1 %2540 }
 0x23e   : > { %v3578_v53 = vpop.xlane.xlu0 %3577  ;;  %v2548_v50 = vmul.f32 0.0078125, %v2541_v2 }
 0x23f   : > { %v3585_v37 = vmul.f32 0.0078125, %v3578_v53 }
 0x240   : > { %v8289_v19 = vsub.f32 %v8093_v46, %v2548_v50 }
 0x241   : > { %v2543_v17 = vpop.xlane.xlu1 %2542  ;;  %v8292_v56 = vsub.f32 %v8096_v49, %v3585_v37  ;;  %v3490_v37 = vmul.f32 0.0078125, %v3476_v38 }
 0x242   : > { %v3064_v34 = vpop.xlane.xlu0 %3063  ;;  %v2549_v12 = vmul.f32 0.0078125, %v2543_v17  ;;  %v2556_v27 = vmul.f32 %v8289_v19, %v8289_v19 }
 0x243   : > { %v3071_v62 = vmul.f32 0.0078125, %v3064_v34  ;;  %v3593_v46 = vmul.f32 %v8292_v56, %v8292_v56 }
 0x244   : > { %2560 = vadd.xlane.f32.xlu0 %v2556_v27  ;;  %v8297_v29 = vsub.f32 %v8106_v11, %v2549_v12  ;;  %v3489_v11 = vmul.f32 0.0078125, %v3474_v25 }
 0x245   : > { %v3580_v9 = vpop.xlane.xlu1 %3579  ;;  %v8304_v53 = vsub.f32 %v8104_v0, %v3071_v62  ;;  %v10267_v62 = vld [vmem:[#allocation24_spill] sm:$0xff] }
 0x246   : > { %v2545_v4 = vpop.xlane.xlu0 %2544  ;;  %v3586_v23 = vmul.f32 0.0078125, %v3580_v9  ;;  %v2557_v49 = vmul.f32 %v8297_v29, %v8297_v29 }
 0x247   : > { %v2550_v2 = vmul.f32 0.0078125, %v2545_v4  ;;  %v3079_v9 = vmul.f32 %v8304_v53, %v8304_v53 }
 0x248   : > { %2562 = vadd.xlane.f32.xlu1 %v2557_v49  ;;  %3597 = vadd.xlane.f32.xlu0 %v3593_v46  ;;  %v8307_v50 = vsub.f32 %v8111_v6, %v3586_v23  ;;  %v3491_v6 = vmul.f32 0.0078125, %v3478_v10  ;;  %v8320_v46 = vsub.f32 %v10267_v62, %v3489_v11  ;;  %v3492_v23 = vmul.f32 0.0078125, %v3480_v15 }
 0x249   : > { %v3066_v17 = vpop.xlane.xlu1 %3065  ;;  %v8314_v4 = vsub.f32 %v8113_v3, %v2550_v2  ;;  %v10269_v3 = vld [vmem:[#allocation25_spill] sm:$0xff] }
 0x24a   : > { %v3582_v34 = vpop.xlane.xlu0 %3581  ;;  %v3072_v12 = vmul.f32 0.0078125, %v3066_v17  ;;  %v3594_v27 = vmul.f32 %v8307_v50, %v8307_v50  ;;  %10268 = vst [vmem:[#allocation24_spill] sm:$0xff] %v8320_v46  ;;  %v8327_v2 = vsub.f32 %v10269_v3, %v3490_v37  ;;  %v3505_v10 = vmul.f32 %v8320_v46, %v8320_v46 }
 0x24b   : > { %v2558_v17 = vmul.f32 %v8314_v4, %v8314_v4  ;;  %v3587_v15 = vmul.f32 0.0078125, %v3582_v34  ;;  %v8337_v18 = vsub.f32 %v10271_v54, %v3492_v23 }
 0x24c   : > { %3599 = vadd.xlane.f32.xlu1 %v3594_v27  ;;  %3083 = vadd.xlane.f32.xlu0 %v3079_v9  ;;  %v8317_v0 = vsub.f32 %v8122_v1, %v3072_v12  ;;  %v10270_v27 = vld [vmem:[#allocation26_spill] sm:$0xff]  ;;  %v3506_v62 = vmul.f32 %v8327_v2, %v8327_v2 }
 0x24d   : > { %v3484_v25 = vpop.xlane.xlu1 %3483  ;;  %v8332_v11 = vsub.f32 %v10270_v27, %v3491_v6  ;;  %10272 = vst [vmem:[#allocation25_spill] sm:$0xff] %v8337_v18  ;;  %v3508_v6 = vmul.f32 %v8337_v18, %v8337_v18 }
 0x24e   : > { %v3068_v38 = vpop.xlane.xlu0 %3067  ;;  %v3080_v49 = vmul.f32 %v8317_v0, %v8317_v0  ;;  %v3494_v9 = vmul.f32 0.0078125, %v3484_v25  ;;  %v8347_v25 = vsub.f32 %v8118_v51, %v3587_v15 }
 0x24f   : > { %v3073_v37 = vmul.f32 0.0078125, %v3068_v38  ;;  %v3507_v3 = vmul.f32 %v8332_v11, %v8332_v11 }
 0x250   : > { %3085 = vadd.xlane.f32.xlu1 %v3080_v49  ;;  %2564 = vadd.xlane.f32.xlu0 %v2558_v17  ;;  %v8344_v34 = vsub.f32 %v8129_v58, %v3494_v9 }
 0x251   : > { %v3488_v1 = vpop.xlane.xlu1 %3487 }
 0x252   : > { %v4096_v12 = vpop.xlane.xlu0 %4095  ;;  %10273 = vst [vmem:[#allocation26_spill] sm:$0xff] %v8344_v34  ;;  %v3496_v54 = vmul.f32 0.0078125, %v3488_v1 }
 0x254   : > { %3515 = vadd.xlane.f32.xlu1 %v3506_v62  ;;  %3513 = vadd.xlane.f32.xlu0 %v3505_v10  ;;  %v8350_v10 = vsub.f32 %v8125_v47, %v3073_v37  ;;  %v3510_v62 = vmul.f32 %v8344_v34, %v8344_v34  ;;  %v8362_v47 = vsub.f32 %v8137_v14, %v3496_v54 }
 0x255   : > { %v4094_v49 = vpop.xlane.xlu1 %4093 }
 0x256   : > { %v2547_v17 = vpop.xlane.xlu0 %2546  ;;  %v3081_v1 = vmul.f32 %v8350_v10, %v8350_v10  ;;  %10274 = vst [vmem:[#allocation27_spill] sm:$0xff] %v8362_v47  ;;  %v4100_v9 = vmul.f32 0.0078125, %v4094_v49 }
 0x257   : > { %v2551_v46 = vmul.f32 0.0078125, %v2547_v17  ;;  %v3595_v17 = vmul.f32 %v8347_v25, %v8347_v25 }
 0x258   : > { %3519 = vadd.xlane.f32.xlu1 %v3508_v6  ;;  %3517 = vadd.xlane.f32.xlu0 %v3507_v3  ;;  %v8374_v49 = vsub.f32 %v8144_v30, %v4100_v9 }
 0x259   : > { %v3990_v23 = vpop.xlane.xlu1 %3989  ;;  %v8357_v58 = vsub.f32 %v8146_v36, %v2551_v46  ;;  %v4101_v36 = vmul.f32 0.0078125, %v4096_v12 }
 0x25a   : > { %v3482_v38 = vpop.xlane.xlu0 %3481 }
 0x25b   : > { %v3493_v27 = vmul.f32 0.0078125, %v3482_v38  ;;  %v2559_v3 = vmul.f32 %v8357_v58, %v8357_v58 }
 0x25c   : > { %3523 = vadd.xlane.f32.xlu1 %v3510_v62  ;;  %3601 = vadd.xlane.f32.xlu0 %v3595_v17  ;;  %v3512_v62 = vmul.f32 %v8362_v47, %v8362_v47  ;;  %v4108_v17 = vmul.f32 %v8374_v49, %v8374_v49 }
 0x25d   : > { %v3994_v51 = vpop.xlane.xlu1 %3993  ;;  %v8367_v6 = vsub.f32 %v8156_v55, %v3493_v27 }
 0x25e   : > { %v3486_v15 = vpop.xlane.xlu0 %3485 }
 0x25f   : > { %v3495_v37 = vmul.f32 0.0078125, %v3486_v15  ;;  %10275 = vst [vmem:[#allocation29_spill] sm:$0xff] %v8367_v6  ;;  %v3509_v14 = vmul.f32 %v8367_v6, %v8367_v6 }
 0x260   : > { %3087 = vadd.xlane.f32.xlu0 %v3081_v1  ;;  %2566 = vadd.xlane.f32.xlu1 %v2559_v3  ;;  %v8386_v1 = vsub.f32 %v8133_v33, %v4101_v36 }
 0x261   : > { %v3998_v46 = vpop.xlane.xlu1 %3997  ;;  %v8377_v54 = vsub.f32 %v8167_v35, %v3495_v37 }
 0x262   : > { %v4092_v38 = vpop.xlane.xlu0 %4091 }
 0x263   : > { %10276 = vst [vmem:[#allocation30_spill] sm:$0xff] %v8377_v54  ;;  %v4099_v55 = vmul.f32 0.0078125, %v4092_v38  ;;  %v3511_v15 = vmul.f32 %v8377_v54, %v8377_v54  ;;  %v4109_v38 = vmul.f32 %v8386_v1, %v8386_v1 }
 0x264   : > { %3527 = vadd.xlane.f32.xlu1 %v3512_v62  ;;  %3521 = vadd.xlane.f32.xlu0 %v3509_v14  ;;  %v4004_v14 = vmul.f32 0.0078125, %v3990_v23  ;;  %v4006_v23 = vmul.f32 0.0078125, %v3994_v51 }
 0x265   : > { %v8379_v27 = vpop.xlane.xlu1 %4001  ;;  %v8389_v9 = vsub.f32 %v8175_v63, %v4099_v55 }
 0x266   : > { %v3988_v12 = vpop.xlane.xlu0 %3987  ;;  %v8407_v18 = vsub.f32 %v8151_v32, %v4004_v14  ;;  %v4008_v32 = vmul.f32 0.0078125, %v3998_v46 }
 0x267   : > { %v4003_v37 = vmul.f32 0.0078125, %v3988_v12  ;;  %v4107_v36 = vmul.f32 %v8389_v9, %v8389_v9 }
 0x268   : > { %4113 = vadd.xlane.f32.xlu1 %v4108_v17  ;;  %3525 = vadd.xlane.f32.xlu0 %v3511_v15  ;;  %v1771_v17 = vld [vmem:[#allocation8 + $0x1d0] sm:$0xff]  ;;  %10278 = vst [vmem:[#allocation32_spill] sm:$0xff] %v8407_v18 }
 0x269   : > { %v3584_v30 = vpop.xlane.xlu1 %3583  ;;  %v1775_v15 = vld [vmem:[#allocation8 + $0x1f0] sm:$0xff]  ;;  %v8401_v12 = vsub.f32 %v8042_v39, %v4003_v37 }
 0x26a   : > { %v3992_v35 = vpop.xlane.xlu0 %3991  ;;  %v3588_v3 = vmul.f32 0.0078125, %v3584_v30  ;;  %v6028_v30 = vcombine.low %v1771_v17, %v1775_v15 }
 0x26b   : > { %v4005_v34 = vmul.f32 0.0078125, %v3992_v35  ;;  %10277 = vst [vmem:[#allocation31_spill] sm:$0xff] %v8401_v12  ;;  %v1767_v35 = vld [vmem:[#allocation8 + $0x1b0] sm:$0xff]  ;;  %v4019_v37 = vmul.f32 %v8401_v12, %v8401_v12 }
 0x26c   : > { %4115 = vadd.xlane.f32.xlu0 %v4109_v38  ;;  %v8394_v62 = vsub.f32 %v8187_v22, %v3588_v3  ;;  %v6029_v38 = vcombine.high %v1771_v17, %v1775_v15  ;;  %v8419_v15 = vsub.f32 %v8162_v7, %v4006_v23  ;;  %v4010_v7 = vmul.f32 0.0078125, %v8379_v27 }
 0x26d   : > { %v3070_v47 = vpop.xlane.xlu1 %3069 }
 0x26e   : > { %v3996_v33 = vpop.xlane.xlu0 %3995  ;;  %v3074_v63 = vmul.f32 0.0078125, %v3070_v47  ;;  %v3596_v55 = vmul.f32 %v8394_v62, %v8394_v62  ;;  %2245 = vmatprep.subr.bf16.mxu0 %v6029_v38  ;;  %v1763_v47 = vld [vmem:[#allocation8 + $0x190] sm:$0xff]  ;;  %10280 = vst [vmem:[#allocation34_spill] sm:$0xff] %v8419_v15 }
 0x26f   : > { %v4007_v6 = vmul.f32 0.0078125, %v3996_v33  ;;  %2246 = vmatpush1.bf16.msra.mxu0 %v6028_v30  ;;  %v6021_v51 = vcombine.high %v1763_v47, %v1767_v35  ;;  %v4020_v33 = vmul.f32 %v8407_v18, %v8407_v18 }
 0x270   : > { %3603 = vadd.xlane.f32.xlu1 %v3596_v55  ;;  %4111 = vadd.xlane.f32.xlu0 %v4107_v36  ;;  %v8404_v22 = vsub.f32 %v8197_v52, %v3074_v63  ;;  %v8414_v36 = vsub.f32 %v8057_v57, %v4005_v34  ;;  %v6020_v52 = vcombine.low %v1763_v47, %v1767_v35  ;;  %v1755_v63 = vld [vmem:[#allocation8 + $0x150] sm:$0xff] }
 0x271   : > { %v4098_v3 = vpop.xlane.xlu1 %4097  ;;  %2247 = vmatprep.subr.bf16.mxu0 %v6021_v51  ;;  %v1759_v55 = vld [vmem:[#allocation8 + $0x170] sm:$0xff]  ;;  %v8424_v30 = vsub.f32 %v8194_v41, %v4007_v6  ;;  %v8432_v51 = vsub.f32 %v8172_v59, %v4008_v32 }
 0x272   : > { %v4000_v54 = vpop.xlane.xlu0 %3999  ;;  %v3082_v39 = vmul.f32 %v8404_v22, %v8404_v22  ;;  %10279 = vst [vmem:[#allocation33_spill] sm:$0xff] %v8414_v36  ;;  %v4021_v34 = vmul.f32 %v8414_v36, %v8414_v36  ;;  %v6012_v46 = vcombine.low %v1755_v63, %v1759_v55  ;;  %v6013_v47 = vcombine.high %v1755_v63, %v1759_v55  ;;  %v1747_v41 = vld [vmem:[#allocation8 + $0x110] sm:$0xff] }
 0x273   : > { %v4009_v38 = vmul.f32 0.0078125, %v4000_v54  ;;  %10281 = vst [vmem:[#allocation35_spill] sm:$0xff] %v8424_v30  ;;  %2248 = vmatpush1.bf16.msra.mxu0 %v6020_v52  ;;  %v4102_v23 = vmul.f32 0.0078125, %v4098_v3  ;;  %10282 = vst [vmem:[#allocation36_spill] sm:$0xff] %v8432_v51  ;;  %v1751_v6 = vld [vmem:[#allocation8 + $0x130] sm:$0xff]  ;;  %v4022_v52 = vmul.f32 %v8419_v15, %v8419_v15  ;;  %v4024_v63 = vmul.f32 %v8432_v51, %v8432_v51 }
 0x274   : > { %3089 = vadd.xlane.f32.xlu1 %v3082_v39  ;;  %4027 = vadd.xlane.f32.xlu0 %v4019_v37  ;;  %v6005_v27 = vcombine.high %v1747_v41, %v1751_v6  ;;  %v6004_v3 = vcombine.low %v1747_v41, %v1751_v6 }
 0x275   : > { %v2471_v14 = vpop.xlane.xlu1 %2470  ;;  %2249 = vmatprep.subr.bf16.mxu0 %v6013_v47  ;;  %v8444_v55 = vsub.f32 %v8204_v43, %v4102_v23  ;;  %v1735_v23 = vld [vmem:[#allocation8 + $0xb0] sm:$0xff] }
 0x276   : > { %v2469_v17 = vpop.xlane.xlu0 %2468  ;;  %v2485_v57 = vmul.f32 0.0078125, %v2471_v14  ;;  %v4023_v14 = vmul.f32 %v8424_v30, %v8424_v30 }
 0x277   : > { %v2484_v39 = vmul.f32 0.0078125, %v2469_v17  ;;  %v8439_v17 = vsub.f32 %v8202_v31, %v4009_v38  ;;  %2250 = vmatpush1.bf16.msra.mxu0 %v6012_v46  ;;  %v1739_v31 = vld [vmem:[#allocation8 + $0xd0] sm:$0xff] }
 0x278   : > { %v2493_v35 = vadd.f32 1e-06, %v2485_v57  ;;  %4029 = vadd.xlane.f32.xlu1 %v4020_v33  ;;  %4031 = vadd.xlane.f32.xlu0 %v4021_v34  ;;  %v8447_v57 = vsub.f32 %v8180_v61, %v4010_v7  ;;  %v1743_v38 = vld [vmem:[#allocation8 + $0xf0] sm:$0xff] }
 0x279   : > { %v8427_v37 = vpop.xlane.xlu1 %3001  ;;  %10283 = vst [vmem:[#allocation37_spill] sm:$0xff] %v8439_v17  ;;  %v2492_v33 = vadd.f32 1e-06, %v2484_v39  ;;  %2251 = vmatprep.subr.bf16.mxu0 %v6005_v27  ;;  %v4025_v47 = vmul.f32 %v8439_v17, %v8439_v17  ;;  %v5996_v39 = vcombine.low %v1739_v31, %v1743_v38  ;;  %v1731_v7 = vld [vmem:[#allocation8 + $0x90] sm:$0xff] }
 0x27a   : > { %v8429_v54 = vpop.xlane.xlu0 %2999  ;;  %6884 = vrsqrt.f32 %v2493_v35  ;;  %10284 = vst [vmem:[#allocation38_spill] sm:$0xff] %v8447_v57  ;;  %v5997_v35 = vcombine.high %v1739_v31, %v1743_v38  ;;  %v5989_v27 = vcombine.high %v1731_v7, %v1735_v23 }
 0x27b   : > { %2252 = vmatpush1.bf16.msra.mxu0 %v6004_v3  ;;  %6886 = vrsqrt.f32 %v2492_v33  ;;  %v5988_v3 = vcombine.low %v1731_v7, %v1735_v23  ;;  %v1719_v23 = vld [vmem:[#allocation8 + $0x30] sm:$0xff] }
 0x27c   : > { %4033 = vadd.xlane.f32.xlu1 %v4022_v52  ;;  %4035 = vadd.xlane.f32.xlu0 %v4023_v14  ;;  %v4110_v52 = vmul.f32 %v8444_v55, %v8444_v55  ;;  %v4026_v14 = vmul.f32 %v8447_v57, %v8447_v57 }
 0x27d   : > { %v2475_v59 = vpop.xlane.xlu1 %2474  ;;  %2253 = vmatprep.subr.bf16.mxu0 %v5997_v35 }
 0x27e   : > { %v2473_v32 = vpop.xlane.xlu0 %2472  ;;  %v2487_v34 = vmul.f32 0.0078125, %v2475_v59 }
 0x27f   : > { %v2486_v46 = vmul.f32 0.0078125, %v2473_v32  ;;  %2254 = vmatpush1.bf16.msra.mxu0 %v5996_v39  ;;  %v1723_v32 = vld [vmem:[#allocation8 + $0x50] sm:$0xff] }
 0x280   : > { %v2495_v41 = vadd.f32 1e-06, %v2487_v34  ;;  %4037 = vadd.xlane.f32.xlu1 %v4024_v63  ;;  %4039 = vadd.xlane.f32.xlu0 %v4025_v47  ;;  %v1727_v63 = vld [vmem:[#allocation8 + $0x70] sm:$0xff] }
 0x281   : > { %v2494_v6 = vadd.f32 1e-06, %v2486_v46  ;;  %v8451_v43 = vpop.xlane.xlu1 %3005  ;;  %2255 = vmatprep.subr.bf16.mxu0 %v5989_v27  ;;  %v5981_v34 = vcombine.high %v1723_v32, %v1727_v63  ;;  %v5980_v46 = vcombine.low %v1723_v32, %v1727_v63 }
 0x282   : > { %v8453_v61 = vpop.xlane.xlu0 %3003  ;;  %6888 = vrsqrt.f32 %v2495_v41 }
 0x283   : > { %6890 = vrsqrt.f32 %v2494_v6  ;;  %2256 = vmatpush1.bf16.msra.mxu0 %v5988_v3  ;;  %v1715_v6 = vld [vmem:[#allocation8 + $0x10] sm:$0xff]  ;;  %v8467_v3 = vld [vmem:[%s10149_s10] ss:$0 sm:$0xff] }
 0x284   : > { %4117 = vadd.xlane.f32.xlu1 %v4110_v52  ;;  %4041 = vadd.xlane.f32.xlu0 %v4026_v14  ;;  %v5972_v14 = vcombine.low %v1715_v6, %v1719_v23  ;;  %v5973_v27 = vcombine.high %v1715_v6, %v1719_v23  ;;  %v10285_v23 = vld [vmem:[#allocation17_spill] sm:$0xff] }
 0x285   : > { %v2479_v33 = vpop.xlane.xlu1 %2478  ;;  %2257 = vmatprep.subr.bf16.mxu0 %v5981_v34 }
 0x286   : > { %v2477_v59 = vpop.xlane.xlu0 %2476  ;;  %v2489_v31 = vmul.f32 0.0078125, %v2479_v33 }
 0x287   : > { %v2488_v38 = vmul.f32 0.0078125, %v2477_v59  ;;  %v6885_v47 = vpop.eup %6884  ;;  %2258 = vmatpush1.bf16.msra.mxu0 %v5980_v46 }
 0x288   : > { %v2497_v35 = vadd.f32 1e-06, %v2489_v31  ;;  %v2509_v52 = vmul.f32 %v6885_v47, %v8207_v13  ;;  %v6887_v33 = vpop.eup %6886  ;;  %2259 = vmatprep.subr.bf16.mxu0 %v5973_v27  ;;  %v8473_v13 = vld [vmem:[%s10149_s10 + $0x1] ss:$0 sm:$0xff]  ;;  %v10286_v27 = vmov 0  }
 0x289   : > { %v2496_v41 = vadd.f32 1e-06, %v2488_v38  ;;  %v8459_v39 = vpop.xlane.xlu1 %3009 }
 0x28a   : > { %v8461_v7 = vpop.xlane.xlu0 %3007  ;;  %6892 = vrsqrt.f32 %v2497_v35  ;;  %v2521_v34 = vmul.f32 %v8467_v3, %v2509_v52 }
 0x28b   : > { %6894 = vrsqrt.f32 %v2496_v41  ;;  %2260 = vmatpush1.bf16.msra.mxu0 %v5972_v14  ;;  %v2508_v41 = vmul.f32 %v6887_v33, %v8210_v28 }
 0x28c   : > { %v8480_v52 = vadd.f32 %v8473_v13, %v2521_v34  ;;  %v10287_v34 = vld [vmem:[#allocation18_spill] sm:$0xff] }
 0x28d   : > { %v2483_v59 = vpop.xlane.xlu1 %2482 }
 0x28e   : > { %v2481_v32 = vpop.xlane.xlu0 %2480  ;;  %v2491_v63 = vmul.f32 0.0078125, %v2483_v59  ;;  %2278 = vmatmul.mubr.bf16.vlgmr.msra.gmra.mxu0 %v10285_v23  ;;  %v2520_v59 = vmul.f32 %v8467_v3, %v2508_v41 }
 0x28f   : > { %v2490_v31 = vmul.f32 0.0078125, %v2481_v32  ;;  %v6889_v38 = vpop.eup %6888  ;;  %2287 = vmatprep.mubr.bf16.mxu0 %v10286_v27 }
 0x290   : > { %v2499_v46 = vadd.f32 1e-06, %v2491_v63  ;;  %v2511_v47 = vmul.f32 %v6889_v38, %v8232_v24  ;;  %v6891_v6 = vpop.eup %6890  ;;  %v8491_v63 = vadd.f32 %v8473_v13, %v2520_v59 }
 0x291   : > { %v2498_v35 = vadd.f32 1e-06, %v2490_v31  ;;  %v2510_v32 = vmul.f32 %v6891_v6, %v8225_v26 }
 0x292   : > { %6896 = vrsqrt.f32 %v2499_v46  ;;  %v2523_v14 = vmul.f32 %v8467_v3, %v2511_v47 }
 0x293   : > { %6898 = vrsqrt.f32 %v2498_v35  ;;  %v2522_v38 = vmul.f32 %v8467_v3, %v2510_v32 }
 0x294   : > { %v8488_v24 = vadd.f32 %v8473_v13, %v2523_v14 }
 0x295   : > { %2610 = vrot.lane.b32.xlu1 %v8480_v52, %s7238_s17  ;;  %v8506_v47 = vadd.f32 %v8473_v13, %v2522_v38 }
 0x296   : > { %2288 = vmatmul.mubr.bf16.gmra.mxu0 %v10287_v34 }
 0x297   : > { %v6893_v28 = vpop.eup %6892 }
 0x298   : > { %v6895_v33 = vpop.eup %6894  ;;  %v2513_v31 = vmul.f32 %v6893_v28, %v8249_v20 }
 0x299   : > { %2614 = vrot.lane.b32.xlu1 %v8488_v24, %s7238_s17  ;;  %v2512_v26 = vmul.f32 %v6895_v33, %v8252_v48 }
 0x29a   : > { %2608 = vrot.lane.b32.xlu0 %v8491_v63, %s7238_s17  ;;  %v2525_v46 = vmul.f32 %v8467_v3, %v2513_v31 }
 0x29b   : > { %v2524_v20 = vmul.f32 %v8467_v3, %v2512_v26 }
 0x29c   : > { %v8503_v35 = vadd.f32 %v8473_v13, %v2525_v46 }
 0x29d   : > { %v8514_v6 = vadd.f32 %v8473_v13, %v2524_v20 }
 0x29e   : > { %2618 = vrot.lane.b32.xlu1 %v8503_v35, %s7238_s17  ;;  %2612 = vrot.lane.b32.xlu0 %v8506_v47, %s7238_s17 }
 0x29f   : > { %v6897_v48 = vpop.eup %6896 }
 0x2a0   : > { %v6899_v41 = vpop.eup %6898  ;;  %v2515_v59 = vmul.f32 %v6897_v48, %v8269_v42  ;;  %v8532_v42 = vpop.xlane.xlu0 %3011 }
 0x2a1   : > { %v2514_v14 = vmul.f32 %v6899_v41, %v8272_v5  ;;  %v8534_v5 = vpop.xlane.xlu1 %3013 }
 0x2a2   : > { %2616 = vrot.lane.b32.xlu0 %v8514_v6, %s7238_s17  ;;  %v2527_v33 = vmul.f32 %v8467_v3, %v2515_v59 }
 0x2a3   : > { %v2526_v32 = vmul.f32 %v8467_v3, %v2514_v14 }
 0x2a4   : > { %v8528_v31 = vadd.f32 %v8473_v13, %v2527_v33 }
 0x2a5   : > { %v8522_v28 = vadd.f32 %v8473_v13, %v2526_v32 }
 0x2a7   : > { %2620 = vrot.lane.b32.xlu1 %v8522_v28, %s7238_s17 }
 0x2ab   : > { %2622 = vrot.lane.b32.xlu1 %v8528_v31, %s7238_s17 }
 0x2cd   : > { %v2561_v38 = vpop.xlane.xlu0 %2560 }
 0x2ce   : > { %v2568_v26 = vmul.f32 0.0078125, %v2561_v38 }
 0x2d0   : > { %v2572_v46 = vadd.f32 1e-05, %v2568_v26 }
 0x2d1   : > { %v2563_v20 = vpop.xlane.xlu1 %2562  ;;  %v8536_v48 = vpop.xlane.xlu0 %3597 }
 0x2d2   : > { %6900 = vrsqrt.f32 %v2572_v46  ;;  %v2569_v41 = vmul.f32 0.0078125, %v2563_v20  ;;  %v8545_v20 = vld [vmem:[%s10149_s10 + $0x2] ss:$0 sm:$0xff] }
 0x2d4   : > { %v2573_v14 = vadd.f32 1e-05, %v2569_v41 }
 0x2d5   : > { %v3600_v59 = vpop.xlane.xlu1 %3599  ;;  %v3084_v32 = vpop.xlane.xlu0 %3083 }
 0x2d6   : > { %6902 = vrsqrt.f32 %v2573_v14  ;;  %v3606_v33 = vmul.f32 0.0078125, %v3600_v59  ;;  %v3091_v34 = vmul.f32 0.0078125, %v3084_v32 }
 0x2d8   : > { %v3610_v27 = vadd.f32 1e-05, %v3606_v33  ;;  %v3095_v23 = vadd.f32 1e-05, %v3091_v34  ;;  %v3016_v33 = vmul.f32 0.0078125, %v8427_v37 }
 0x2d9   : > { %v3086_v57 = vpop.xlane.xlu1 %3085  ;;  %v2565_v51 = vpop.xlane.xlu0 %2564 }
 0x2da   : > { %6904 = vrsqrt.f32 %v3610_v27  ;;  %v2570_v15 = vmul.f32 0.0078125, %v2565_v51  ;;  %v3015_v51 = vmul.f32 0.0078125, %v8429_v54  ;;  %v3092_v59 = vmul.f32 0.0078125, %v3086_v57 }
 0x2db   : > { %6906 = vrsqrt.f32 %v3095_v23 }
 0x2dc   : > { %v2574_v38 = vadd.f32 1e-05, %v2570_v15  ;;  %v8555_v15 = vld [vmem:[%s10149_s10 + $0x3] ss:$0 sm:$0xff]  ;;  %v3023_v18 = vadd.f32 1e-06, %v3015_v51 }
 0x2dd   : > { %v8538_v26 = vpop.xlane.xlu1 %3515  ;;  %v8540_v17 = vpop.xlane.xlu0 %3513 }
 0x2de   : > { %6908 = vrsqrt.f32 %v2574_v38 }
 0x2df   : > { %v6901_v46 = vpop.eup %6900  ;;  %6910 = vrsqrt.f32 %v3023_v18 }
 0x2e0   : > { %v2580_v34 = vmul.f32 %v6901_v46, %v8289_v19 }
 0x2e1   : > { %v8548_v41 = vpop.xlane.xlu1 %3519  ;;  %v8550_v27 = vpop.xlane.xlu0 %3517 }
 0x2e2   : > { %v2588_v23 = vmul.f32 %v8545_v20, %v2580_v34  ;;  %v3017_v34 = vmul.f32 0.0078125, %v8453_v61 }
 0x2e3   : > { %v6903_v14 = vpop.eup %6902 }
 0x2e4   : > { %v8561_v32 = vadd.f32 %v8555_v15, %v2588_v23  ;;  %v2581_v19 = vmul.f32 %v6903_v14, %v8297_v29  ;;  %v3096_v23 = vadd.f32 1e-05, %v3092_v59  ;;  %v3024_v14 = vadd.f32 1e-06, %v3016_v33 }
 0x2e5   : > { %v8565_v38 = vpop.xlane.xlu1 %3523  ;;  %v3602_v46 = vpop.xlane.xlu0 %3601  ;;  %v3018_v59 = vmul.f32 0.0078125, %v8451_v43 }
 0x2e6   : > { %10288 = vst [vmem:[#allocation39_spill] sm:$0xff] %v8561_v32  ;;  %2644 = vrot.lane.b32.xlu1 %v8561_v32, %s7238_s17  ;;  %v2589_v54 = vmul.f32 %v8545_v20, %v2581_v19  ;;  %v3025_v19 = vadd.f32 1e-06, %v3017_v34  ;;  %6912 = vrsqrt.f32 %v3096_v23  ;;  %v3607_v18 = vmul.f32 0.0078125, %v3602_v46 }
 0x2e7   : > { %v6905_v57 = vpop.eup %6904  ;;  %6914 = vrsqrt.f32 %v3024_v14  ;;  %v3026_v43 = vadd.f32 1e-06, %v3018_v59  ;;  %v3021_v46 = vmul.f32 0.0078125, %v8532_v42 }
 0x2e8   : > { %v8575_v29 = vadd.f32 %v8555_v15, %v2589_v54  ;;  %v3618_v37 = vmul.f32 %v6905_v57, %v8307_v50  ;;  %v6907_v51 = vpop.eup %6906  ;;  %v3611_v34 = vadd.f32 1e-05, %v3607_v18  ;;  %v3020_v18 = vmul.f32 0.0078125, %v8459_v39 }
 0x2e9   : > { %v2567_v30 = vpop.xlane.xlu1 %2566  ;;  %v3088_v36 = vpop.xlane.xlu0 %3087  ;;  %v3029_v59 = vadd.f32 1e-06, %v3021_v46 }
 0x2ea   : > { %10289 = vst [vmem:[#allocation40_spill] sm:$0xff] %v8575_v29  ;;  %v2571_v12 = vmul.f32 0.0078125, %v2567_v30  ;;  %v3093_v32 = vmul.f32 0.0078125, %v3088_v36  ;;  %2646 = vrot.lane.b32.xlu1 %v8575_v29, %s7238_s17  ;;  %v3622_v61 = vmul.f32 %v8545_v20, %v3618_v37  ;;  %v3103_v29 = vmul.f32 %v6907_v51, %v8304_v53 }
 0x2eb   : > { %v6909_v54 = vpop.eup %6908 }
 0x2ec   : > { %v2575_v50 = vadd.f32 1e-05, %v2571_v12  ;;  %v3097_v33 = vadd.f32 1e-05, %v3093_v32  ;;  %v8585_v57 = vadd.f32 %v8555_v15, %v3622_v61  ;;  %v2582_v37 = vmul.f32 %v6909_v54, %v8314_v4 }
 0x2ed   : > { %v8587_v36 = vpop.xlane.xlu1 %3527  ;;  %v8589_v30 = vpop.xlane.xlu0 %3521  ;;  %v3019_v32 = vmul.f32 0.0078125, %v8461_v7  ;;  %v3107_v53 = vmul.f32 %v8545_v20, %v3103_v29 }
 0x2ee   : > { %6916 = vrsqrt.f32 %v2575_v50  ;;  %v2590_v12 = vmul.f32 %v8545_v20, %v2582_v37  ;;  %v6911_v29 = vpop.eup %6910  ;;  %v3605_v37 = vmul.f32 0.0078125, %v8536_v48 }
 0x2ef   : > { %6918 = vrsqrt.f32 %v3097_v33  ;;  %v3027_v61 = vadd.f32 1e-06, %v3019_v32 }
 0x2f0   : > { %6920 = vrsqrt.f32 %v3025_v19  ;;  %v8601_v4 = vadd.f32 %v8555_v15, %v2590_v12  ;;  %v8607_v19 = vadd.f32 %v8555_v15, %v3107_v53 }
 0x2f1   : > { %v4114_v23 = vpop.xlane.xlu1 %4113  ;;  %v8598_v14 = vpop.xlane.xlu0 %3525  ;;  %6922 = vrsqrt.f32 %v3026_v43 }
 0x2f2   : > { %v4120_v51 = vmul.f32 0.0078125, %v4114_v23  ;;  %2648 = vrot.lane.b32.xlu0 %v8601_v4, %s7238_s17  ;;  %6924 = vrsqrt.f32 %v3611_v34  ;;  %10290 = vst [vmem:[#allocation41_spill] sm:$0xff] %v8607_v19  ;;  %v3039_v23 = vmul.f32 %v6911_v29, %v8222_v21 }
 0x2f3   : > { %v6913_v33 = vpop.eup %6912 }
 0x2f4   : > { %v4124_v7 = vadd.f32 1e-05, %v4120_v51  ;;  %v6915_v32 = vpop.eup %6914 }
 0x2f5   : > { %v4116_v42 = vpop.xlane.xlu0 %4115 }
 0x2f6   : > { %6926 = vrsqrt.f32 %v4124_v7  ;;  %v4121_v54 = vmul.f32 0.0078125, %v4116_v42  ;;  %3159 = vrot.lane.b32.xlu0 %v8607_v19, %s7238_s17  ;;  %v3028_v42 = vadd.f32 1e-06, %v3020_v18 }
 0x2f7   : > { %6928 = vrsqrt.f32 %v3027_v61 }
 0x2f8   : > { %v4125_v50 = vadd.f32 1e-05, %v4121_v54  ;;  %6930 = vrsqrt.f32 %v3029_v59  ;;  %v3104_v59 = vmul.f32 %v6913_v33, %v8317_v0  ;;  %v3609_v54 = vadd.f32 1e-05, %v3605_v37 }
 0x2f9   : > { %v3604_v43 = vpop.xlane.xlu1 %3603  ;;  %v4112_v12 = vpop.xlane.xlu0 %4111  ;;  %v3022_v0 = vmul.f32 0.0078125, %v8534_v5 }
 0x2fa   : > { %6932 = vrsqrt.f32 %v4125_v50  ;;  %v3608_v46 = vmul.f32 0.0078125, %v3604_v43  ;;  %v4119_v34 = vmul.f32 0.0078125, %v4112_v12  ;;  %v3529_v50 = vmul.f32 0.0078125, %v8540_v17 }
 0x2fb   : > { %v6917_v53 = vpop.eup %6916  ;;  %v3108_v37 = vmul.f32 %v8545_v20, %v3104_v59 }
 0x2fc   : > { %v6919_v51 = vpop.eup %6918  ;;  %v3612_v61 = vadd.f32 1e-05, %v3608_v46  ;;  %v4123_v7 = vadd.f32 1e-05, %v4119_v34  ;;  %v2583_v39 = vmul.f32 %v6917_v53, %v8357_v58  ;;  %v3047_v46 = vmul.f32 %v8467_v3, %v3039_v23 }
 0x2fd   : > { %v6921_v48 = vpop.eup %6920  ;;  %v3090_v43 = vpop.xlane.xlu1 %3089  ;;  %v3105_v21 = vmul.f32 %v6919_v51, %v8350_v10  ;;  %v3040_v34 = vmul.f32 %v6915_v32, %v8219_v16  ;;  %v3531_v58 = vmul.f32 0.0078125, %v8550_v27  ;;  %v3537_v16 = vadd.f32 1e-06, %v3529_v50 }
 0x2fe   : > { %v8620_v12 = vpop.xlane.xlu0 %4027  ;;  %v3094_v29 = vmul.f32 0.0078125, %v3090_v43  ;;  %v2591_v19 = vmul.f32 %v8545_v20, %v2583_v39  ;;  %6934 = vrsqrt.f32 %v4123_v7  ;;  %v6923_v33 = vpop.eup %6922  ;;  %v3041_v27 = vmul.f32 %v6921_v48, %v8242_v8 }
 0x2ff   : > { %v3109_v17 = vmul.f32 %v8545_v20, %v3105_v21  ;;  %6936 = vrsqrt.f32 %v3612_v61  ;;  %v6925_v53 = vpop.eup %6924  ;;  %v3030_v51 = vadd.f32 1e-06, %v3022_v0  ;;  %v3048_v61 = vmul.f32 %v8467_v3, %v3040_v34  ;;  %v8682_v0 = vld [vmem:[%s8669_s24 + $0x10] sm:$0xff] }
 0x300   : > { %v3098_v10 = vadd.f32 1e-05, %v3094_v29  ;;  %v8635_v18 = vadd.f32 %v8555_v15, %v2591_v19  ;;  %6938 = vrsqrt.f32 %v3609_v54  ;;  %v3042_v7 = vmul.f32 %v6923_v33, %v8239_v44 }
 0x301   : > { %v8638_v32 = vpop.xlane.xlu1 %4029  ;;  %v8643_v5 = vadd.f32 %v8555_v15, %v3109_v17  ;;  %v3539_v39 = vadd.f32 1e-06, %v3531_v58  ;;  %v8654_v59 = vadd.f32 %v8555_v15, %v3108_v37  ;;  %v3049_v43 = vmul.f32 %v8467_v3, %v3041_v27 }
 0x302   : > { %v8640_v23 = vpop.xlane.xlu0 %4031  ;;  %6940 = vrsqrt.f32 %v3098_v10  ;;  %2650 = vrot.lane.b32.xlu1 %v8635_v18, %s7238_s17  ;;  %v3619_v21 = vmul.f32 %v6925_v53, %v8347_v25  ;;  %v8678_v25 = vadd.f32 %v8473_v13, %v3048_v61  ;;  %v3050_v34 = vmul.f32 %v8467_v3, %v3042_v7  ;;  %v8699_v53 = vld [vmem:[%s8669_s24] sm:$0xff]  ;;  %v8711_v61 = vld [vmem:[%s8669_s24 + $0x30] sm:$0xff] }
 0x303   : > { %v6927_v19 = vpop.eup %6926  ;;  %6942 = vrsqrt.f32 %v3028_v42  ;;  %3163 = vrot.lane.b32.xlu0 %v8643_v5, %s7238_s17  ;;  %v8662_v42 = vadd.f32 %v8473_v13, %v3047_v46  ;;  %v3530_v46 = vmul.f32 0.0078125, %v8538_v26  ;;  %v3533_v26 = vmul.f32 0.0078125, %v8589_v30  ;;  %10293 = vst [vmem:[#allocation44_spill] sm:$0xff] %v8711_v61  ;;  %v8714_v7 = vld [vmem:[%s8669_s24 + $0x20] sm:$0xff] }
 0x304   : > { %v4132_v8 = vmul.f32 %v6927_v19, %v8374_v49  ;;  %v6929_v48 = vpop.eup %6928  ;;  %6944 = vrsqrt.f32 %v3537_v16  ;;  %v8695_v16 = vadd.f32 %v8473_v13, %v3049_v43  ;;  %v3623_v27 = vmul.f32 %v8545_v20, %v3619_v21  ;;  %10294 = vst [vmem:[#allocation45_spill] sm:$0xff] %v8714_v7 }
 0x305   : > { %v8657_v54 = vpop.xlane.xlu1 %4033  ;;  %v6931_v44 = vpop.eup %6930  ;;  %6946 = vrsqrt.f32 %v3030_v51  ;;  %v3043_v58 = vmul.f32 %v6929_v48, %v8255_v45  ;;  %v3538_v19 = vadd.f32 1e-06, %v3530_v46  ;;  %v3532_v30 = vmul.f32 0.0078125, %v8548_v41 }
 0x306   : > { %v8659_v50 = vpop.xlane.xlu0 %4035  ;;  %3161 = vrot.lane.b32.xlu1 %v8654_v59, %s7238_s17  ;;  %v4136_v49 = vmul.f32 %v8545_v20, %v4132_v8  ;;  %6948 = vrsqrt.f32 %v3539_v39  ;;  %10292 = vst [vmem:[#allocation43_spill] sm:$0xff] %v8695_v16  ;;  %v3045_v45 = vmul.f32 %v6931_v44, %v8282_v40  ;;  %v2601_v51 = vmul.f32 %v8480_v52, %v8682_v0 }
 0x307   : > { %v6933_v29 = vpop.eup %6932  ;;  %3123 = vrot.lane.b32.xlu0 %v8662_v42, %s7238_s17  ;;  %v8717_v8 = vadd.f32 %v8473_v13, %v3050_v34  ;;  %v2600_v40 = vmul.f32 %v8491_v63, %v8699_v53  ;;  %v3051_v48 = vmul.f32 %v8467_v3, %v3043_v58  ;;  %v3541_v21 = vadd.f32 1e-06, %v3533_v26 }
 0x308   : > { %v4133_v17 = vmul.f32 %v6933_v29, %v8386_v1  ;;  %v8687_v33 = vadd.f32 %v8555_v15, %v4136_v49  ;;  %v3535_v52 = vmul.f32 0.0078125, %v8598_v14  ;;  %v8729_v29 = vadd.f32 %v8555_v15, %v3623_v27 }
 0x309   : > { %v8690_v10 = vpop.xlane.xlu1 %4037  ;;  %10295 = vst [vmem:[#allocation46_spill] sm:$0xff] %v8717_v8  ;;  %v2603_v58 = vmul.f32 %v8488_v24, %v8711_v61  ;;  %v2602_v14 = vmul.f32 %v8506_v47, %v8714_v7  ;;  %6950 = vrsqrt.f32 %v3538_v19  ;;  %v3534_v27 = vmul.f32 0.0078125, %v8565_v38 }
 0x30a   : > { %10291 = vst [vmem:[#allocation42_spill] sm:$0xff] %v8687_v33  ;;  %v8692_v37 = vpop.xlane.xlu0 %4039  ;;  %3125 = vrot.lane.b32.xlu1 %v8678_v25, %s7238_s17  ;;  %v4137_v1 = vmul.f32 %v8545_v20, %v4133_v17  ;;  %v3053_v17 = vmul.f32 %v8467_v3, %v3045_v45  ;;  %v8750_v47 = vadd.f32 %v8473_v13, %v3051_v48  ;;  %6952 = vrsqrt.f32 %v3541_v21  ;;  %v8767_v21 = vld [vmem:[%s8669_s24 + $0x28] sm:$0xff] }
 0x30b   : > { %3127 = vrot.lane.b32.xlu0 %v8695_v16, %s7238_s17  ;;  %v6935_v39 = vpop.eup %6934  ;;  %v3543_v38 = vadd.f32 1e-06, %v3535_v52  ;;  %v8773_v52 = vld [vmem:[%s8669_s24 + $0x50] sm:$0xff] }
 0x30c   : > { %v8723_v41 = vadd.f32 %v8555_v15, %v4137_v1  ;;  %v6937_v43 = vpop.eup %6936  ;;  %v4131_v46 = vmul.f32 %v6935_v39, %v8389_v9  ;;  %v3540_v1 = vadd.f32 1e-06, %v3532_v30  ;;  %v8743_v9 = vld [vmem:[%s8669_s24 + $0x18] sm:$0xff]  ;;  %v8746_v39 = vld [vmem:[%s8669_s24 + $0x8] sm:$0xff]  ;;  %10297 = vst [vmem:[#allocation48_spill] sm:$0xff] %v8750_v47  ;;  %10300 = vst [vmem:[#allocation51_spill] sm:$0xff] %v8773_v52 }
 0x30d   : > { %v4118_v44 = vpop.xlane.xlu1 %4117  ;;  %v6939_v63 = vpop.eup %6938  ;;  %v3620_v19 = vmul.f32 %v6937_v43, %v8394_v62  ;;  %v3542_v62 = vadd.f32 1e-06, %v3534_v27  ;;  %v8764_v43 = vld [vmem:[%s8669_s24 + $0x38] sm:$0xff] }
 0x30e   : > { %10296 = vst [vmem:[#allocation47_spill] sm:$0xff] %v8723_v41  ;;  %v8726_v49 = vpop.xlane.xlu0 %4041  ;;  %v4122_v34 = vmul.f32 0.0078125, %v4118_v44  ;;  %3129 = vrot.lane.b32.xlu1 %v8717_v8, %s7238_s17  ;;  %v4135_v44 = vmul.f32 %v8545_v20, %v4131_v46  ;;  %v3617_v8 = vmul.f32 %v6939_v63, %v8292_v56  ;;  %v8770_v56 = vadd.f32 %v8473_v13, %v3053_v17 }
 0x30f   : > { %v6941_v26 = vpop.eup %6940  ;;  %3677 = vrot.lane.b32.xlu0 %v8729_v29, %s7238_s17  ;;  %v3624_v27 = vmul.f32 %v8545_v20, %v3620_v19  ;;  %v4043_v17 = vmul.f32 0.0078125, %v8620_v12  ;;  %v3536_v12 = vmul.f32 0.0078125, %v8587_v36 }
 0x310   : > { %v6943_v24 = vpop.eup %6942  ;;  %v4126_v16 = vadd.f32 1e-05, %v4122_v34  ;;  %v3106_v45 = vmul.f32 %v6941_v26, %v8404_v22  ;;  %v8756_v46 = vadd.f32 %v8555_v15, %v4135_v44  ;;  %10299 = vst [vmem:[#allocation50_spill] sm:$0xff] %v8770_v56  ;;  %v3621_v61 = vmul.f32 %v8545_v20, %v3617_v8  ;;  %v8793_v8 = vld [vmem:[%s8669_s24 + $0x58] sm:$0xff] }
 0x311   : > { %v2611_v30 = vpop.permute.xlu1 %2610  ;;  %v6945_v34 = vpop.eup %6944 }
 0x312   : > { %v2609_v7 = vpop.permute.xlu0 %2608  ;;  %10298 = vst [vmem:[#allocation49_spill] sm:$0xff] %v8756_v46  ;;  %6954 = vrsqrt.f32 %v4126_v16  ;;  %v2625_v48 = vmul.f32 %v2611_v30, %v8743_v9  ;;  %v3110_v26 = vmul.f32 %v8545_v20, %v3106_v45  ;;  %v3044_v16 = vmul.f32 %v6943_v24, %v8262_v60  ;;  %v6947_v63 = vpop.eup %6946  ;;  %v10301_v60 = vld [vmem:[#allocation24_spill] sm:$0xff] }
 0x313   : > { %v2624_v22 = vmul.f32 %v2609_v7, %v8746_v39  ;;  %6956 = vrsqrt.f32 %v3540_v1  ;;  %3131 = vrot.lane.b32.xlu0 %v8750_v47, %s7238_s17  ;;  %v6949_v45 = vpop.eup %6948  ;;  %v3553_v24 = vmul.f32 %v6945_v34, %v10301_v60  ;;  %v8796_v34 = vld [vmem:[%s8669_s24 + $0x40] sm:$0xff] }
 0x314   : > { %v2633_v7 = vadd.f32 %v2625_v48, %v2601_v51  ;;  %v8777_v1 = vadd.f32 %v8555_v15, %v3110_v26  ;;  %6958 = vrsqrt.f32 %v3543_v38  ;;  %v2605_v38 = vmul.f32 %v8503_v35, %v8773_v52  ;;  %10302 = vst [vmem:[#allocation24_spill] sm:$0xff] %v8796_v34  ;;  %v8799_v48 = vld [vmem:[%s8669_s24 + $0x48] sm:$0xff] }
 0x315   : > { %v2632_v44 = vadd.f32 %v2624_v22, %v2600_v40  ;;  %v2615_v30 = vpop.permute.xlu1 %2614  ;;  %6960 = vrsqrt.f32 %v3542_v62  ;;  %v10303_v22 = vld [vmem:[#allocation28_spill] sm:$0xff]  ;;  %v8808_v35 = vadd.f32 %v8555_v15, %v3624_v27  ;;  %v3555_v36 = vmul.f32 %v6949_v45, %v8332_v11 }
 0x316   : > { %v2613_v47 = vpop.permute.xlu0 %2612  ;;  %v2627_v51 = vmul.f32 %v2615_v30, %v8764_v43  ;;  %3165 = vrot.lane.b32.xlu1 %v8777_v1, %s7238_s17  ;;  %v3046_v26 = vmul.f32 %v6947_v63, %v10303_v22  ;;  %v4051_v62 = vadd.f32 1e-06, %v4043_v17  ;;  %v4045_v30 = vmul.f32 0.0078125, %v8640_v23  ;;  %v6951_v27 = vpop.eup %6950 }
 0x317   : > { %v2626_v40 = vmul.f32 %v2613_v47, %v8767_v21  ;;  %v2660_v19 = vpack.c.bf16 %v2633_v7, %v2632_v44  ;;  %3135 = vrot.lane.b32.xlu0 %v8770_v56, %s7238_s17  ;;  %v3052_v47 = vmul.f32 %v8467_v3, %v3044_v16  ;;  %v8813_v52 = vadd.f32 %v8555_v15, %v3621_v61  ;;  %v6953_v22 = vpop.eup %6952 }
 0x318   : > { %v8803_v7 = vadd.f32 %v2627_v51, %v2603_v58  ;;  %v3561_v16 = vmul.f32 %v8467_v3, %v3553_v24  ;;  %v2604_v63 = vmul.f32 %v8514_v6, %v8796_v34  ;;  %v3054_v61 = vmul.f32 %v8467_v3, %v3046_v26 }
 0x319   : > { %v8805_v44 = vadd.f32 %v2626_v40, %v2602_v14  ;;  %6321 = vmatprep.mubr.bf16.mxu0 %v2660_v19  ;;  %v2619_v60 = vpop.permute.xlu1 %2618  ;;  %v8827_v23 = vadd.f32 %v8473_v13, %v3052_v47  ;;  %v3544_v45 = vadd.f32 1e-06, %v3536_v12  ;;  %6962 = vrsqrt.f32 %v4051_v62  ;;  %v8837_v40 = vld [vmem:[%s8669_s24 + $0x68] sm:$0xff]  ;;  %v8856_v62 = vld [vmem:[%s8669_s24 + $0x78] sm:$0xff] }
 0x31a   : > { %v2617_v56 = vpop.permute.xlu0 %2616  ;;  %v2629_v14 = vmul.f32 %v2619_v60, %v8793_v8  ;;  %3679 = vrot.lane.b32.xlu1 %v8808_v35, %s7238_s17  ;;  %v4053_v24 = vadd.f32 1e-06, %v4045_v30  ;;  %v4047_v51 = vmul.f32 0.0078125, %v8659_v50  ;;  %10304 = vst [vmem:[#allocation28_spill] sm:$0xff] %v8837_v40  ;;  %v8840_v47 = vadd.f32 %v8473_v13, %v3561_v16  ;;  %v8853_v50 = vld [vmem:[%s8669_s24 + $0x70] sm:$0xff] }
 0x31b   : > { %v2628_v11 = vmul.f32 %v2617_v56, %v8799_v48  ;;  %3673 = vrot.lane.b32.xlu0 %v8813_v52, %s7238_s17  ;;  %v3563_v56 = vmul.f32 %v8467_v3, %v3555_v36  ;;  %v4044_v26 = vmul.f32 0.0078125, %v8638_v32  ;;  %v8848_v36 = vld [vmem:[%s8669_s24 + $0x60] sm:$0xff]  ;;  %v8859_v30 = vadd.f32 %v8473_v13, %v3054_v61  ;;  %s7169_s24 = scalar_lea.vmem %s7168_s14, 8192 }
 0x31c   : > { %v8830_v17 = vadd.f32 %v2629_v14, %v2605_v38  ;;  %10305 = vst [vmem:[#allocation52_spill] sm:$0xff] %v8840_v47  ;;  %10306 = vst [vmem:[#allocation53_spill] sm:$0xff] %v8848_v36  ;;  %v3554_v60 = vmul.f32 %v6951_v27, %v8327_v2  ;;  %6964 = vrsqrt.f32 %v3544_v45  ;;  %v4049_v38 = vmul.f32 0.0078125, %v8692_v37  ;;  %p7171_p2 = scmp.lt.s32.totalorder %s7169_s24, %s7163_s28 }
 0x31d   : > { %v8832_v6 = vadd.f32 %v2628_v11, %v2604_v63  ;;  %v2621_v19 = vpop.permute.xlu1 %2620  ;;  %10307 = vst [vmem:[#allocation54_spill] sm:$0xff] %v8859_v30  ;;  %v8864_v32 = vadd.f32 %v8473_v13, %v3563_v56  ;;  %6966 = vrsqrt.f32 %v4053_v24  ;;  %v4055_v11 = vadd.f32 1e-06, %v4047_v51  ;;  %v10310_v24 = vld [vmem:[#allocation25_spill] sm:$0xff] }
 0x31e   : > { %3133 = vrot.lane.b32.xlu1 %v8827_v23, %s7238_s17  ;;  %v2630_v14 = vmul.f32 %v2621_v19, %v8837_v40  ;;  %v2606_v2 = vmul.f32 %v8522_v28, %v8848_v36  ;;  %v2607_v27 = vmul.f32 %v8528_v31, %v8853_v50  ;;  %v4052_v56 = vadd.f32 1e-06, %v4044_v26  ;;  %p7172_p1 = por %p7171_p2, %p7170_p5 }
 0x31f   : > { %v6955_v12 = vpop.eup %6954  ;;  %3637 = vrot.lane.b32.xlu0 %v8840_v47, %s7238_s17  ;;  %10308 = vst [vmem:[#allocation55_spill] sm:$0xff] %v8864_v32  ;;  %v10309_v47 = vld [vmem:[#allocation29_spill] sm:$0xff]  ;;  %v3562_v37 = vmul.f32 %v8467_v3, %v3554_v60  ;;  %v4046_v28 = vmul.f32 0.0078125, %v8657_v54  ;;  %6968 = vrsqrt.f32 %v4055_v11  ;;  %v1768_v60 = vld [vmem:[#allocation8 + $0x1b8] sm:$0xff] }
 0x320   : > { %v6957_v16 = vpop.eup %6956  ;;  %v4134_v63 = vmul.f32 %v6955_v12, %v8444_v55  ;;  %v3557_v34 = vmul.f32 %v6953_v22, %v10309_v47  ;;  %v8882_v47 = vadd.f32 %v2630_v14, %v2606_v2  ;;  %v10312_v12 = vld [vmem:[#allocation30_spill] sm:$0xff]  ;;  %6970 = vrsqrt.f32 %v4052_v56  ;;  %p7173_p4 = pnand %p7172_p1, %p7166_p0 }
 0x321   : > { %v2623_v58 = vpop.permute.xlu1 %2622  ;;  %v6959_v61 = vpop.eup %6958  ;;  %v3556_v51 = vmul.f32 %v6957_v16, %v10310_v24  ;;  %v8898_v54 = vadd.f32 %v8473_v13, %v3562_v37  ;;  %v10313_v16 = vld [vmem:[#allocation26_spill] sm:$0xff]  ;;  %v10317_v37 = vld [vmem:[#allocation31_spill] sm:$0xff] }
 0x322   : > { %v2631_v45 = vmul.f32 %v2623_v58, %v8856_v62  ;;  %3137 = vrot.lane.b32.xlu1 %v8859_v30, %s7238_s17  ;;  %v4138_v55 = vmul.f32 %v8545_v20, %v4134_v63  ;;  %v6961_v19 = vpop.eup %6960  ;;  %v4057_v20 = vadd.f32 1e-06, %v4049_v38  ;;  %v3565_v22 = vmul.f32 %v8467_v3, %v3557_v34 }
 0x323   : > { %3641 = vrot.lane.b32.xlu0 %v8864_v32, %s7238_s17  ;;  %v3559_v26 = vmul.f32 %v6959_v61, %v10312_v12  ;;  %v4054_v38 = vadd.f32 1e-06, %v4046_v28  ;;  %v4048_v34 = vmul.f32 0.0078125, %v8690_v10  ;;  %v3558_v14 = vmul.f32 %v6961_v19, %v10313_v16  ;;  %v10320_v12 = vld [vmem:[#allocation33_spill] sm:$0xff] }
 0x324   : > { %v8884_v31 = vadd.f32 %v2631_v45, %v2607_v27  ;;  %v8887_v58 = vadd.f32 %v8555_v15, %v4138_v55  ;;  %v3564_v15 = vmul.f32 %v8467_v3, %v3556_v51  ;;  %6972 = vrsqrt.f32 %v4057_v20 }
 0x325   : > { %v8904_v63 = vadd.f32 %v8473_v13, %v3565_v22  ;;  %v3567_v11 = vmul.f32 %v8467_v3, %v3559_v26  ;;  %6974 = vrsqrt.f32 %v4054_v38  ;;  %v4056_v10 = vadd.f32 1e-06, %v4048_v34 }
 0x326   : > { %10311 = vst [vmem:[#allocation29_spill] sm:$0xff] %v8887_v58  ;;  %3675 = vrot.lane.b32.xlu1 %v8585_v57, %s7238_s17  ;;  %v6963_v61 = vpop.eup %6962  ;;  %v8912_v2 = vadd.f32 %v8473_v13, %v3564_v15  ;;  %v4050_v27 = vmul.f32 0.0078125, %v8726_v49  ;;  %v3566_v45 = vmul.f32 %v8467_v3, %v3558_v14  ;;  %v10319_v49 = vld [vmem:[#allocation27_spill] sm:$0xff] }
 0x327   : > { %4191 = vrot.lane.b32.xlu0 %v8723_v41, %s7238_s17  ;;  %10314 = vst [vmem:[#allocation25_spill] sm:$0xff] %v8904_v63  ;;  %v8917_v56 = vadd.f32 %v8473_v13, %v3567_v11  ;;  %v4067_v24 = vmul.f32 %v6963_v61, %v10317_v37  ;;  %6976 = vrsqrt.f32 %v4056_v10  ;;  %v10322_v11 = vld [vmem:[#allocation35_spill] sm:$0xff] }
 0x328   : > { %10315 = vst [vmem:[#allocation30_spill] sm:$0xff] %v8912_v2  ;;  %v4058_v19 = vadd.f32 1e-06, %v4050_v27  ;;  %v8925_v28 = vadd.f32 %v8473_v13, %v3566_v45  ;;  %v10324_v45 = vld [vmem:[#allocation32_spill] sm:$0xff] }
 0x329   : > { %v6965_v55 = vpop.eup %6964  ;;  %10316 = vst [vmem:[#allocation26_spill] sm:$0xff] %v8917_v56  ;;  %v4075_v22 = vmul.f32 %v8467_v3, %v4067_v24 }
 0x32a   : > { %3639 = vrot.lane.b32.xlu1 %v8898_v54, %s7238_s17  ;;  %v6967_v51 = vpop.eup %6966  ;;  %10318 = vst [vmem:[#allocation31_spill] sm:$0xff] %v8925_v28  ;;  %v3560_v20 = vmul.f32 %v6965_v55, %v10319_v49  ;;  %6978 = vrsqrt.f32 %v4058_v19  ;;  %v10326_v19 = vld [vmem:[#allocation37_spill] sm:$0xff] }
 0x32b   : > { %3645 = vrot.lane.b32.xlu0 %v8904_v63, %s7238_s17  ;;  %v4069_v26 = vmul.f32 %v6967_v51, %v10320_v12  ;;  %v8936_v16 = vadd.f32 %v8473_v13, %v4075_v22  ;;  %v10327_v22 = vld [vmem:[#allocation34_spill] sm:$0xff]  ;;  %v10340_v63 = vld [vmem:[#allocation40_spill] sm:$0xff] }
 0x32c   : > { %v6969_v15 = vpop.eup %6968  ;;  %v3568_v38 = vmul.f32 %v8467_v3, %v3560_v20 }
 0x32d   : > { %v6971_v34 = vpop.eup %6970  ;;  %10321 = vst [vmem:[#allocation27_spill] sm:$0xff] %v8936_v16  ;;  %v4077_v14 = vmul.f32 %v8467_v3, %v4069_v26  ;;  %v4071_v61 = vmul.f32 %v6969_v15, %v10322_v11  ;;  %v10330_v11 = vld [vmem:[#allocation36_spill] sm:$0xff] }
 0x32e   : > { %3643 = vrot.lane.b32.xlu1 %v8912_v2, %s7238_s17  ;;  %v8945_v27 = vadd.f32 %v8473_v13, %v3568_v38  ;;  %v4068_v55 = vmul.f32 %v6971_v34, %v10324_v45 }
 0x32f   : > { %3649 = vrot.lane.b32.xlu0 %v8917_v56, %s7238_s17  ;;  %v8949_v24 = vadd.f32 %v8473_v13, %v4077_v14  ;;  %v4079_v51 = vmul.f32 %v8467_v3, %v4071_v61 }
 0x330   : > { %10323 = vst [vmem:[#allocation33_spill] sm:$0xff] %v8945_v27  ;;  %v4076_v20 = vmul.f32 %v8467_v3, %v4068_v55 }
 0x331   : > { %v6973_v10 = vpop.eup %6972  ;;  %10325 = vst [vmem:[#allocation35_spill] sm:$0xff] %v8949_v24  ;;  %v8960_v15 = vadd.f32 %v8473_v13, %v4079_v51  ;;  %v10333_v51 = vld [vmem:[#allocation38_spill] sm:$0xff] }
 0x332   : > { %3647 = vrot.lane.b32.xlu1 %v8925_v28, %s7238_s17  ;;  %v6975_v37 = vpop.eup %6974  ;;  %v4073_v49 = vmul.f32 %v6973_v10, %v10326_v19  ;;  %v8968_v34 = vadd.f32 %v8473_v13, %v4076_v20  ;;  %v1776_v20 = vld [vmem:[#allocation8 + $0x1f8] sm:$0xff] }
 0x333   : > { %4187 = vrot.lane.b32.xlu0 %v8756_v46, %s7238_s17  ;;  %v4070_v12 = vmul.f32 %v6975_v37, %v10327_v22  ;;  %10328 = vst [vmem:[#allocation32_spill] sm:$0xff] %v8960_v15  ;;  %v1764_v22 = vld [vmem:[#allocation8 + $0x198] sm:$0xff] }
 0x334   : > { %v6977_v26 = vpop.eup %6976  ;;  %v4081_v38 = vmul.f32 %v8467_v3, %v4073_v49  ;;  %10329 = vst [vmem:[#allocation37_spill] sm:$0xff] %v8968_v34  ;;  %v1772_v49 = vld [vmem:[#allocation8 + $0x1d8] sm:$0xff] }
 0x335   : > { %v4078_v14 = vmul.f32 %v8467_v3, %v4070_v12  ;;  %v4072_v61 = vmul.f32 %v6977_v26, %v10330_v11  ;;  %v6031_v11 = vcombine.high %v1772_v49, %v1776_v20 }
 0x336   : > { %4193 = vrot.lane.b32.xlu1 %v8887_v58, %s7238_s17  ;;  %v8973_v45 = vadd.f32 %v8473_v13, %v4081_v38  ;;  %v6030_v38 = vcombine.low %v1772_v49, %v1776_v20  ;;  %v10339_v58 = vld [vmem:[#allocation39_spill] sm:$0xff] }
 0x337   : > { %4151 = vrot.lane.b32.xlu0 %v8936_v16, %s7238_s17  ;;  %v6979_v10 = vpop.eup %6978  ;;  %v8980_v55 = vadd.f32 %v8473_v13, %v4078_v14  ;;  %v4080_v37 = vmul.f32 %v8467_v3, %v4072_v61  ;;  %v6023_v14 = vcombine.high %v1764_v22, %v1768_v60  ;;  %2298 = vmatprep.subr.bf16.mxu1 %v6031_v11 }
 0x338   : > { %10331 = vst [vmem:[#allocation34_spill] sm:$0xff] %v8973_v45  ;;  %v4074_v19 = vmul.f32 %v6979_v10, %v10333_v51  ;;  %2299 = vmatpush1.bf16.msra.mxu1 %v6030_v38  ;;  %v6022_v61 = vcombine.low %v1764_v22, %v1768_v60  ;;  %v10336_v51 = vld [vmem:[#allocation19_spill] sm:$0xff]  ;;  %v9001_v60 = vld [vmem:[%s10144_s5] sm:$0xff]  ;;  %v1740_v22 = vld [vmem:[#allocation8 + $0xd8] sm:$0xff] }
 0x339   : > { %10332 = vst [vmem:[#allocation36_spill] sm:$0xff] %v8980_v55  ;;  %v8987_v12 = vadd.f32 %v8473_v13, %v4080_v37  ;;  %2300 = vmatprep.subr.bf16.mxu1 %v6023_v14  ;;  %10337 = vst [vmem:[#allocation57_spill] sm:$0xff] %v9001_v60 }
 0x33a   : > { %3651 = vrot.lane.b32.xlu1 %v8945_v27, %s7238_s17  ;;  %v4082_v26 = vmul.f32 %v8467_v3, %v4074_v19  ;;  %v1748_v3 = vld [vmem:[#allocation8 + $0x118] sm:$0xff] }
 0x33b   : > { %4155 = vrot.lane.b32.xlu0 %v8949_v24, %s7238_s17  ;;  %10334 = vst [vmem:[#allocation38_spill] sm:$0xff] %v8987_v12  ;;  %v1752_v19 = vld [vmem:[#allocation8 + $0x138] sm:$0xff] }
 0x33c   : > { %v8993_v10 = vadd.f32 %v8473_v13, %v4082_v26  ;;  %2301 = vmatpush1.bf16.msra.mxu1 %v6022_v61  ;;  %v6007_v20 = vcombine.high %v1748_v3, %v1752_v19  ;;  %v1744_v26 = vld [vmem:[#allocation8 + $0xf8] sm:$0xff]  ;;  %v6006_v11 = vcombine.low %v1748_v3, %v1752_v19  ;;  %v1797_v3 = vsub.s32 4, %v10336_v51 }
 0x33d   : > { %v1736_v61 = vld [vmem:[#allocation8 + $0xb8] sm:$0xff] }
 0x33e   : > { %4189 = vrot.lane.b32.xlu1 %v8687_v33, %s7238_s17  ;;  %10335 = vst [vmem:[#allocation56_spill] sm:$0xff] %v8993_v10  ;;  %v1798_v56 = vrot.slane %v9001_v60, %v1797_v3 }
 0x33f   : > { %4159 = vrot.lane.b32.xlu0 %v8960_v15, %s7238_s17  ;;  %v1760_v15 = vld [vmem:[#allocation8 + $0x178] sm:$0xff] }
 0x342   : > { %4153 = vrot.lane.b32.xlu1 %v8968_v34, %s7238_s17 }
 0x343   : > { %4163 = vrot.lane.b32.xlu0 %v8973_v45, %s7238_s17  ;;  %v1756_v45 = vld [vmem:[#allocation8 + $0x158] sm:$0xff] }
 0x344   : > { %v6015_v37 = vcombine.high %v1756_v45, %v1760_v15  ;;  %v6014_v49 = vcombine.low %v1756_v45, %v1760_v15  ;;  %v1732_v45 = vld [vmem:[#allocation8 + $0x98] sm:$0xff] }
 0x346   : > { %4157 = vrot.lane.b32.xlu1 %v8980_v55, %s7238_s17  ;;  %v1801_v55 = vsub.s32 5, %v10336_v51  ;;  %2302 = vmatprep.subr.bf16.mxu1 %v6015_v37  ;;  %v5990_v51 = vcombine.low %v1732_v45, %v1736_v61 }
 0x347   : > { %2303 = vmatpush1.bf16.msra.mxu1 %v6014_v49  ;;  %v5991_v49 = vcombine.high %v1732_v45, %v1736_v61 }
 0x348   : > { %v9004_v13 = vrot.slane %v9001_v60, %v1801_v55  ;;  %2304 = vmatprep.subr.bf16.mxu1 %v6007_v20  ;;  %v9010_v55 = vld [vmem:[%s10148_s9 + $0x8] sm:$0xff]  ;;  %v1724_v20 = vld [vmem:[#allocation8 + $0x58] sm:$0xff] }
 0x34a   : > { %4161 = vrot.lane.b32.xlu1 %v8987_v12, %s7238_s17  ;;  %v5998_v12 = vcombine.low %v1740_v22, %v1744_v26 }
 0x34b   : > { %2305 = vmatpush1.bf16.msra.mxu1 %v6006_v11 }
 0x34e   : > { %4165 = vrot.lane.b32.xlu1 %v8993_v10, %s7238_s17  ;;  %v2279_v38 = vpop.f32.mrf.mxu0  ;;  %v5999_v10 = vcombine.high %v1740_v22, %v1744_v26  ;;  %v9017_v22 = vld [vmem:[%s10148_s9] sm:$0xff]  ;;  %v9022_v26 = vld [vmem:[%s10148_s9 + $0x10] sm:$0xff] }
 0x34f   : > { %v2640_v41 = vmul.f32 %v10339_v58, %v9017_v22  ;;  %v2641_v28 = vmul.f32 %v10340_v63, %v9022_v26  ;;  %v2280_v58 = vadd.f32 %v2279_v38, %v1798_v56 }
 0x350   : > { %v2281_v14 = vpop.f32.mrf.mxu0  ;;  %2306 = vmatprep.subr.bf16.mxu1 %v5999_v10  ;;  %v9027_v10 = vld [vmem:[%s10148_s9 + $0x18] sm:$0xff] }
 0x351   : > { %v2282_v15 = vadd.f32 %v2281_v14, %v9004_v13  ;;  %v1728_v14 = vld [vmem:[#allocation8 + $0x78] sm:$0xff]  ;;  %2307 = vmatpush1.bf16.msra.mxu1 %v5998_v12 }
 0x352   : > { %v2283_v37 = vpop.f32.mrf.mxu0  ;;  %2308 = vmatprep.subr.bf16.mxu1 %v5991_v49  ;;  %v5983_v27 = vcombine.high %v1724_v20, %v1728_v14  ;;  %v5982_v45 = vcombine.low %v1724_v20, %v1728_v14 }
 0x353   : > { %v2284_v36 = vadd.f32 %v2283_v37, %v1798_v56 }
 0x354   : > { %v2285_v24 = vpop.f32.mrf.mxu0 }
 0x355   : > { %v2286_v19 = vadd.f32 %v2285_v24, %v9004_v13  ;;  %2309 = vmatpush1.bf16.msra.mxu1 %v5990_v51 }
 0x356   : > { %v2289_v16 = vpop.f32.mrf.mxu0  ;;  %2310 = vmatprep.subr.bf16.mxu1 %v5983_v27 }
 0x357   : > { %v9029_v11 = vpack.c.bf16 %v2286_v19, %v2282_v15  ;;  %v1716_v15 = vld [vmem:[#allocation8 + $0x18] sm:$0xff]  ;;  %v2290_v49 = vadd.f32 %v2289_v16, %v1798_v56  ;;  %v10342_v16 = vmov 0  }
 0x358   : > { %v2645_v34 = vpop.permute.xlu1 %2644  ;;  %v2291_v33 = vpop.f32.mrf.mxu0  ;;  %v1720_v19 = vld [vmem:[#allocation8 + $0x38] sm:$0xff] }
 0x359   : > { %10338 = vst [vmem:[#allocation58_spill] sm:$0xff] %v9029_v11  ;;  %v2652_v24 = vmul.f32 %v2645_v34, %v9010_v55  ;;  %v5975_v61 = vcombine.high %v1716_v15, %v1720_v19  ;;  %2311 = vmatpush1.bf16.msra.mxu1 %v5982_v45  ;;  %v5974_v60 = vcombine.low %v1716_v15, %v1720_v19  ;;  %v10344_v19 = vld [vmem:[#allocation41_spill] sm:$0xff] }
 0x35a   : > { %v2293_v11 = vpop.f32.mrf.mxu0  ;;  %v2292_v30 = vadd.f32 %v2291_v33, %v9004_v13 }
 0x35b   : > { %v2656_v34 = vadd.f32 %v2652_v24, %v2640_v41  ;;  %v2294_v32 = vadd.f32 %v2293_v11, %v1798_v56  ;;  %2312 = vmatprep.subr.bf16.mxu1 %v5975_v61  ;;  %v10343_v56 = vld [vmem:[#allocation18_spill] sm:$0xff] }
 0x35c   : > { %v2647_v46 = vpop.permute.xlu1 %2646  ;;  %v2295_v40 = vpop.f32.mrf.mxu0 }
 0x35d   : > { %v2653_v2 = vmul.f32 %v2647_v46, %v9027_v10  ;;  %v2817_v63 = vpack.c.bf16 %v2294_v32, %v2290_v49  ;;  %2313 = vmatpush1.bf16.msra.mxu1 %v5974_v60  ;;  %v2816_v46 = vpack.c.bf16 %v2284_v36, %v2280_v58  ;;  %v2296_v41 = vadd.f32 %v2295_v40, %v9004_v13  ;;  %v9047_v32 = vld [vmem:[%s10148_s9 + $0x28] sm:$0xff]  ;;  %v9053_v40 = vld [vmem:[%s10148_s9 + $0x20] sm:$0xff]  ;;  %v9058_v36 = vld [vmem:[%s10148_s9 + $0x30] sm:$0xff] }
 0x35e   : > { %v2642_v13 = vmul.f32 %v8601_v4, %v9053_v40  ;;  %v2643_v38 = vmul.f32 %v8635_v18, %v9058_v36 }
 0x35f   : > { %v2657_v12 = vadd.f32 %v2653_v2, %v2641_v28  ;;  %6329 = vmatprep.subr.bf16.mxu1 %v2817_v63  ;;  %v10341_v2 = vld [vmem:[#allocation17_spill] sm:$0xff]  ;;  %v9042_v27 = vpack.c.bf16 %v2296_v41, %v2292_v30  ;;  %v9063_v30 = vld [vmem:[%s10148_s9 + $0x38] sm:$0xff] }
 0x360   : > { %2331 = vmatmul.mubr.bf16.vlgmr.msra.gmra.mxu1 %v10341_v2 }
 0x361   : > { %v2664_v3 = vpack.c.bf16 %v2657_v12, %v2656_v34  ;;  %2340 = vmatprep.mubr.bf16.mxu1 %v10342_v16  ;;  %6330 = vmatpush3.bf16.msra.mxu1 %v2817_v63  ;;  %v3155_v34 = vmul.f32 %v10344_v19, %v9017_v22  ;;  %v3156_v12 = vmul.f32 %v8654_v59, %v9022_v26 }
 0x362   : > { %6331 = vmatprep.subr.bf16.mxu1 %v2816_v46  ;;  %v3157_v59 = vmul.f32 %v8643_v5, %v9053_v40  ;;  %v3116_v5 = vmul.f32 %v8678_v25, %v8682_v0 }
 0x364   : > { %v2649_v28 = vpop.permute.xlu0 %2648 }
 0x365   : > { %6332 = vmatpush3.bf16.msra.mxu1 %v2816_v46  ;;  %v2654_v51 = vmul.f32 %v2649_v28, %v9047_v32 }
 0x366   : > { %6353 = vmatprep.subr.bf16.mxu1 %v9042_v27 }
 0x367   : > { %v2658_v14 = vadd.f32 %v2654_v51, %v2642_v13 }
 0x368   : > { %v3160_v33 = vpop.permute.xlu0 %3159  ;;  %2341 = vmatmul.mubr.bf16.gmra.mxu1 %v10343_v56  ;;  %v3158_v56 = vmul.f32 %v8777_v1, %v9058_v36 }
 0x369   : > { %v3167_v11 = vmul.f32 %v3160_v33, %v9010_v55 }
 0x36b   : > { %v3171_v49 = vadd.f32 %v3167_v11, %v3155_v34  ;;  %v10346_v11 = vpack.c.bf16 %v8830_v17, %v8832_v6  ;;  %v3115_v34 = vmul.f32 %v8662_v42, %v8699_v53 }
 0x374   : > { %v2651_v60 = vpop.permute.xlu1 %2650 }
 0x375   : > { %v2655_v37 = vmul.f32 %v2651_v60, %v9063_v30  ;;  %v3164_v20 = vpop.permute.xlu0 %3163 }
 0x376   : > { %v3169_v16 = vmul.f32 %v3164_v20, %v9047_v32  ;;  %v10345_v20 = vpack.c.bf16 %v8803_v7, %v8805_v44 }
 0x377   : > { %v2659_v24 = vadd.f32 %v2655_v37, %v2643_v38 }
 0x378   : > { %v3162_v15 = vpop.permute.xlu1 %3161  ;;  %v3173_v38 = vadd.f32 %v3169_v16, %v3157_v59  ;;  %v10348_v16 = vld [vmem:[#allocation44_spill] sm:$0xff] }
 0x379   : > { %v3168_v45 = vmul.f32 %v3162_v15, %v9027_v10  ;;  %v3124_v4 = vpop.permute.xlu0 %3123  ;;  %v2665_v61 = vpack.c.bf16 %v2659_v24, %v2658_v14  ;;  %v3671_v24 = vmul.f32 %v8729_v29, %v9053_v40  ;;  %v3672_v15 = vmul.f32 %v8808_v35, %v9058_v36 }
 0x37a   : > { %v3139_v14 = vmul.f32 %v3124_v4, %v8746_v39  ;;  %v10347_v35 = vpack.c.bf16 %v8884_v31, %v8882_v47  ;;  %v10352_v31 = vld [vmem:[#allocation51_spill] sm:$0xff] }
 0x37b   : > { %v3172_v18 = vadd.f32 %v3168_v45, %v3156_v12  ;;  %6317 = vmatprep.subr.bf16.mxu0 %v2665_v61 }
 0x37c   : > { %6318 = vmatpush3.bf16.xpose.msra.mxu0 %v2665_v61  ;;  %v3126_v46 = vpop.permute.xlu1 %3125  ;;  %v3147_v4 = vadd.f32 %v3139_v14, %v3115_v34 }
 0x37d   : > { %v3128_v58 = vpop.permute.xlu0 %3127  ;;  %6319 = vmatprep.subr.bf16.mxu0 %v2664_v3  ;;  %v3179_v63 = vpack.c.bf16 %v3172_v18, %v3171_v49  ;;  %v3140_v13 = vmul.f32 %v3126_v46, %v8743_v9 }
 0x37f   : > { %v3148_v12 = vadd.f32 %v3140_v13, %v3116_v5  ;;  %v10351_v13 = vld [vmem:[#allocation43_spill] sm:$0xff] }
 0x380   : > { %v3130_v2 = vpop.permute.xlu1 %3129 }
 0x381   : > { %v3678_v41 = vpop.permute.xlu0 %3677  ;;  %v3175_v61 = vpack.c.bf16 %v3148_v12, %v3147_v4  ;;  %v3142_v18 = vmul.f32 %v3130_v2, %v8764_v43 }
 0x382   : > { %v3683_v37 = vmul.f32 %v3678_v41, %v9047_v32  ;;  %v3141_v41 = vmul.f32 %v3128_v58, %v8767_v21  ;;  %v3670_v58 = vmul.f32 %v8585_v57, %v9022_v26  ;;  %v3630_v57 = vmul.f32 %v8898_v54, %v8682_v0  ;;  %v10358_v54 = vld [vmem:[#allocation53_spill] sm:$0xff] }
 0x384   : > { %6320 = vmatpush3.bf16.xpose.msra.mxu0 %v2664_v3  ;;  %v3687_v25 = vadd.f32 %v3683_v37, %v3671_v24  ;;  %v3120_v37 = vmul.f32 %v8827_v23, %v10352_v31 }
 0x385   : > { %v3132_v28 = vpop.permute.xlu0 %3131 }
 0x386   : > { %v3143_v47 = vmul.f32 %v3132_v28, %v8799_v48 }
 0x388   : > { %v3166_v33 = vpop.permute.xlu1 %3165 }
 0x389   : > { %v3170_v51 = vmul.f32 %v3166_v33, %v9063_v30  ;;  %v9084_v60 = vpop.permute.xlu0 %3135  ;;  %v10349_v33 = vld [vmem:[#allocation46_spill] sm:$0xff] }
 0x38a   : > { %v3118_v59 = vmul.f32 %v10349_v33, %v10348_v16 }
 0x38b   : > { %v3174_v3 = vadd.f32 %v3170_v51, %v3158_v56  ;;  %6322 = vmatmul.mubr.bf16.vlgmr.msra.gmra.mxu0 %v10345_v20  ;;  %v10350_v51 = vld [vmem:[#allocation45_spill] sm:$0xff]  ;;  %v3669_v20 = vmul.f32 %v8813_v52, %v9017_v22 }
 0x38c   : > { %v3680_v1 = vpop.permute.xlu1 %3679  ;;  %6325 = vmatprep.mubr.bf16.mxu0 %v10346_v11  ;;  %v3150_v2 = vadd.f32 %v3142_v18, %v3118_v59  ;;  %v10354_v11 = vld [vmem:[#allocation48_spill] sm:$0xff] }
 0x38d   : > { %v3684_v19 = vmul.f32 %v3680_v1, %v9063_v30  ;;  %v3674_v7 = vpop.permute.xlu0 %3673  ;;  %v3180_v44 = vpack.c.bf16 %v3174_v3, %v3173_v38  ;;  %v3117_v38 = vmul.f32 %v10351_v13, %v10350_v51  ;;  %v10353_v1 = vld [vmem:[#allocation24_spill] sm:$0xff] }
 0x38e   : > { %v3681_v56 = vmul.f32 %v3674_v7, %v9010_v55  ;;  %v3119_v24 = vmul.f32 %v10354_v11, %v10353_v1  ;;  %v10357_v18 = vld [vmem:[#allocation28_spill] sm:$0xff] }
 0x38f   : > { %v3688_v45 = vadd.f32 %v3684_v19, %v3672_v15  ;;  %6341 = vmatprep.subr.bf16.mxu0 %v3180_v44  ;;  %v3149_v15 = vadd.f32 %v3141_v41, %v3117_v38 }
 0x390   : > { %v3134_v17 = vpop.permute.xlu1 %3133  ;;  %6342 = vmatpush3.bf16.xpose.msra.mxu0 %v3180_v44  ;;  %v3685_v19 = vadd.f32 %v3681_v56, %v3669_v20  ;;  %v3151_v7 = vadd.f32 %v3143_v47, %v3119_v24  ;;  %v10355_v44 = vld [vmem:[#allocation52_spill] sm:$0xff]  ;;  %v10359_v56 = vld [vmem:[#allocation50_spill] sm:$0xff] }
 0x391   : > { %v3638_v6 = vpop.permute.xlu0 %3637  ;;  %6343 = vmatprep.subr.bf16.mxu0 %v3179_v63  ;;  %v3694_v29 = vpack.c.bf16 %v3688_v45, %v3687_v25  ;;  %v3144_v46 = vmul.f32 %v3134_v17, %v8793_v8  ;;  %v3629_v52 = vmul.f32 %v10355_v44, %v8699_v53  ;;  %v3176_v12 = vpack.c.bf16 %v3150_v2, %v3149_v15 }
 0x392   : > { %v3653_v23 = vmul.f32 %v3638_v6, %v8746_v39  ;;  %v3121_v13 = vmul.f32 %v10359_v56, %v10358_v54  ;;  %v10366_v56 = vld [vmem:[#allocation26_spill] sm:$0xff] }
 0x393   : > { %6326 = vmatmul.mubr.bf16.gmra.mxu0 %v10347_v35  ;;  %v3152_v28 = vadd.f32 %v3144_v46, %v3120_v37  ;;  %v3145_v46 = vmul.f32 %v9084_v60, %v10357_v18 }
 0x394   : > { %v3138_v49 = vpop.permute.xlu1 %3137  ;;  %6345 = vmatprep.mubr.bf16.mxu0 %v3175_v61  ;;  %v10356_v61 = vld [vmem:[#allocation54_spill] sm:$0xff]  ;;  %v3661_v41 = vadd.f32 %v3653_v23, %v3629_v52 }
 0x395   : > { %v3642_v42 = vpop.permute.xlu0 %3641  ;;  %v3146_v25 = vmul.f32 %v3138_v49, %v8856_v62  ;;  %v3122_v35 = vmul.f32 %v10356_v61, %v8853_v50  ;;  %v3177_v6 = vpack.c.bf16 %v3152_v28, %v3151_v7  ;;  %v10360_v49 = vld [vmem:[#allocation55_spill] sm:$0xff]  ;;  %v10365_v61 = vld [vmem:[#allocation29_spill] sm:$0xff] }
 0x396   : > { %v3655_v33 = vmul.f32 %v3642_v42, %v8767_v21  ;;  %v3631_v38 = vmul.f32 %v10360_v49, %v10350_v51  ;;  %v10362_v28 = vld [vmem:[#allocation31_spill] sm:$0xff] }
 0x397   : > { %v3154_v37 = vadd.f32 %v3146_v25, %v3122_v35  ;;  %v3634_v15 = vmul.f32 %v10362_v28, %v10352_v31  ;;  %v4186_v35 = vmul.f32 %v10365_v61, %v9058_v36  ;;  %v10374_v61 = vld [vmem:[#allocation32_spill] sm:$0xff] }
 0x398   : > { %v3676_v3 = vpop.permute.xlu1 %3675  ;;  %6344 = vmatpush3.bf16.xpose.msra.mxu0 %v3179_v63 }
 0x399   : > { %v3682_v14 = vmul.f32 %v3676_v3, %v9027_v10  ;;  %v4192_v5 = vpop.permute.xlu0 %4191  ;;  %6365 = vmatprep.subr.bf16.mxu0 %v3694_v29  ;;  %v10361_v3 = vld [vmem:[#allocation30_spill] sm:$0xff] }
 0x39a   : > { %v3632_v2 = vmul.f32 %v10361_v3, %v10348_v16 }
 0x39b   : > { %v3686_v63 = vadd.f32 %v3682_v14, %v3670_v58  ;;  %v3153_v58 = vadd.f32 %v3145_v46, %v3121_v13  ;;  %v3663_v14 = vadd.f32 %v3655_v33, %v3631_v38  ;;  %v3635_v13 = vmul.f32 %v10366_v56, %v10358_v54 }
 0x39c   : > { %v3640_v34 = vpop.permute.xlu1 %3639 }
 0x39d   : > { %v3654_v45 = vmul.f32 %v3640_v34, %v8743_v9  ;;  %v3646_v4 = vpop.permute.xlu0 %3645  ;;  %v3693_v17 = vpack.c.bf16 %v3686_v63, %v3685_v19  ;;  %v3178_v52 = vpack.c.bf16 %v3154_v37, %v3153_v58 }
 0x39e   : > { %v3657_v11 = vmul.f32 %v3646_v4, %v8799_v48 }
 0x39f   : > { %v3662_v59 = vadd.f32 %v3654_v45, %v3630_v57  ;;  %6346 = vmatmul.mubr.bf16.vlgmr.msra.gmra.mxu0 %v3176_v12  ;;  %v4197_v57 = vmul.f32 %v4192_v5, %v9047_v32  ;;  %v10364_v45 = vld [vmem:[#allocation47_spill] sm:$0xff] }
 0x3a0   : > { %v3644_v47 = vpop.permute.xlu1 %3643  ;;  %6349 = vmatprep.mubr.bf16.mxu0 %v3177_v6  ;;  %6366 = vmatpush3.bf16.xpose.msra.mxu0 %v3694_v29  ;;  %v10363_v29 = vld [vmem:[#allocation25_spill] sm:$0xff]  ;;  %v4185_v4 = vmul.f32 %v10364_v45, %v9053_v40 }
 0x3a1   : > { %v3656_v60 = vmul.f32 %v3644_v47, %v8764_v43  ;;  %v3650_v20 = vpop.permute.xlu0 %3649  ;;  %6367 = vmatprep.subr.bf16.mxu0 %v3693_v17  ;;  %v3689_v42 = vpack.c.bf16 %v3662_v59, %v3661_v41  ;;  %v3633_v23 = vmul.f32 %v10363_v29, %v10353_v1  ;;  %v10371_v29 = vld [vmem:[#allocation37_spill] sm:$0xff] }
 0x3a2   : > { %v4201_v33 = vadd.f32 %v4197_v57, %v4185_v4  ;;  %v3659_v59 = vmul.f32 %v3650_v20, %v10357_v18  ;;  %v10369_v20 = vld [vmem:[#allocation42_spill] sm:$0xff] }
 0x3a3   : > { %v3664_v24 = vadd.f32 %v3656_v60, %v3632_v2  ;;  %v3665_v34 = vadd.f32 %v3657_v11, %v3633_v23  ;;  %v10368_v2 = vld [vmem:[#allocation49_spill] sm:$0xff]  ;;  %v4144_v23 = vmul.f32 %v10371_v29, %v8682_v0 }
 0x3a4   : > { %v3648_v19 = vpop.permute.xlu1 %3647  ;;  %v3667_v47 = vadd.f32 %v3659_v59, %v3635_v13  ;;  %v4183_v60 = vmul.f32 %v10368_v2, %v9017_v22 }
 0x3a5   : > { %v3690_v63 = vpack.c.bf16 %v3664_v24, %v3663_v14  ;;  %v3658_v7 = vmul.f32 %v3648_v19, %v8793_v8  ;;  %v4188_v44 = vpop.permute.xlu0 %4187 }
 0x3a6   : > { %v4195_v36 = vmul.f32 %v4188_v44, %v9010_v55 }
 0x3a7   : > { %v3666_v12 = vadd.f32 %v3658_v7, %v3634_v15  ;;  %6350 = vmatmul.mubr.bf16.gmra.mxu0 %v3178_v52  ;;  %v10370_v15 = vld [vmem:[#allocation27_spill] sm:$0xff] }
 0x3a8   : > { %v4194_v25 = vpop.permute.xlu1 %4193  ;;  %6368 = vmatpush3.bf16.xpose.msra.mxu0 %v3693_v17  ;;  %6369 = vmatprep.mubr.bf16.mxu0 %v3689_v42  ;;  %v10367_v17 = vld [vmem:[#allocation33_spill] sm:$0xff]  ;;  %v4184_v42 = vmul.f32 %v10369_v20, %v9022_v26  ;;  %v4199_v11 = vadd.f32 %v4195_v36, %v4183_v60  ;;  %v4143_v19 = vmul.f32 %v10370_v15, %v8699_v53  ;;  %v10373_v53 = vld [vmem:[#allocation36_spill] sm:$0xff] }
 0x3a9   : > { %v4198_v6 = vmul.f32 %v4194_v25, %v9063_v30  ;;  %v3691_v46 = vpack.c.bf16 %v3666_v12, %v3665_v34  ;;  %v4152_v41 = vpop.permute.xlu0 %4151  ;;  %v3636_v49 = vmul.f32 %v10367_v17, %v8853_v50  ;;  %v4146_v34 = vmul.f32 %v10373_v53, %v10348_v16 }
 0x3aa   : > { %v4167_v24 = vmul.f32 %v4152_v41, %v8746_v39  ;;  %v10372_v39 = vld [vmem:[#allocation35_spill] sm:$0xff] }
 0x3ab   : > { %v4202_v32 = vadd.f32 %v4198_v6, %v4186_v35  ;;  %v4145_v57 = vmul.f32 %v10372_v39, %v10350_v51  ;;  %v4147_v35 = vmul.f32 %v10374_v61, %v10353_v1 }
 0x3ac   : > { %v3652_v5 = vpop.permute.xlu1 %3651  ;;  %v4175_v44 = vadd.f32 %v4167_v24, %v4143_v19 }
 0x3ad   : > { %v3660_v40 = vmul.f32 %v3652_v5, %v8856_v62  ;;  %v4208_v38 = vpack.c.bf16 %v4202_v32, %v4201_v33  ;;  %v4156_v37 = vpop.permute.xlu0 %4155  ;;  %v10377_v5 = vld [vmem:[#allocation56_spill] sm:$0xff] }
 0x3ae   : > { %v4169_v26 = vmul.f32 %v4156_v37, %v8767_v21  ;;  %v4150_v56 = vmul.f32 %v10377_v5, %v8853_v50 }
 0x3af   : > { %v3668_v30 = vadd.f32 %v3660_v40, %v3636_v49  ;;  %6370 = vmatmul.mubr.bf16.vlgmr.msra.gmra.mxu0 %v3690_v63  ;;  %6389 = vmatprep.subr.bf16.mxu0 %v4208_v38 }
 0x3b0   : > { %v4190_v3 = vpop.permute.xlu1 %4189  ;;  %6373 = vmatprep.mubr.bf16.mxu0 %v3691_v46  ;;  %6390 = vmatpush3.bf16.xpose.msra.mxu0 %v4208_v38  ;;  %v10375_v46 = vld [vmem:[#allocation38_spill] sm:$0xff] }
 0x3b1   : > { %v4196_v58 = vmul.f32 %v4190_v3, %v9027_v10  ;;  %v3692_v14 = vpack.c.bf16 %v3668_v30, %v3667_v47  ;;  %v4160_v7 = vpop.permute.xlu0 %4159  ;;  %v4148_v51 = vmul.f32 %v10375_v46, %v10352_v31 }
 0x3b2   : > { %v4171_v25 = vmul.f32 %v4160_v7, %v8799_v48  ;;  %v10376_v48 = vld [vmem:[#allocation34_spill] sm:$0xff] }
 0x3b3   : > { %v4200_v55 = vadd.f32 %v4196_v58, %v4184_v42  ;;  %v4149_v32 = vmul.f32 %v10376_v48, %v10358_v54 }
 0x3b4   : > { %v4154_v28 = vpop.permute.xlu1 %4153  ;;  %v4179_v16 = vadd.f32 %v4171_v25, %v4147_v35 }
 0x3b5   : > { %v4168_v63 = vmul.f32 %v4154_v28, %v8743_v9  ;;  %v4207_v22 = vpack.c.bf16 %v4200_v55, %v4199_v11  ;;  %v4177_v9 = vadd.f32 %v4169_v26, %v4145_v57  ;;  %v4164_v21 = vpop.permute.xlu0 %4163 }
 0x3b7   : > { %v4176_v10 = vadd.f32 %v4168_v63, %v4144_v23  ;;  %6374 = vmatmul.mubr.bf16.gmra.mxu0 %v3692_v14  ;;  %6391 = vmatprep.subr.bf16.mxu0 %v4207_v22 }
 0x3b8   : > { %v4158_v52 = vpop.permute.xlu1 %4157  ;;  %6392 = vmatpush3.bf16.xpose.msra.mxu0 %v4207_v22 }
 0x3b9   : > { %v4170_v0 = vmul.f32 %v4158_v52, %v8764_v43  ;;  %v4203_v12 = vpack.c.bf16 %v4176_v10, %v4175_v44  ;;  %v4173_v43 = vmul.f32 %v4164_v21, %v10357_v18 }
 0x3bb   : > { %v4178_v45 = vadd.f32 %v4170_v0, %v4146_v34  ;;  %6393 = vmatprep.mubr.bf16.mxu0 %v4203_v12  ;;  %v4181_v17 = vadd.f32 %v4173_v43, %v4149_v32 }
 0x3bc   : > { %v4162_v4 = vpop.permute.xlu1 %4161 }
 0x3bd   : > { %v4204_v6 = vpack.c.bf16 %v4178_v45, %v4177_v9  ;;  %v4172_v41 = vmul.f32 %v4162_v4, %v8793_v8 }
 0x3bf   : > { %v4180_v33 = vadd.f32 %v4172_v41, %v4148_v51  ;;  %6394 = vmatmul.mubr.bf16.vlgmr.msra.gmra.mxu0 %v4204_v6 }
 0x3c0   : > { %v4166_v59 = vpop.permute.xlu1 %4165 }
 0x3c1   : > { %v4174_v1 = vmul.f32 %v4166_v59, %v8856_v62  ;;  %v4205_v13 = vpack.c.bf16 %v4180_v33, %v4179_v16 }
 0x3c3   : > { %v4182_v49 = vadd.f32 %v4174_v1, %v4150_v56  ;;  %6397 = vmatprep.mubr.bf16.mxu0 %v4205_v13 }
 0x3c5   : > { %v4206_v31 = vpack.c.bf16 %v4182_v49, %v4181_v17 }
 0x3c7   : > { %6398 = vmatmul.mubr.bf16.gmra.mxu0 %v4206_v31 }
 0x44b   : > { %v9192_v8 = vpop.f32.mrf.mxu0 }
 0x44c   : > { %v2738_v62 = vsel %vm2731_vm0, %v9192_v8, -inf }
 0x44d   : > { %v9194_v18 = vpop.f32.mrf.mxu0 }
 0x44e   : > { %v2732_v40 = vsel %vm2731_vm0, %v9194_v18, -inf }
 0x44f   : > { %2733 = vmax.xlane.f32.xlu0 %v2732_v40  ;;  %v9198_v54 = vpop.f32.mrf.mxu0 }
 0x450   : > { %v2741_v30 = vsel %vm2731_vm0, %v9198_v54, -inf }
 0x451   : > { %v9200_v50 = vpop.f32.mrf.mxu0 }
 0x452   : > { %v2735_v38 = vsel %vm2731_vm0, %v9200_v50, -inf }
 0x453   : > { %2739 = vmax.xlane.f32.xlu0 %v2738_v62  ;;  %2736 = vmax.xlane.f32.xlu1 %v2735_v38  ;;  %v9206_v47 = vpop.f32.mrf.mxu0  ;;  %v9320_v62 = vpop.f32.mrf.mxu1 }
 0x454   : > { %v2750_v20 = vsel %vm2731_vm0, %v9206_v47, -inf }
 0x455   : > { %v9208_v36 = vpop.f32.mrf.mxu0 }
 0x456   : > { %v2744_v2 = vsel %vm2731_vm0, %v9208_v36, -inf }
 0x457   : > { %2742 = vmax.xlane.f32.xlu0 %v2741_v30  ;;  %v9212_v37 = vpop.f32.mrf.mxu0 }
 0x458   : > { %v2753_v42 = vsel %vm2731_vm0, %v9212_v37, -inf }
 0x459   : > { %v9214_v3 = vpop.f32.mrf.mxu0 }
 0x45a   : > { %v2747_v60 = vsel %vm2731_vm0, %v9214_v3, -inf }
 0x45b   : > { %2745 = vmax.xlane.f32.xlu0 %v2744_v2  ;;  %2748 = vmax.xlane.f32.xlu1 %v2747_v60  ;;  %v9323_v60 = vpop.f32.mrf.mxu1 }
 0x45f   : > { %2751 = vmax.xlane.f32.xlu0 %v2750_v20  ;;  %2754 = vmax.xlane.f32.xlu1 %v2753_v42  ;;  %v9224_v58 = vpop.f32.mrf.mxu0 }
 0x460   : > { %v3252_v28 = vsel %vm2731_vm0, %v9224_v58, -inf }
 0x461   : > { %v9226_v14 = vpop.f32.mrf.mxu0 }
 0x462   : > { %v3246_v11 = vsel %vm2731_vm0, %v9226_v14, -inf }
 0x463   : > { %3247 = vmax.xlane.f32.xlu0 %v3246_v11  ;;  %v9230_v24 = vpop.f32.mrf.mxu0 }
 0x464   : > { %v3255_v23 = vsel %vm2731_vm0, %v9230_v24, -inf }
 0x465   : > { %v9232_v55 = vpop.f32.mrf.mxu0 }
 0x466   : > { %v3249_v15 = vsel %vm2731_vm0, %v9232_v55, -inf }
 0x467   : > { %3253 = vmax.xlane.f32.xlu0 %v3252_v28  ;;  %3250 = vmax.xlane.f32.xlu1 %v3249_v15  ;;  %v9238_v19 = vpop.f32.mrf.mxu0 }
 0x468   : > { %v3264_v44 = vsel %vm2731_vm0, %v9238_v19, -inf }
 0x469   : > { %v9240_v29 = vpop.f32.mrf.mxu0 }
 0x46a   : > { %v3258_v63 = vsel %vm2731_vm0, %v9240_v29, -inf }
 0x46b   : > { %3256 = vmax.xlane.f32.xlu1 %v3255_v23  ;;  %3259 = vmax.xlane.f32.xlu0 %v3258_v63  ;;  %v9246_v22 = vpop.f32.mrf.mxu0  ;;  %v9327_v23 = vpop.f32.mrf.mxu1 }
 0x46c   : > { %v3267_v39 = vsel %vm2731_vm0, %v9246_v22, -inf }
 0x46d   : > { %v9248_v7 = vpop.f32.mrf.mxu0 }
 0x46e   : > { %v3261_v26 = vsel %vm2731_vm0, %v9248_v7, -inf }
 0x46f   : > { %3265 = vmax.xlane.f32.xlu0 %v3264_v44  ;;  %3262 = vmax.xlane.f32.xlu1 %v3261_v26  ;;  %v9254_v10 = vpop.f32.mrf.mxu0 }
 0x470   : > { %v3766_v0 = vsel %vm2731_vm0, %v9254_v10, -inf }
 0x471   : > { %v9256_v52 = vpop.f32.mrf.mxu0 }
 0x472   : > { %v3760_v57 = vsel %vm2731_vm0, %v9256_v52, -inf }
 0x473   : > { %3268 = vmax.xlane.f32.xlu1 %v3267_v39  ;;  %3761 = vmax.xlane.f32.xlu0 %v3760_v57  ;;  %v9262_v53 = vpop.f32.mrf.mxu0 }
 0x474   : > { %v3769_v45 = vsel %vm2731_vm0, %v9262_v53, -inf }
 0x475   : > { %v9264_v34 = vpop.f32.mrf.mxu0 }
 0x476   : > { %v3763_v12 = vsel %vm2731_vm0, %v9264_v34, -inf }
 0x477   : > { %3767 = vmax.xlane.f32.xlu0 %v3766_v0  ;;  %3764 = vmax.xlane.f32.xlu1 %v3763_v12  ;;  %v9270_v9 = vpop.f32.mrf.mxu0 }
 0x478   : > { %v3778_v35 = vsel %vm2731_vm0, %v9270_v9, -inf }
 0x479   : > { %v9272_v25 = vpop.f32.mrf.mxu0 }
 0x47a   : > { %v3772_v21 = vsel %vm2731_vm0, %v9272_v25, -inf }
 0x47b   : > { %3770 = vmax.xlane.f32.xlu1 %v3769_v45  ;;  %3773 = vmax.xlane.f32.xlu0 %v3772_v21  ;;  %v9278_v4 = vpop.f32.mrf.mxu0 }
 0x47c   : > { %v3781_v41 = vsel %vm2731_vm0, %v9278_v4, -inf }
 0x47d   : > { %v9280_v61 = vpop.f32.mrf.mxu0 }
 0x47e   : > { %v3775_v6 = vsel %vm2731_vm0, %v9280_v61, -inf }
 0x47f   : > { %3779 = vmax.xlane.f32.xlu0 %v3778_v35  ;;  %3776 = vmax.xlane.f32.xlu1 %v3775_v6  ;;  %v9286_v46 = vpop.f32.mrf.mxu0 }
 0x480   : > { %v4280_v59 = vsel %vm2731_vm0, %v9286_v46, -inf }
 0x481   : > { %v9288_v51 = vpop.f32.mrf.mxu0 }
 0x482   : > { %v4274_v16 = vsel %vm2731_vm0, %v9288_v51, -inf }
 0x483   : > { %3782 = vmax.xlane.f32.xlu1 %v3781_v41  ;;  %4275 = vmax.xlane.f32.xlu0 %v4274_v16  ;;  %v9294_v43 = vpop.f32.mrf.mxu0 }
 0x484   : > { %v4283_v56 = vsel %vm2731_vm0, %v9294_v43, -inf }
 0x485   : > { %v9296_v33 = vpop.f32.mrf.mxu0 }
 0x486   : > { %v4277_v48 = vsel %vm2731_vm0, %v9296_v33, -inf }
 0x487   : > { %4281 = vmax.xlane.f32.xlu0 %v4280_v59  ;;  %4278 = vmax.xlane.f32.xlu1 %v4277_v48  ;;  %v9302_v32 = vpop.f32.mrf.mxu0 }
 0x488   : > { %v4292_v49 = vsel %vm2731_vm0, %v9302_v32, -inf }
 0x489   : > { %v9304_v5 = vpop.f32.mrf.mxu0 }
 0x48a   : > { %v4286_v1 = vsel %vm2731_vm0, %v9304_v5, -inf }
 0x48b   : > { %4284 = vmax.xlane.f32.xlu1 %v4283_v56  ;;  %4287 = vmax.xlane.f32.xlu0 %v4286_v1  ;;  %v9310_v13 = vpop.f32.mrf.mxu0 }
 0x48c   : > { %v4295_v40 = vsel %vm2731_vm0, %v9310_v13, -inf }
 0x48d   : > { %v9312_v17 = vpop.f32.mrf.mxu0 }
 0x48e   : > { %v4289_v31 = vsel %vm2731_vm0, %v9312_v17, -inf }
 0x48f   : > { %4293 = vmax.xlane.f32.xlu0 %v4292_v49  ;;  %4290 = vmax.xlane.f32.xlu1 %v4289_v31  ;;  %v10378_v49 = vld [vmem:[#allocation19_spill] sm:$0xff] }
 0x490   : > { %v1805_v31 = vsub.s32 6, %v10378_v49 }
 0x493   : > { %4296 = vmax.xlane.f32.xlu1 %v4295_v40 }
 0x4d8   : > { %v2734_v38 = vpop.xlane.xlu0 %2733 }
 0x4d9   : > { %v2756_v30 = vsub.f32 %v9194_v18, %v2734_v38  ;;  %v9330_v18 = vpop.f32.mrf.mxu1 }
 0x4db   : > { %v2764_v2 = vmul.f32 1.442695, %v2756_v30  ;;  %v2342_v21 = vpop.f32.mrf.mxu1 }
 0x4dc   : > { %v2737_v20 = vpop.xlane.xlu1 %2736  ;;  %v2740_v42 = vpop.xlane.xlu0 %2739 }
 0x4dd   : > { %6980 = vpow2.f32 %v2764_v2  ;;  %v2757_v11 = vsub.f32 %v9200_v50, %v2737_v20  ;;  %v2758_v28 = vsub.f32 %v9192_v8, %v2740_v42  ;;  %v9337_v1 = vpop.f32.mrf.mxu1 }
 0x4df   : > { %v2766_v15 = vmul.f32 1.442695, %v2757_v11  ;;  %v2768_v63 = vmul.f32 1.442695, %v2758_v28  ;;  %v2346_v30 = vpop.f32.mrf.mxu1 }
 0x4e0   : > { %v2743_v44 = vpop.xlane.xlu0 %2742 }
 0x4e1   : > { %6982 = vpow2.f32 %v2766_v15  ;;  %v2759_v26 = vsub.f32 %v9198_v54, %v2743_v44 }
 0x4e2   : > { %6984 = vpow2.f32 %v2768_v63 }
 0x4e3   : > { %v2770_v39 = vmul.f32 1.442695, %v2759_v26 }
 0x4e4   : > { %v2749_v57 = vpop.xlane.xlu1 %2748  ;;  %v2746_v0 = vpop.xlane.xlu0 %2745 }
 0x4e5   : > { %6986 = vpow2.f32 %v2770_v39  ;;  %v2761_v12 = vsub.f32 %v9214_v3, %v2749_v57  ;;  %v2760_v50 = vsub.f32 %v9208_v36, %v2746_v0 }
 0x4e7   : > { %v2774_v8 = vmul.f32 1.442695, %v2761_v12  ;;  %v2772_v45 = vmul.f32 1.442695, %v2760_v50 }
 0x4e8   : > { %v2755_v35 = vpop.xlane.xlu1 %2754  ;;  %v2752_v6 = vpop.xlane.xlu0 %2751 }
 0x4e9   : > { %6988 = vpow2.f32 %v2774_v8  ;;  %v2763_v41 = vsub.f32 %v9212_v37, %v2755_v35  ;;  %v2762_v54 = vsub.f32 %v9206_v47, %v2752_v6 }
 0x4ea   : > { %v6981_v16 = vpop.eup %6980  ;;  %6990 = vpow2.f32 %v2772_v45 }
 0x4eb   : > { %v2778_v59 = vmul.f32 1.442695, %v2763_v41  ;;  %v2776_v48 = vmul.f32 1.442695, %v2762_v54  ;;  %v2780_v56 = vsel %vm2731_vm0, %v6981_v16, 0.0 }
 0x4ec   : > { %2781 = vadd.xlane.f32.xlu0 %v2780_v56  ;;  %v3248_v36 = vpop.xlane.xlu0 %3247 }
 0x4ed   : > { %6992 = vpow2.f32 %v2778_v59  ;;  %v3270_v3 = vsub.f32 %v9226_v14, %v3248_v36  ;;  %v10379_v14 = vld [vmem:[#allocation57_spill] sm:$0xff] }
 0x4ee   : > { %v6983_v40 = vpop.eup %6982  ;;  %6994 = vpow2.f32 %v2776_v48  ;;  %v9348_v15 = vrot.slane %v10379_v14, %v1805_v31 }
 0x4ef   : > { %v3278_v37 = vmul.f32 1.442695, %v3270_v3  ;;  %v2783_v47 = vsel %vm2731_vm0, %v6983_v40, 0.0  ;;  %v2812_v38 = vpack.c.bf16 %v6983_v40, %v6981_v16  ;;  %v9342_v42 = vpop.eup %6984 }
 0x4f0   : > { %v3251_v2 = vpop.xlane.xlu1 %3250  ;;  %2784 = vadd.xlane.f32.xlu1 %v2783_v47  ;;  %v3254_v20 = vpop.xlane.xlu0 %3253  ;;  %v2343_v39 = vadd.f32 %v2342_v21, %v9348_v15  ;;  %v2347_v57 = vadd.f32 %v2346_v30, %v9348_v15  ;;  %v10380_v21 = vld [vmem:[#allocation58_spill] sm:$0xff] }
 0x4f1   : > { %6996 = vpow2.f32 %v3278_v37  ;;  %v3271_v11 = vsub.f32 %v9232_v55, %v3251_v2  ;;  %v3272_v28 = vsub.f32 %v9224_v58, %v3254_v20  ;;  %6333 = vmatprep.mubr.msk.bf16.mxu1 %vm2731_vm0, %v2812_v38  ;;  %v1809_v2 = vsub.s32 7, %v10378_v49 }
 0x4f2   : > { %v9350_v63 = vpop.eup %6986  ;;  %v9365_v6 = vpack.c.bf16 %v2347_v57, %v2343_v39 }
 0x4f3   : > { %v2813_v44 = vpack.c.bf16 %v9350_v63, %v9342_v42  ;;  %v3280_v26 = vmul.f32 1.442695, %v3271_v11  ;;  %v3282_v0 = vmul.f32 1.442695, %v3272_v28  ;;  %v9391_v49 = vrot.slane %v10379_v14, %v1809_v2 }
 0x4f4   : > { %v3257_v12 = vpop.xlane.xlu1 %3256  ;;  %v3260_v55 = vpop.xlane.xlu0 %3259 }
 0x4f5   : > { %6998 = vpow2.f32 %v3280_v26  ;;  %v3273_v58 = vsub.f32 %v9230_v24, %v3257_v12  ;;  %v3274_v50 = vsub.f32 %v9240_v29, %v3260_v55  ;;  %6334 = vmatmul.mubr.msk.bf16.vlgmr.msra.gmra.mxu1 %vm2731_vm0, %v2813_v44 }
 0x4f6   : > { %v9359_v8 = vpop.eup %6988  ;;  %6354 = vmatpush3.bf16.msra.mxu1 %v9042_v27  ;;  %7000 = vpow2.f32 %v3282_v0  ;;  %v2333_v0 = vadd.f32 %v9320_v62, %v9348_v15 }
 0x4f7   : > { %v9362_v45 = vpop.eup %6990  ;;  %v3284_v35 = vmul.f32 1.442695, %v3273_v58  ;;  %6355 = vmatprep.subr.bf16.mxu1 %v10380_v21  ;;  %v3286_v41 = vmul.f32 1.442695, %v3274_v50 }
 0x4f8   : > { %v3263_v54 = vpop.xlane.xlu1 %3262  ;;  %v3266_v16 = vpop.xlane.xlu0 %3265  ;;  %v2814_v24 = vpack.c.bf16 %v9359_v8, %v9362_v45 }
 0x4f9   : > { %7002 = vpow2.f32 %v3284_v35  ;;  %v3275_v29 = vsub.f32 %v9248_v7, %v3263_v54  ;;  %v3276_v59 = vsub.f32 %v9238_v19, %v3266_v16 }
 0x4fa   : > { %v9371_v27 = vpop.eup %6992  ;;  %6337 = vmatprep.mubr.msk.bf16.mxu1 %vm2731_vm0, %v2814_v24  ;;  %6356 = vmatpush3.bf16.msra.mxu1 %v10380_v21  ;;  %7004 = vpow2.f32 %v3286_v41  ;;  %v2345_v21 = vadd.f32 %v9337_v1, %v9391_v49 }
 0x4fb   : > { %v9375_v48 = vpop.eup %6994  ;;  %v3288_v56 = vmul.f32 1.442695, %v3275_v29  ;;  %6377 = vmatprep.subr.bf16.mxu1 %v9365_v6  ;;  %v3290_v36 = vmul.f32 1.442695, %v3276_v59 }
 0x4fc   : > { %v3269_v3 = vpop.xlane.xlu1 %3268  ;;  %v3762_v31 = vpop.xlane.xlu0 %3761  ;;  %v2815_v7 = vpack.c.bf16 %v9371_v27, %v9375_v48 }
 0x4fd   : > { %7006 = vpow2.f32 %v3288_v56  ;;  %v3277_v19 = vsub.f32 %v9246_v22, %v3269_v3  ;;  %v3784_v40 = vsub.f32 %v9256_v52, %v3762_v31  ;;  %v2348_v52 = vpop.f32.mrf.mxu1 }
 0x4fe   : > { %v6997_v37 = vpop.eup %6996  ;;  %6338 = vmatmul.mubr.msk.bf16.gmra.mxu1 %vm2731_vm0, %v2815_v7  ;;  %7008 = vpow2.f32 %v3290_v36  ;;  %v2349_v41 = vadd.f32 %v2348_v52, %v9391_v49  ;;  %v2335_v52 = vadd.f32 %v9323_v60, %v9391_v49 }
 0x4ff   : > { %v3292_v47 = vmul.f32 1.442695, %v3277_v19  ;;  %v3792_v38 = vmul.f32 1.442695, %v3784_v40  ;;  %v3294_v30 = vsel %vm2731_vm0, %v6997_v37, 0.0 }
 0x500   : > { %v3765_v20 = vpop.xlane.xlu1 %3764  ;;  %3295 = vadd.xlane.f32.xlu0 %v3294_v30  ;;  %v3768_v11 = vpop.xlane.xlu0 %3767  ;;  %v4359_v1 = vpack.c.bf16 %v2349_v41, %v2345_v21 }
 0x501   : > { %7010 = vpow2.f32 %v3292_v47  ;;  %v3785_v28 = vsub.f32 %v9264_v34, %v3765_v20  ;;  %v3786_v22 = vsub.f32 %v9254_v10, %v3768_v11  ;;  %v2337_v10 = vadd.f32 %v9327_v23, %v9348_v15 }
 0x502   : > { %v6999_v44 = vpop.eup %6998  ;;  %7012 = vpow2.f32 %v3792_v38 }
 0x503   : > { %v3794_v26 = vmul.f32 1.442695, %v3785_v28  ;;  %v3297_v39 = vsel %vm2731_vm0, %v6999_v44, 0.0  ;;  %v3326_v57 = vpack.c.bf16 %v6999_v44, %v6997_v37  ;;  %v3796_v12 = vmul.f32 1.442695, %v3786_v22  ;;  %v9393_v34 = vpop.eup %7000 }
 0x504   : > { %v3771_v55 = vpop.xlane.xlu1 %3770  ;;  %3298 = vadd.xlane.f32.xlu1 %v3297_v39  ;;  %v3774_v58 = vpop.xlane.xlu0 %3773 }
 0x505   : > { %7014 = vpow2.f32 %v3794_v26  ;;  %v3787_v50 = vsub.f32 %v9262_v53, %v3771_v55  ;;  %v3788_v35 = vsub.f32 %v9272_v25, %v3774_v58  ;;  %6357 = vmatprep.mubr.msk.bf16.mxu1 %vm2731_vm0, %v3326_v57  ;;  %v3844_v25 = vpack.c.bf16 %v2337_v10, %v2333_v0 }
 0x506   : > { %v9400_v62 = vpop.eup %7002  ;;  %7016 = vpow2.f32 %v3796_v12 }
 0x507   : > { %v3327_v14 = vpack.c.bf16 %v9400_v62, %v9393_v34  ;;  %v3798_v54 = vmul.f32 1.442695, %v3787_v50  ;;  %v3800_v23 = vmul.f32 1.442695, %v3788_v35  ;;  %v9407_v53 = vpop.eup %7004 }
 0x508   : > { %v3777_v15 = vpop.xlane.xlu1 %3776  ;;  %v3780_v16 = vpop.xlane.xlu0 %3779 }
 0x509   : > { %7018 = vpow2.f32 %v3798_v54  ;;  %v3789_v24 = vsub.f32 %v9280_v61, %v3777_v15  ;;  %v3790_v29 = vsub.f32 %v9270_v9, %v3780_v16  ;;  %6358 = vmatmul.mubr.msk.bf16.vlgmr.msra.gmra.mxu1 %vm2731_vm0, %v3327_v14  ;;  %v6670_v15 = vld [vmem:[%s10145_s6 + $0xe4] ss:$16 sps:$4 sm:$0xff]   ;;  %v6668_v16 = vld [vmem:[%s10145_s6 + $0xe0] ss:$16 sps:$4 sm:$0xff]  }
 0x50a   : > { %v9412_v59 = vpop.eup %7006  ;;  %6378 = vmatpush3.bf16.msra.mxu1 %v9365_v6  ;;  %7020 = vpow2.f32 %v3800_v23  ;;  %5371 = vmatprep.subr.bf16.mxu0 %v6670_v15  ;;  %v6709_v15 = vld [vmem:[%s10145_s6 + $0x2a4] ss:$16 sps:$4 sm:$0xff]  }
 0x50b   : > { %v3802_v56 = vmul.f32 1.442695, %v3789_v24  ;;  %6379 = vmatprep.subr.bf16.mxu1 %v3844_v25  ;;  %v3328_v36 = vpack.c.bf16 %v9412_v59, %v9407_v53  ;;  %v3804_v3 = vmul.f32 1.442695, %v3790_v29  ;;  %v9417_v19 = vpop.eup %7008  ;;  %v6673_v24 = vld [vmem:[%s10145_s6 + $0xc4] ss:$16 sps:$4 sm:$0xff]   ;;  %5372 = vmatpush1.bf16.msra.mxu0 %v6668_v16 }
 0x50c   : > { %v3783_v31 = vpop.xlane.xlu1 %3782  ;;  %v4276_v7 = vpop.xlane.xlu0 %4275  ;;  %5373 = vmatprep.subr.bf16.mxu0 %v6673_v24  ;;  %v6712_v24 = vld [vmem:[%s10145_s6 + $0x184] ss:$16 sps:$4 sm:$0xff]  }
 0x50d   : > { %7022 = vpow2.f32 %v3802_v56  ;;  %v3791_v9 = vsub.f32 %v9278_v4, %v3783_v31  ;;  %v4298_v61 = vsub.f32 %v9288_v51, %v4276_v7  ;;  %6361 = vmatprep.mubr.msk.bf16.mxu1 %vm2731_vm0, %v3328_v36 }
 0x50e   : > { %v9422_v6 = vpop.eup %7010  ;;  %6380 = vmatpush3.bf16.msra.mxu1 %v3844_v25  ;;  %7024 = vpow2.f32 %v3804_v3  ;;  %v6676_v3 = vld [vmem:[%s10145_s6 + $0xa4] ss:$16 sps:$4 sm:$0xff]  }
 0x50f   : > { %v7013_v40 = vpop.eup %7012  ;;  %v3806_v37 = vmul.f32 1.442695, %v3791_v9  ;;  %v4306_v47 = vmul.f32 1.442695, %v4298_v61  ;;  %6401 = vmatprep.subr.bf16.mxu1 %v4359_v1  ;;  %v3329_v38 = vpack.c.bf16 %v9422_v6, %v9417_v19  ;;  %v6674_v61 = vld [vmem:[%s10145_s6 + $0xa0] ss:$16 sps:$4 sm:$0xff]  }
 0x510   : > { %v4279_v30 = vpop.xlane.xlu1 %4278  ;;  %v3808_v2 = vsel %vm2731_vm0, %v7013_v40, 0.0  ;;  %v4282_v20 = vpop.xlane.xlu0 %4281 }
 0x511   : > { %7026 = vpow2.f32 %v3806_v37  ;;  %v4299_v4 = vsub.f32 %v9296_v33, %v4279_v30  ;;  %3809 = vadd.xlane.f32.xlu0 %v3808_v2  ;;  %v4300_v51 = vsub.f32 %v9286_v46, %v4282_v20  ;;  %6362 = vmatmul.mubr.msk.bf16.gmra.mxu1 %vm2731_vm0, %v3329_v38  ;;  %v2339_v46 = vadd.f32 %v9330_v18, %v9391_v49  ;;  %v6679_v20 = vld [vmem:[%s10145_s6 + $0x84] ss:$16 sps:$4 sm:$0xff]  }
 0x512   : > { %v7015_v11 = vpop.eup %7014  ;;  %7028 = vpow2.f32 %v4306_v47  ;;  %v2789_v30 = vsel %vm2731_vm0, %v9350_v63, 0.0  ;;  %v3300_v2 = vsel %vm2731_vm0, %v9393_v34, 0.0  ;;  %v3303_v63 = vsel %vm2731_vm0, %v9400_v62, 0.0  ;;  %v6680_v62 = vld [vmem:[%s10145_s6 + $0x60] ss:$16 sps:$4 sm:$0xff]  }
 0x513   : > { %v4308_v28 = vmul.f32 1.442695, %v4299_v4  ;;  %v3811_v22 = vsel %vm2731_vm0, %v7015_v11, 0.0  ;;  %v3840_v44 = vpack.c.bf16 %v7015_v11, %v7013_v40  ;;  %v4310_v26 = vmul.f32 1.442695, %v4300_v51  ;;  %v9433_v0 = vpop.eup %7016 }
 0x514   : > { %v4285_v39 = vpop.xlane.xlu1 %4284  ;;  %3812 = vadd.xlane.f32.xlu1 %v3811_v22  ;;  %v4288_v57 = vpop.xlane.xlu0 %4287  ;;  %v4358_v18 = vpack.c.bf16 %v2339_v46, %v2335_v52  ;;  %v2786_v40 = vsel %vm2731_vm0, %v9342_v42, 0.0  ;;  %v6677_v4 = vld [vmem:[%s10145_s6 + $0x80] ss:$16 sps:$4 sm:$0xff]   ;;  %v3814_v11 = vsel %vm2731_vm0, %v9433_v0, 0.0 }
 0x515   : > { %7030 = vpow2.f32 %v4308_v28  ;;  %v4301_v33 = vsub.f32 %v9294_v43, %v4285_v39  ;;  %v4302_v12 = vsub.f32 %v9304_v5, %v4288_v57  ;;  %6381 = vmatprep.mubr.msk.bf16.mxu1 %vm2731_vm0, %v3840_v44  ;;  %v6682_v28 = vld [vmem:[%s10145_s6 + $0x64] ss:$16 sps:$4 sm:$0xff]  }
 0x516   : > { %v9440_v55 = vpop.eup %7018  ;;  %7032 = vpow2.f32 %v4310_v26  ;;  %v6685_v57 = vld [vmem:[%s10145_s6 + $0x44] ss:$16 sps:$4 sm:$0xff]  }
 0x517   : > { %v3841_v60 = vpack.c.bf16 %v9440_v55, %v9433_v0  ;;  %v4312_v58 = vmul.f32 1.442695, %v4301_v33  ;;  %v4314_v10 = vmul.f32 1.442695, %v4302_v12  ;;  %v9444_v14 = vpop.eup %7020  ;;  %v3817_v52 = vsel %vm2731_vm0, %v9440_v55, 0.0 }
 0x518   : > { %v4291_v50 = vpop.xlane.xlu1 %4290  ;;  %v4294_v35 = vpop.xlane.xlu0 %4293  ;;  %v6683_v0 = vld [vmem:[%s10145_s6 + $0x40] ss:$16 sps:$4 sm:$0xff]   ;;  %v2792_v33 = vsel %vm2731_vm0, %v9362_v45, 0.0  ;;  %v6688_v12 = vld [vmem:[%s10145_s6 + $0x24] ss:$16 sps:$4 sm:$0xff]  }
 0x519   : > { %7034 = vpow2.f32 %v4312_v58  ;;  %v4303_v43 = vsub.f32 %v9312_v17, %v4291_v50  ;;  %v4304_v5 = vsub.f32 %v9302_v32, %v4294_v35  ;;  %6382 = vmatmul.mubr.msk.bf16.vlgmr.msra.gmra.mxu1 %vm2731_vm0, %v3841_v60  ;;  %v6686_v55 = vld [vmem:[%s10145_s6 + $0x20] ss:$16 sps:$4 sm:$0xff]   ;;  %v2795_v60 = vsel %vm2731_vm0, %v9359_v8, 0.0  ;;  %v6691_v45 = vld [vmem:[%s10145_s6 + $0x4] ss:$16 sps:$4 sm:$0xff]  }
 0x51a   : > { %v9449_v49 = vpop.eup %7022  ;;  %6402 = vmatpush3.bf16.msra.mxu1 %v4359_v1  ;;  %7036 = vpow2.f32 %v4314_v10  ;;  %v3306_v58 = vsel %vm2731_vm0, %v9407_v53, 0.0  ;;  %v6689_v10 = vld [vmem:[%s10145_s6] ss:$16 sps:$4 sm:$0xff]   ;;  %v3309_v50 = vsel %vm2731_vm0, %v9412_v59, 0.0  ;;  %v3820_v8 = vsel %vm2731_vm0, %v9444_v14, 0.0 }
 0x51b   : > { %v4316_v21 = vmul.f32 1.442695, %v4303_v43  ;;  %6403 = vmatprep.subr.bf16.mxu1 %v4358_v18  ;;  %v3842_v41 = vpack.c.bf16 %v9449_v49, %v9444_v14  ;;  %v4318_v54 = vmul.f32 1.442695, %v4304_v5  ;;  %v9456_v17 = vpop.eup %7024  ;;  %v6694_v53 = vld [vmem:[%s10145_s6 + $0x1e4] ss:$16 sps:$4 sm:$0xff]  }
 0x51c   : > { %v4297_v23 = vpop.xlane.xlu1 %4296  ;;  %v6697_v35 = vld [vmem:[%s10145_s6 + $0x2e4] ss:$16 sps:$4 sm:$0xff]   ;;  %v6695_v59 = vld [vmem:[%s10145_s6 + $0x2e0] ss:$16 sps:$4 sm:$0xff]   ;;  %v3823_v14 = vsel %vm2731_vm0, %v9449_v49, 0.0  ;;  %v2798_v43 = vsel %vm2731_vm0, %v9375_v48, 0.0 }
 0x51d   : > { %7038 = vpow2.f32 %v4316_v21  ;;  %v4305_v32 = vsub.f32 %v9310_v13, %v4297_v23  ;;  %6385 = vmatprep.mubr.msk.bf16.mxu1 %vm2731_vm0, %v3842_v41  ;;  %v6671_v13 = vld [vmem:[%s10145_s6 + $0xc0] ss:$16 sps:$4 sm:$0xff]   ;;  %v6700_v5 = vld [vmem:[%s10145_s6 + $0x1c4] ss:$16 sps:$4 sm:$0xff]   ;;  %v2801_v48 = vsel %vm2731_vm0, %v9371_v27, 0.0 }
 0x51e   : > { %v9463_v25 = vpop.eup %7026  ;;  %6404 = vmatpush3.bf16.msra.mxu1 %v4358_v18  ;;  %7040 = vpow2.f32 %v4318_v54  ;;  %5374 = vmatpush1.bf16.msra.mxu0 %v6671_v13  ;;  %v6692_v18 = vld [vmem:[%s10145_s6 + $0x1e0] ss:$16 sps:$4 sm:$0xff]   ;;  %v6703_v21 = vld [vmem:[%s10145_s6 + $0x2c4] ss:$16 sps:$4 sm:$0xff]   ;;  %v3312_v54 = vsel %vm2731_vm0, %v9417_v19, 0.0  ;;  %v3315_v19 = vsel %vm2731_vm0, %v9422_v6, 0.0 }
 0x51f   : > { %v7029_v29 = vpop.eup %7028  ;;  %v4320_v1 = vmul.f32 1.442695, %v4305_v32  ;;  %v3843_v56 = vpack.c.bf16 %v9463_v25, %v9456_v17  ;;  %5375 = vmatprep.subr.bf16.mxu0 %v6676_v3  ;;  %5444 = vmatprep.subr.bf16.mxu1 %v6697_v35  ;;  %v6698_v41 = vld [vmem:[%s10145_s6 + $0x1c0] ss:$16 sps:$4 sm:$0xff]   ;;  %v6706_v23 = vld [vmem:[%s10145_s6 + $0x1a4] ss:$16 sps:$4 sm:$0xff]  }
 0x520   : > { %v4322_v36 = vsel %vm2731_vm0, %v7029_v29, 0.0  ;;  %v6701_v49 = vld [vmem:[%s10145_s6 + $0x2c0] ss:$16 sps:$4 sm:$0xff]   ;;  %v3826_v13 = vsel %vm2731_vm0, %v9456_v17, 0.0  ;;  %v6721_v3 = vld [vmem:[%s10145_s6 + $0x264] ss:$16 sps:$4 sm:$0xff]  }
 0x521   : > { %7042 = vpow2.f32 %v4320_v1  ;;  %4323 = vadd.xlane.f32.xlu0 %v4322_v36  ;;  %6386 = vmatmul.mubr.msk.bf16.gmra.mxu1 %vm2731_vm0, %v3843_v56  ;;  %v6704_v32 = vld [vmem:[%s10145_s6 + $0x1a0] ss:$16 sps:$4 sm:$0xff]   ;;  %v6718_v36 = vld [vmem:[%s10145_s6 + $0x164] ss:$16 sps:$4 sm:$0xff]   ;;  %v3829_v17 = vsel %vm2731_vm0, %v9463_v25, 0.0 }
 0x522   : > { %v7031_v31 = vpop.eup %7030  ;;  %5376 = vmatpush1.bf16.msra.mxu0 %v6674_v61  ;;  %v6707_v27 = vld [vmem:[%s10145_s6 + $0x2a0] ss:$16 sps:$4 sm:$0xff]   ;;  %v6724_v61 = vld [vmem:[%s10145_s6 + $0x144] ss:$16 sps:$4 sm:$0xff]  }
 0x523   : > { %v4325_v7 = vsel %vm2731_vm0, %v7031_v31, 0.0  ;;  %v4354_v9 = vpack.c.bf16 %v7031_v31, %v7029_v29  ;;  %v7033_v37 = vpop.eup %7032  ;;  %5377 = vmatprep.subr.bf16.mxu0 %v6679_v20  ;;  %v6715_v29 = vld [vmem:[%s10145_s6 + $0x284] ss:$16 sps:$4 sm:$0xff]   ;;  %v6710_v1 = vld [vmem:[%s10145_s6 + $0x180] ss:$16 sps:$4 sm:$0xff]  }
 0x524   : > { %4326 = vadd.xlane.f32.xlu1 %v4325_v7  ;;  %v4328_v39 = vsel %vm2731_vm0, %v7033_v37, 0.0  ;;  %v6713_v6 = vld [vmem:[%s10145_s6 + $0x280] ss:$16 sps:$4 sm:$0xff]  }
 0x525   : > { %2787 = vadd.xlane.f32.xlu0 %v2786_v40  ;;  %6405 = vmatprep.mubr.msk.bf16.mxu1 %vm2731_vm0, %v4354_v9  ;;  %v6716_v31 = vld [vmem:[%s10145_s6 + $0x160] ss:$16 sps:$4 sm:$0xff]   ;;  %v6727_v40 = vld [vmem:[%s10145_s6 + $0x244] ss:$16 sps:$4 sm:$0xff]  }
 0x526   : > { %v7035_v47 = vpop.eup %7034  ;;  %5378 = vmatpush1.bf16.msra.mxu0 %v6677_v4  ;;  %v6719_v7 = vld [vmem:[%s10145_s6 + $0x260] ss:$16 sps:$4 sm:$0xff]   ;;  %v6739_v4 = vld [vmem:[%s10145_s6 + $0x204] ss:$16 sps:$4 sm:$0xff]  }
 0x527   : > { %v4355_v38 = vpack.c.bf16 %v7035_v47, %v7033_v37  ;;  %v9492_v42 = vpop.eup %7036  ;;  %5379 = vmatprep.subr.bf16.mxu0 %v6682_v28  ;;  %v4331_v46 = vsel %vm2731_vm0, %v7035_v47, 0.0  ;;  %v6722_v37 = vld [vmem:[%s10145_s6 + $0x140] ss:$16 sps:$4 sm:$0xff]  }
 0x528   : > { %2790 = vadd.xlane.f32.xlu1 %v2789_v30  ;;  %v4334_v16 = vsel %vm2731_vm0, %v9492_v42, 0.0  ;;  %v6725_v25 = vld [vmem:[%s10145_s6 + $0x240] ss:$16 sps:$4 sm:$0xff]   ;;  %v6733_v30 = vld [vmem:[%s10145_s6 + $0x224] ss:$16 sps:$4 sm:$0xff]  }
 0x529   : > { %3301 = vadd.xlane.f32.xlu0 %v3300_v2  ;;  %6406 = vmatmul.mubr.msk.bf16.vlgmr.msra.gmra.mxu1 %vm2731_vm0, %v4355_v38  ;;  %v6730_v38 = vld [vmem:[%s10145_s6 + $0x124] ss:$16 sps:$4 sm:$0xff]   ;;  %v6728_v2 = vld [vmem:[%s10145_s6 + $0x120] ss:$16 sps:$4 sm:$0xff]  }
 0x52a   : > { %v9498_v51 = vpop.eup %7038  ;;  %5380 = vmatpush1.bf16.msra.mxu0 %v6680_v62  ;;  %5445 = vmatpush1.bf16.msra.mxu1 %v6695_v59  ;;  %v6731_v20 = vld [vmem:[%s10145_s6 + $0x220] ss:$16 sps:$4 sm:$0xff]  }
 0x52b   : > { %v4356_v34 = vpack.c.bf16 %v9498_v51, %v9492_v42  ;;  %v9509_v22 = vpop.eup %7040  ;;  %5381 = vmatprep.subr.bf16.mxu0 %v6685_v57  ;;  %5446 = vmatprep.subr.bf16.mxu1 %v6703_v21  ;;  %v4337_v56 = vsel %vm2731_vm0, %v9498_v51, 0.0  ;;  %v6736_v42 = vld [vmem:[%s10145_s6 + $0x104] ss:$16 sps:$4 sm:$0xff]   ;;  %v6734_v51 = vld [vmem:[%s10145_s6 + $0x100] ss:$16 sps:$4 sm:$0xff]  }
 0x52c   : > { %3304 = vadd.xlane.f32.xlu1 %v3303_v63  ;;  %v4340_v9 = vsel %vm2731_vm0, %v9509_v22, 0.0  ;;  %v6737_v63 = vld [vmem:[%s10145_s6 + $0x200] ss:$16 sps:$4 sm:$0xff]   ;;  %v6774_v57 = vld [vmem:[%s10145_s6 + $0x364] ss:$16 sps:$4 sm:$0xff]  }
 0x52d   : > { %3815 = vadd.xlane.f32.xlu0 %v3814_v11  ;;  %6409 = vmatprep.mubr.msk.bf16.mxu1 %vm2731_vm0, %v4356_v34  ;;  %v6745_v34 = vld [vmem:[%s10145_s6 + $0x3e4] ss:$16 sps:$4 sm:$0xff]   ;;  %v6748_v11 = vld [vmem:[%s10145_s6 + $0xec] ss:$16 sps:$4 sm:$0xff]   ;;  %v6743_v28 = vld [vmem:[%s10145_s6 + $0x3e0] ss:$16 sps:$4 sm:$0xff]  }
 0x52e   : > { %v9515_v44 = vpop.eup %7042  ;;  %5382 = vmatpush1.bf16.msra.mxu0 %v6683_v0  ;;  %5447 = vmatpush1.bf16.msra.mxu1 %v6701_v49  ;;  %v6751_v62 = vld [vmem:[%s10145_s6 + $0x3c0] ss:$16 sps:$4 sm:$0xff]  }
 0x52f   : > { %v4357_v26 = vpack.c.bf16 %v9515_v44, %v9509_v22  ;;  %5383 = vmatprep.subr.bf16.mxu0 %v6688_v12  ;;  %5448 = vmatprep.subr.bf16.mxu1 %v6709_v15  ;;  %v4343_v47 = vsel %vm2731_vm0, %v9515_v44, 0.0  ;;  %v6753_v22 = vld [vmem:[%s10145_s6 + $0x3c4] ss:$16 sps:$4 sm:$0xff]   ;;  %v6772_v0 = vld [vmem:[%s10145_s6 + $0x360] ss:$16 sps:$4 sm:$0xff]  }
 0x530   : > { %3818 = vadd.xlane.f32.xlu1 %v3817_v52  ;;  %v6759_v44 = vld [vmem:[%s10145_s6 + $0x3a4] ss:$16 sps:$4 sm:$0xff]   ;;  %v6757_v52 = vld [vmem:[%s10145_s6 + $0x3a0] ss:$16 sps:$4 sm:$0xff]  }
 0x531   : > { %4329 = vadd.xlane.f32.xlu0 %v4328_v39  ;;  %6410 = vmatmul.mubr.msk.bf16.gmra.mxu1 %vm2731_vm0, %v4357_v26  ;;  %v6768_v26 = vld [vmem:[%s10145_s6 + $0x384] ss:$16 sps:$4 sm:$0xff]   ;;  %v6766_v39 = vld [vmem:[%s10145_s6 + $0x380] ss:$16 sps:$4 sm:$0xff]  }
 0x532   : > { %5384 = vmatpush1.bf16.msra.mxu0 %v6686_v55  ;;  %5449 = vmatpush1.bf16.msra.mxu1 %v6707_v27  ;;  %v6789_v12 = vld [vmem:[%s10145_s6 + $0x324] ss:$16 sps:$4 sm:$0xff]   ;;  %v6787_v55 = vld [vmem:[%s10145_s6 + $0x320] ss:$16 sps:$4 sm:$0xff]  }
 0x533   : > { %5385 = vmatprep.subr.bf16.mxu0 %v6691_v45  ;;  %5450 = vmatprep.subr.bf16.mxu1 %v6715_v29  ;;  %v6808_v45 = vld [vmem:[%s10145_s6 + $0x2ec] ss:$16 sps:$4 sm:$0xff]  }
 0x534   : > { %4332 = vadd.xlane.f32.xlu1 %v4331_v46  ;;  %v6783_v46 = vld [vmem:[%s10145_s6 + $0x344] ss:$16 sps:$4 sm:$0xff]  }
 0x535   : > { %2793 = vadd.xlane.f32.xlu0 %v2792_v33  ;;  %v6781_v33 = vld [vmem:[%s10145_s6 + $0x340] ss:$16 sps:$4 sm:$0xff]  }
 0x536   : > { %5386 = vmatpush1.bf16.msra.mxu0 %v6689_v10  ;;  %5451 = vmatpush1.bf16.msra.mxu1 %v6713_v6 }
 0x537   : > { %5387 = vmatprep.subr.bf16.mxu0 %v6694_v53  ;;  %5452 = vmatprep.subr.bf16.mxu1 %v6721_v3 }
 0x538   : > { %2796 = vadd.xlane.f32.xlu1 %v2795_v60  ;;  %v6796_v60 = vld [vmem:[%s10145_s6 + $0x304] ss:$16 sps:$4 sm:$0xff]  }
 0x539   : > { %3307 = vadd.xlane.f32.xlu0 %v3306_v58  ;;  %v6794_v58 = vld [vmem:[%s10145_s6 + $0x300] ss:$16 sps:$4 sm:$0xff]  }
 0x53a   : > { %5388 = vmatpush2.bf16.msra.mxu0 %v6692_v18  ;;  %5453 = vmatpush1.bf16.msra.mxu1 %v6719_v7 }
 0x53b   : > { %5389 = vmatprep.subr.bf16.mxu0 %v6700_v5  ;;  %5454 = vmatprep.subr.bf16.mxu1 %v6727_v40 }
 0x53c   : > { %3310 = vadd.xlane.f32.xlu1 %v3309_v50 }
 0x53d   : > { %3821 = vadd.xlane.f32.xlu0 %v3820_v8 }
 0x53e   : > { %5390 = vmatpush2.bf16.msra.mxu0 %v6698_v41  ;;  %5455 = vmatpush1.bf16.msra.mxu1 %v6725_v25 }
 0x53f   : > { %5391 = vmatprep.subr.bf16.mxu0 %v6706_v23  ;;  %5456 = vmatprep.subr.bf16.mxu1 %v6733_v30 }
 0x540   : > { %3824 = vadd.xlane.f32.xlu1 %v3823_v14 }
 0x541   : > { %2799 = vadd.xlane.f32.xlu0 %v2798_v43 }
 0x542   : > { %5392 = vmatpush2.bf16.msra.mxu0 %v6704_v32  ;;  %5457 = vmatpush1.bf16.msra.mxu1 %v6731_v20 }
 0x543   : > { %5393 = vmatprep.subr.bf16.mxu0 %v6712_v24  ;;  %5458 = vmatprep.subr.bf16.mxu1 %v6739_v4 }
 0x544   : > { %2802 = vadd.xlane.f32.xlu1 %v2801_v48 }
 0x545   : > { %3313 = vadd.xlane.f32.xlu0 %v3312_v54 }
 0x546   : > { %5394 = vmatpush2.bf16.msra.mxu0 %v6710_v1  ;;  %5459 = vmatpush1.bf16.msra.mxu1 %v6737_v63 }
 0x547   : > { %5395 = vmatprep.subr.bf16.mxu0 %v6718_v36  ;;  %5460 = vmatprep.subr.bf16.mxu1 %v6745_v34 }
 0x548   : > { %3316 = vadd.xlane.f32.xlu1 %v3315_v19 }
 0x549   : > { %4335 = vadd.xlane.f32.xlu0 %v4334_v16 }
 0x54a   : > { %5396 = vmatpush2.bf16.msra.mxu0 %v6716_v31  ;;  %5461 = vmatpush2.bf16.msra.mxu1 %v6743_v28 }
 0x54b   : > { %5397 = vmatprep.subr.bf16.mxu0 %v6724_v61  ;;  %5462 = vmatprep.subr.bf16.mxu1 %v6753_v22 }
 0x54c   : > { %4338 = vadd.xlane.f32.xlu1 %v4337_v56 }
 0x54d   : > { %3827 = vadd.xlane.f32.xlu0 %v3826_v13 }
 0x54e   : > { %5398 = vmatpush2.bf16.msra.mxu0 %v6722_v37  ;;  %5463 = vmatpush2.bf16.msra.mxu1 %v6751_v62 }
 0x54f   : > { %5399 = vmatprep.subr.bf16.mxu0 %v6730_v38  ;;  %5464 = vmatprep.subr.bf16.mxu1 %v6759_v44 }
 0x550   : > { %3830 = vadd.xlane.f32.xlu1 %v3829_v17 }
 0x551   : > { %4341 = vadd.xlane.f32.xlu0 %v4340_v9 }
 0x552   : > { %5400 = vmatpush2.bf16.msra.mxu0 %v6728_v2  ;;  %5465 = vmatpush2.bf16.msra.mxu1 %v6757_v52 }
 0x553   : > { %5401 = vmatprep.subr.bf16.mxu0 %v6736_v42  ;;  %5466 = vmatprep.subr.bf16.mxu1 %v6768_v26 }
 0x554   : > { %4344 = vadd.xlane.f32.xlu1 %v4343_v47 }
 0x556   : > { %5402 = vmatpush2.bf16.msra.mxu0 %v6734_v51  ;;  %5467 = vmatpush2.bf16.msra.mxu1 %v6766_v39 }
 0x557   : > { %5517 = vmatprep.subr.bf16.mxu0 %v6748_v11  ;;  %5468 = vmatprep.subr.bf16.mxu1 %v6774_v57 }
 0x55a   : > { %5469 = vmatpush2.bf16.msra.mxu1 %v6772_v0 }
 0x55b   : > { %5470 = vmatprep.subr.bf16.mxu1 %v6783_v46 }
 0x55e   : > { %5471 = vmatpush2.bf16.msra.mxu1 %v6781_v33 }
 0x55f   : > { %5472 = vmatprep.subr.bf16.mxu1 %v6789_v12 }
 0x562   : > { %5473 = vmatpush2.bf16.msra.mxu1 %v6787_v55 }
 0x563   : > { %5474 = vmatprep.subr.bf16.mxu1 %v6796_v60 }
 0x566   : > { %5475 = vmatpush2.bf16.msra.mxu1 %v6794_v58 }
 0x567   : > { %5590 = vmatprep.subr.bf16.mxu1 %v6808_v45 }
 0x575   : > { %v2782_v10 = vpop.xlane.xlu0 %2781 }
 0x576   : > { %7044 = vrcp.f32 %v2782_v10 }
 0x579   : > { %v2785_v50 = vpop.xlane.xlu1 %2784 }
 0x57a   : > { %7046 = vrcp.f32 %v2785_v50 }
 0x583   : > { %v7045_v54 = vpop.eup %7044 }
 0x587   : > { %v7047_v24 = vpop.eup %7046 }
 0x589   : > { %v3296_v8 = vpop.xlane.xlu0 %3295 }
 0x58d   : > { %v3299_v53 = vpop.xlane.xlu1 %3298 }
 0x59a   : > { %v9724_v35 = vpop.xlane.xlu0 %3809 }
 0x59d   : > { %v9726_v18 = vpop.xlane.xlu1 %3812 }
 0x5aa   : > { %v9728_v59 = vpop.xlane.xlu0 %4323 }
 0x5ad   : > { %v9730_v14 = vpop.xlane.xlu1 %4326 }
 0x5ae   : > { %v2788_v43 = vpop.xlane.xlu0 %2787 }
 0x5af   : > { %7048 = vrcp.f32 %v2788_v43 }
 0x5b1   : > { %v2791_v5 = vpop.xlane.xlu1 %2790 }
 0x5b2   : > { %7050 = vrcp.f32 %v2791_v5  ;;  %v3302_v21 = vpop.xlane.xlu0 %3301 }
 0x5b3   : > { %7052 = vrcp.f32 %v3302_v21 }
 0x5b4   : > { %7054 = vrcp.f32 %v3296_v8 }
 0x5b5   : > { %v6335_v41 = vpop.f32.mrf.mxu1  ;;  %v3305_v49 = vpop.xlane.xlu1 %3304 }
 0x5b6   : > { %v3816_v48 = vpop.xlane.xlu0 %3815 }
 0x5b7   : > { %v2864_v23 = vpop.f32.mrf.mxu1 }
 0x5b8   : > { %v2895_v15 = vmul.f32 %v7045_v54, %v2864_v23 }
 0x5b9   : > { %v6336_v32 = vpop.f32.mrf.mxu1  ;;  %v3819_v27 = vpop.xlane.xlu1 %3818 }
 0x5ba   : > { %v6236_v19 = vpack.c.bf16 %v2895_v15, %v2895_v15  ;;  %v9732_v16 = vpop.xlane.xlu0 %4329 }
 0x5bb   : > { %v2867_v29 = vpop.f32.mrf.mxu1 }
 0x5bc   : > { %v7049_v1 = vpop.eup %7048  ;;  %2935 = vst [vmem:[#allocation4] sm:$0xf] %v6236_v19  ;;  %v2896_v6 = vmul.f32 %v7047_v24, %v2867_v29 }
 0x5bd   : > { %v2897_v56 = vmul.f32 %v7049_v1, %v6335_v41  ;;  %v9734_v13 = vpop.xlane.xlu1 %4332 }
 0x5be   : > { %v6237_v36 = vpack.c.bf16 %v2896_v6, %v2896_v6  ;;  %v9736_v3 = vpop.f32.mrf.mxu1  ;;  %v2794_v31 = vpop.xlane.xlu0 %2793 }
 0x5bf   : > { %v7051_v7 = vpop.eup %7050  ;;  %v6238_v17 = vpack.c.bf16 %v2897_v56, %v2897_v56  ;;  %7056 = vrcp.f32 %v2794_v31  ;;  %v6746_v31 = vld [vmem:[%s10145_s6 + $0xe8] ss:$16 sps:$4 sm:$0xff]  }
 0x5c0   : > { %7058 = vrcp.f32 %v3305_v49  ;;  %v2898_v9 = vmul.f32 %v7051_v7, %v6336_v32  ;;  %2936 = vst [vmem:[#allocation4 + $0x10] sm:$0xf] %v6237_v36  ;;  %v2880_v61 = vpop.f32.mrf.mxu1  ;;  %v7053_v20 = vpop.eup %7052 }
 0x5c1   : > { %7060 = vrcp.f32 %v3299_v53  ;;  %2937 = vst [vmem:[#allocation4 + $0x20] sm:$0xf] %v6238_v17  ;;  %v2797_v40 = vpop.xlane.xlu1 %2796  ;;  %v7055_v34 = vpop.eup %7054 }
 0x5c2   : > { %v6239_v37 = vpack.c.bf16 %v2898_v9, %v2898_v9  ;;  %7062 = vrcp.f32 %v2797_v40  ;;  %v3308_v25 = vpop.xlane.xlu0 %3307  ;;  %v9738_v47 = vpop.f32.mrf.mxu1 }
 0x5c3   : > { %7064 = vrcp.f32 %v3308_v25 }
 0x5c4   : > { %2938 = vst [vmem:[#allocation4 + $0x30] sm:$0xf] %v6239_v37  ;;  %v2883_v2 = vpop.f32.mrf.mxu1 }
 0x5c5   : > { %v3311_v38 = vpop.xlane.xlu1 %3310 }
 0x5c6   : > { %v3822_v30 = vpop.xlane.xlu0 %3821  ;;  %7066 = vrcp.f32 %v3311_v38 }
 0x5c9   : > { %v3825_v42 = vpop.xlane.xlu1 %3824  ;;  %v6359_v4 = vpop.f32.mrf.mxu1 }
 0x5ca   : > { %v3411_v51 = vmul.f32 %v7053_v20, %v6359_v4  ;;  %v2800_v63 = vpop.xlane.xlu0 %2799 }
 0x5cb   : > { %7068 = vrcp.f32 %v2800_v63  ;;  %v3378_v11 = vpop.f32.mrf.mxu1 }
 0x5cc   : > { %v7057_v28 = vpop.eup %7056  ;;  %7070 = vrcp.f32 %v3816_v48  ;;  %v6246_v22 = vpack.c.bf16 %v3411_v51, %v3411_v51  ;;  %v3409_v62 = vmul.f32 %v7055_v34, %v3378_v11 }
 0x5cd   : > { %v7059_v44 = vpop.eup %7058  ;;  %7072 = vrcp.f32 %v9724_v35  ;;  %v2899_v52 = vmul.f32 %v7057_v28, %v2880_v61  ;;  %v2803_v26 = vpop.xlane.xlu1 %2802  ;;  %v9750_v61 = vld [vmem:[#allocation4] ss:$16 sps:$4 sm:$0xff]  }
 0x5ce   : > { %v6360_v39 = vpop.f32.mrf.mxu1  ;;  %v7061_v57 = vpop.eup %7060  ;;  %3451 = vst [vmem:[#allocation4 + $0x24] sm:$0xf] %v6246_v22  ;;  %v6244_v0 = vpack.c.bf16 %v3409_v62, %v3409_v62  ;;  %7074 = vrcp.f32 %v2803_v26  ;;  %v6754_v22 = vld [vmem:[%s10145_s6 + $0xc8] ss:$16 sps:$4 sm:$0xff]  }
 0x5cf   : > { %v3412_v46 = vmul.f32 %v7059_v44, %v6360_v39  ;;  %v3314_v33 = vpop.xlane.xlu0 %3313  ;;  %v7063_v12 = vpop.eup %7062  ;;  %v6240_v55 = vpack.c.bf16 %v2899_v52, %v2899_v52  ;;  %v6762_v52 = vld [vmem:[%s10145_s6 + $0xac] ss:$16 sps:$4 sm:$0xff]  }
 0x5d0   : > { %7076 = vrcp.f32 %v3314_v33  ;;  %v3381_v60 = vpop.f32.mrf.mxu1  ;;  %v2900_v58 = vmul.f32 %v7063_v12, %v2883_v2  ;;  %3449 = vst [vmem:[#allocation4 + $0x4] sm:$0xf] %v6244_v0  ;;  %v7065_v5 = vpop.eup %7064  ;;  %v6760_v33 = vld [vmem:[%s10145_s6 + $0xa8] ss:$16 sps:$4 sm:$0xff]  }
 0x5d1   : > { %7078 = vrcp.f32 %v3819_v27  ;;  %v6247_v45 = vpack.c.bf16 %v3412_v46, %v3412_v46  ;;  %v3410_v10 = vmul.f32 %v7061_v57, %v3381_v60  ;;  %2939 = vst [vmem:[#allocation4 + $0x40] sm:$0xf] %v6240_v55  ;;  %v3317_v50 = vpop.xlane.xlu1 %3316  ;;  %v9776_v60 = vld [vmem:[#allocation4 + $0x20] ss:$16 sps:$4 sm:$0xff]  }
 0x5d2   : > { %7080 = vrcp.f32 %v9726_v18  ;;  %v6363_v8 = vpop.f32.mrf.mxu1  ;;  %v6241_v53 = vpack.c.bf16 %v2900_v58, %v2900_v58 }
 0x5d3   : > { %3452 = vst [vmem:[#allocation4 + $0x34] sm:$0xf] %v6247_v45  ;;  %v6245_v35 = vpack.c.bf16 %v3410_v10, %v3410_v10  ;;  %7082 = vrcp.f32 %v3317_v50  ;;  %v9742_v43 = vpop.xlane.xlu0 %4335  ;;  %v7067_v23 = vpop.eup %7066 }
 0x5d4   : > { %v3394_v21 = vpop.f32.mrf.mxu1  ;;  %2940 = vst [vmem:[#allocation4 + $0x50] sm:$0xf] %v6241_v53  ;;  %7084 = vrcp.f32 %v3822_v30  ;;  %v6756_v30 = vld [vmem:[%s10145_s6 + $0xcc] ss:$16 sps:$4 sm:$0xff]  }
 0x5d5   : > { %3450 = vst [vmem:[#allocation4 + $0x14] sm:$0xf] %v6245_v35  ;;  %v3413_v41 = vmul.f32 %v7065_v5, %v3394_v21  ;;  %v9744_v49 = vpop.xlane.xlu1 %4338 }
 0x5d6   : > { %v6364_v48 = vpop.f32.mrf.mxu1 }
 0x5d7   : > { %v6248_v54 = vpack.c.bf16 %v3413_v41, %v3413_v41  ;;  %v3828_v18 = vpop.xlane.xlu0 %3827  ;;  %v6769_v41 = vld [vmem:[%s10145_s6 + $0x88] ss:$16 sps:$4 sm:$0xff]  }
 0x5d8   : > { %7086 = vrcp.f32 %v3828_v18  ;;  %v3397_v15 = vpop.f32.mrf.mxu1  ;;  %v7069_v32 = vpop.eup %7068 }
 0x5d9   : > { %3453 = vst [vmem:[#allocation4 + $0x44] sm:$0xf] %v6248_v54  ;;  %v3414_v27 = vmul.f32 %v7067_v23, %v3397_v15  ;;  %v7071_v19 = vpop.eup %7070  ;;  %7088 = vrcp.f32 %v3825_v42  ;;  %v2901_v24 = vmul.f32 %v7069_v32, %v9736_v3  ;;  %v3831_v29 = vpop.xlane.xlu1 %3830 }
 0x5da   : > { %v6383_v1 = vpop.f32.mrf.mxu1  ;;  %v7073_v6 = vpop.eup %7072  ;;  %7090 = vrcp.f32 %v3831_v29  ;;  %v9760_v4 = vld [vmem:[#allocation4 + $0x24] ss:$16 sps:$4 sm:$0xff]   ;;  %v6775_v29 = vld [vmem:[%s10145_s6 + $0x68] ss:$16 sps:$4 sm:$0xff]  }
 0x5db   : > { %v6249_v56 = vpack.c.bf16 %v3414_v27, %v3414_v27  ;;  %v3925_v36 = vmul.f32 %v7071_v19, %v6383_v1  ;;  %v7075_v7 = vpop.eup %7074  ;;  %v6242_v17 = vpack.c.bf16 %v2901_v24, %v2901_v24  ;;  %7092 = vrcp.f32 %v9732_v16  ;;  %v4342_v26 = vpop.xlane.xlu0 %4341 }
 0x5dc   : > { %v3892_v9 = vpop.f32.mrf.mxu1  ;;  %v9752_v40 = vld [vmem:[#allocation4 + $0x4] ss:$16 sps:$4 sm:$0xff]   ;;  %v2902_v3 = vmul.f32 %v7075_v7, %v9738_v47  ;;  %7094 = vrcp.f32 %v9728_v59 }
 0x5dd   : > { %v7077_v37 = vpop.eup %7076  ;;  %3454 = vst [vmem:[#allocation4 + $0x54] sm:$0xf] %v6249_v56  ;;  %v6254_v25 = vpack.c.bf16 %v3925_v36, %v3925_v36  ;;  %v3923_v38 = vmul.f32 %v7073_v6, %v3892_v9  ;;  %2941 = vst [vmem:[#allocation4 + $0x60] sm:$0xf] %v6242_v17  ;;  %5403 = vmatprep.mubr.bf16.mxu0 %v9752_v40  ;;  %7096 = vrcp.f32 %v9734_v13  ;;  %v4345_v58 = vpop.xlane.xlu1 %4344  ;;  %v9796_v56 = vld [vmem:[#allocation4 + $0x40] ss:$16 sps:$4 sm:$0xff]  }
 0x5de   : > { %v7079_v2 = vpop.eup %7078  ;;  %v3415_v20 = vmul.f32 %v7077_v37, %v6363_v8  ;;  %v6384_v42 = vpop.f32.mrf.mxu1  ;;  %v6243_v16 = vpack.c.bf16 %v2902_v3, %v2902_v3  ;;  %5404 = vmatmul.mubr.bf16.vlgmr.msra.gmra.mxu0 %v9750_v61  ;;  %7098 = vrcp.f32 %v9730_v14  ;;  %v6771_v14 = vld [vmem:[%s10145_s6 + $0x8c] ss:$16 sps:$4 sm:$0xff]  }
 0x5df   : > { %v7081_v51 = vpop.eup %7080  ;;  %3965 = vst [vmem:[#allocation4 + $0x28] sm:$0xf] %v6254_v25  ;;  %v6252_v47 = vpack.c.bf16 %v3923_v38, %v3923_v38  ;;  %v3926_v63 = vmul.f32 %v7079_v2, %v6384_v42  ;;  %5518 = vmatpush1.bf16.msra.mxu0 %v6746_v31  ;;  %5413 = vmatprep.mubr.bf16.mxu0 %v9760_v4  ;;  %7100 = vrcp.f32 %v4342_v26  ;;  %v6784_v25 = vld [vmem:[%s10145_s6 + $0x48] ss:$16 sps:$4 sm:$0xff]   ;;  %v6792_v2 = vld [vmem:[%s10145_s6 + $0x2c] ss:$16 sps:$4 sm:$0xff]  }
 0x5e0   : > { %v7083_v34 = vpop.eup %7082  ;;  %v6250_v11 = vpack.c.bf16 %v3415_v20, %v3415_v20  ;;  %v3895_v28 = vpop.f32.mrf.mxu1  ;;  %2942 = vst [vmem:[#allocation4 + $0x70] sm:$0xf] %v6243_v16  ;;  %5519 = vmatprep.subr.bf16.mxu0 %v6756_v30  ;;  %7102 = vrcp.f32 %v9742_v43  ;;  %v6777_v43 = vld [vmem:[%s10145_s6 + $0x6c] ss:$16 sps:$4 sm:$0xff]  }
 0x5e1   : > { %v3416_v59 = vmul.f32 %v7083_v34, %v6364_v48  ;;  %3963 = vst [vmem:[#allocation4 + $0x8] sm:$0xf] %v6252_v47  ;;  %v6255_v62 = vpack.c.bf16 %v3926_v63, %v3926_v63  ;;  %v3924_v44 = vmul.f32 %v7081_v51, %v3895_v28  ;;  %v7085_v46 = vpop.eup %7084  ;;  %7104 = vrcp.f32 %v4345_v58  ;;  %v6790_v34 = vld [vmem:[%s10145_s6 + $0x28] ss:$16 sps:$4 sm:$0xff]  }
 0x5e2   : > { %3455 = vst [vmem:[#allocation4 + $0x64] sm:$0xf] %v6250_v11  ;;  %v6387_v39 = vpop.f32.mrf.mxu1  ;;  %7106 = vrcp.f32 %v9744_v49  ;;  %v6786_v49 = vld [vmem:[%s10145_s6 + $0x4c] ss:$16 sps:$4 sm:$0xff]  }
 0x5e3   : > { %v6251_v57 = vpack.c.bf16 %v3416_v59, %v3416_v59  ;;  %3966 = vst [vmem:[#allocation4 + $0x38] sm:$0xf] %v6255_v62  ;;  %v6253_v0 = vpack.c.bf16 %v3924_v44, %v3924_v44  ;;  %5520 = vmatpush1.bf16.msra.mxu0 %v6754_v22  ;;  %v6799_v59 = vld [vmem:[%s10145_s6 + $0xc] ss:$16 sps:$4 sm:$0xff]  }
 0x5e4   : > { %v3908_v13 = vpop.f32.mrf.mxu1  ;;  %5521 = vmatprep.subr.bf16.mxu0 %v6762_v52  ;;  %v9781_v50 = vld [vmem:[#allocation4 + $0x44] ss:$16 sps:$4 sm:$0xff]  }
 0x5e5   : > { %v7087_v12 = vpop.eup %7086  ;;  %3456 = vst [vmem:[#allocation4 + $0x74] sm:$0xf] %v6251_v57  ;;  %3964 = vst [vmem:[#allocation4 + $0x18] sm:$0xf] %v6253_v0  ;;  %v3927_v55 = vmul.f32 %v7085_v46, %v3908_v13  ;;  %v6797_v0 = vld [vmem:[%s10145_s6 + $0x8] ss:$16 sps:$4 sm:$0xff]  }
 0x5e6   : > { %v3929_v45 = vmul.f32 %v7087_v12, %v6387_v39  ;;  %v6388_v10 = vpop.f32.mrf.mxu1  ;;  %v7089_v8 = vpop.eup %7088  ;;  %5414 = vmatmul.mubr.bf16.gmra.mxu0 %v9776_v60 }
 0x5e7   : > { %v6256_v53 = vpack.c.bf16 %v3927_v55, %v3927_v55  ;;  %v7091_v35 = vpop.eup %7090  ;;  %5522 = vmatpush1.bf16.msra.mxu0 %v6760_v33  ;;  %5423 = vmatprep.mubr.bf16.mxu0 %v9781_v50  ;;  %v9814_v22 = vld [vmem:[#allocation4 + $0x60] ss:$16 sps:$4 sm:$0xff]   ;;  %v6805_v33 = vld [vmem:[%s10145_s6 + $0x1ec] ss:$16 sps:$4 sm:$0xff]   ;;  %v6803_v55 = vld [vmem:[%s10145_s6 + $0x1e8] ss:$16 sps:$4 sm:$0xff]  }
 0x5e8   : > { %v6258_v5 = vpack.c.bf16 %v3929_v45, %v3929_v45  ;;  %v3911_v21 = vpop.f32.mrf.mxu1  ;;  %v3930_v48 = vmul.f32 %v7091_v35, %v6388_v10  ;;  %5523 = vmatprep.subr.bf16.mxu0 %v6771_v14  ;;  %v7093_v18 = vpop.eup %7092  ;;  %v6813_v45 = vld [vmem:[%s10145_s6 + $0x1cc] ss:$16 sps:$4 sm:$0xff]   ;;  %v6814_v35 = vld [vmem:[%s10145_s6 + $0x2c8] ss:$16 sps:$4 sm:$0xff]  }
 0x5e9   : > { %3967 = vst [vmem:[#allocation4 + $0x48] sm:$0xf] %v6256_v53  ;;  %v3928_v54 = vmul.f32 %v7089_v8, %v3911_v21  ;;  %v7095_v19 = vpop.eup %7094  ;;  %v6816_v10 = vld [vmem:[%s10145_s6 + $0x2cc] ss:$16 sps:$4 sm:$0xff]   ;;  %v6811_v53 = vld [vmem:[%s10145_s6 + $0x1c8] ss:$16 sps:$4 sm:$0xff]  }
 0x5ea   : > { %3969 = vst [vmem:[#allocation4 + $0x68] sm:$0xf] %v6258_v5  ;;  %v6407_v23 = vpop.f32.mrf.mxu1  ;;  %v6259_v15 = vpack.c.bf16 %v3930_v48, %v3930_v48  ;;  %v7097_v36 = vpop.eup %7096  ;;  %v6819_v5 = vld [vmem:[%s10145_s6 + $0x1ac] ss:$16 sps:$4 sm:$0xff]   ;;  %v6820_v48 = vld [vmem:[%s10145_s6 + $0x2a8] ss:$16 sps:$4 sm:$0xff]  }
 0x5eb   : > { %v6257_v32 = vpack.c.bf16 %v3928_v54, %v3928_v54  ;;  %v4439_v27 = vmul.f32 %v7093_v18, %v6407_v23  ;;  %5524 = vmatpush1.bf16.msra.mxu0 %v6769_v41  ;;  %v7099_v37 = vpop.eup %7098  ;;  %v6822_v21 = vld [vmem:[%s10145_s6 + $0x2ac] ss:$16 sps:$4 sm:$0xff]   ;;  %v6817_v41 = vld [vmem:[%s10145_s6 + $0x1a8] ss:$16 sps:$4 sm:$0xff]  }
 0x5ec   : > { %v4406_v24 = vpop.f32.mrf.mxu1  ;;  %3970 = vst [vmem:[#allocation4 + $0x78] sm:$0xf] %v6259_v15  ;;  %5525 = vmatprep.subr.bf16.mxu0 %v6777_v43  ;;  %v9801_v7 = vld [vmem:[#allocation4 + $0x64] ss:$16 sps:$4 sm:$0xff]   ;;  %v7101_v20 = vpop.eup %7100  ;;  %v9833_v14 = vld [vmem:[#allocation4 + $0x8] ss:$16 sps:$4 sm:$0xff]  }
 0x5ed   : > { %3968 = vst [vmem:[#allocation4 + $0x58] sm:$0xf] %v6257_v32  ;;  %v6262_v1 = vpack.c.bf16 %v4439_v27, %v4439_v27  ;;  %v4437_v6 = vmul.f32 %v7095_v19, %v4406_v24  ;;  %v7103_v47 = vpop.eup %7102  ;;  %v9866_v54 = vld [vmem:[#allocation4 + $0x28] ss:$16 sps:$4 sm:$0xff]   ;;  %v6828_v43 = vld [vmem:[%s10145_s6 + $0x18c] ss:$16 sps:$4 sm:$0xff]  }
 0x5ee   : > { %v6408_v31 = vpop.f32.mrf.mxu1  ;;  %5424 = vmatmul.mubr.bf16.gmra.mxu0 %v9796_v56  ;;  %v7105_v62 = vpop.eup %7104  ;;  %v6831_v18 = vld [vmem:[%s10145_s6 + $0x28c] ss:$16 sps:$4 sm:$0xff]   ;;  %v6826_v15 = vld [vmem:[%s10145_s6 + $0x188] ss:$16 sps:$4 sm:$0xff]  }
 0x5ef   : > { %4479 = vst [vmem:[#allocation4 + $0x2c] sm:$0xf] %v6262_v1  ;;  %v6260_v17 = vpack.c.bf16 %v4437_v6, %v4437_v6  ;;  %v4440_v9 = vmul.f32 %v7097_v36, %v6408_v31  ;;  %5526 = vmatpush1.bf16.msra.mxu0 %v6775_v29  ;;  %5433 = vmatprep.mubr.bf16.mxu0 %v9801_v7  ;;  %v7107_v39 = vpop.eup %7106  ;;  %v6829_v32 = vld [vmem:[%s10145_s6 + $0x288] ss:$16 sps:$4 sm:$0xff]   ;;  %v6834_v27 = vld [vmem:[%s10145_s6 + $0x16c] ss:$16 sps:$4 sm:$0xff]  }
 0x5f0   : > { %v4409_v3 = vpop.f32.mrf.mxu1  ;;  %5527 = vmatprep.subr.bf16.mxu0 %v6786_v49  ;;  %v6837_v19 = vld [vmem:[%s10145_s6 + $0x26c] ss:$16 sps:$4 sm:$0xff]   ;;  %v6832_v24 = vld [vmem:[%s10145_s6 + $0x168] ss:$16 sps:$4 sm:$0xff]  }
 0x5f1   : > { %4477 = vst [vmem:[#allocation4 + $0xc] sm:$0xf] %v6260_v17  ;;  %v6263_v38 = vpack.c.bf16 %v4440_v9, %v4440_v9  ;;  %v4438_v30 = vmul.f32 %v7099_v37, %v4409_v3  ;;  %v6835_v29 = vld [vmem:[%s10145_s6 + $0x268] ss:$16 sps:$4 sm:$0xff]   ;;  %v6843_v6 = vld [vmem:[%s10145_s6 + $0x14c] ss:$16 sps:$4 sm:$0xff]  }
 0x5f2   : > { %v6411_v42 = vpop.f32.mrf.mxu1  ;;  %v6846_v49 = vld [vmem:[%s10145_s6 + $0x24c] ss:$16 sps:$4 sm:$0xff]   ;;  %v6841_v31 = vld [vmem:[%s10145_s6 + $0x148] ss:$16 sps:$4 sm:$0xff]  }
 0x5f3   : > { %4480 = vst [vmem:[#allocation4 + $0x3c] sm:$0xf] %v6263_v38  ;;  %v6261_v51 = vpack.c.bf16 %v4438_v30, %v4438_v30  ;;  %v4443_v16 = vmul.f32 %v7101_v20, %v6411_v42  ;;  %5528 = vmatpush1.bf16.msra.mxu0 %v6784_v25  ;;  %v6844_v17 = vld [vmem:[%s10145_s6 + $0x248] ss:$16 sps:$4 sm:$0xff]   ;;  %v6849_v9 = vld [vmem:[%s10145_s6 + $0x12c] ss:$16 sps:$4 sm:$0xff]  }
 0x5f4   : > { %v4422_v63 = vpop.f32.mrf.mxu1  ;;  %5529 = vmatprep.subr.bf16.mxu0 %v6792_v2  ;;  %v9896_v1 = vld [vmem:[#allocation4 + $0x48] ss:$16 sps:$4 sm:$0xff]   ;;  %v6852_v37 = vld [vmem:[%s10145_s6 + $0x22c] ss:$16 sps:$4 sm:$0xff]  }
 0x5f5   : > { %4478 = vst [vmem:[#allocation4 + $0x1c] sm:$0xf] %v6261_v51  ;;  %v6266_v11 = vpack.c.bf16 %v4443_v16, %v4443_v16  ;;  %v4441_v28 = vmul.f32 %v7103_v47, %v4422_v63  ;;  %v6847_v3 = vld [vmem:[%s10145_s6 + $0x128] ss:$16 sps:$4 sm:$0xff]   ;;  %v6856_v30 = vld [vmem:[%s10145_s6 + $0x10c] ss:$16 sps:$4 sm:$0xff]  }
 0x5f6   : > { %v6412_v44 = vpop.f32.mrf.mxu1  ;;  %5434 = vmatmul.mubr.bf16.gmra.mxu0 %v9814_v22  ;;  %v6850_v25 = vld [vmem:[%s10145_s6 + $0x228] ss:$16 sps:$4 sm:$0xff]   ;;  %v6859_v2 = vld [vmem:[%s10145_s6 + $0x20c] ss:$16 sps:$4 sm:$0xff]  }
 0x5f7   : > { %4483 = vst [vmem:[#allocation4 + $0x6c] sm:$0xf] %v6266_v11  ;;  %v6264_v52 = vpack.c.bf16 %v4441_v28, %v4441_v28  ;;  %v4444_v26 = vmul.f32 %v7105_v62, %v6412_v44  ;;  %5530 = vmatpush1.bf16.msra.mxu0 %v6790_v34  ;;  %5549 = vmatprep.mubr.bf16.mxu0 %v9752_v40  ;;  %v6806_v40 = vld [vmem:[%s10145_s6 + $0x2e8] ss:$16 sps:$4 sm:$0xff]   ;;  %v6862_v51 = vld [vmem:[%s10145_s6 + $0x3ec] ss:$16 sps:$4 sm:$0xff]  }
 0x5f8   : > { %v4425_v57 = vpop.f32.mrf.mxu1  ;;  %5531 = vmatprep.subr.bf16.mxu0 %v6799_v59  ;;  %v6853_v38 = vld [vmem:[#allocation4 + $0x68] ss:$16 sps:$4 sm:$0xff]   ;;  %v6865_v47 = vld [vmem:[%s10145_s6 + $0x3cc] ss:$16 sps:$4 sm:$0xff]  }
 0x5f9   : > { %4481 = vst [vmem:[#allocation4 + $0x4c] sm:$0xf] %v6264_v52  ;;  %v6267_v46 = vpack.c.bf16 %v4444_v26, %v4444_v26  ;;  %v4442_v13 = vmul.f32 %v7107_v39, %v4425_v57  ;;  %v6854_v20 = vld [vmem:[%s10145_s6 + $0x108] ss:$16 sps:$4 sm:$0xff]   ;;  %v6868_v34 = vld [vmem:[%s10145_s6 + $0x3ac] ss:$16 sps:$4 sm:$0xff]  }
 0x5fa   : > { %v9845_v8 = vld [vmem:[#allocation4 + $0x2c] ss:$16 sps:$4 sm:$0xff]   ;;  %v6857_v42 = vld [vmem:[%s10145_s6 + $0x208] ss:$16 sps:$4 sm:$0xff]  }
 0x5fb   : > { %4484 = vst [vmem:[#allocation4 + $0x7c] sm:$0xf] %v6267_v46  ;;  %v6265_v12 = vpack.c.bf16 %v4442_v13, %v4442_v13  ;;  %5532 = vmatpush1.bf16.msra.mxu0 %v6797_v0  ;;  %v6860_v16 = vld [vmem:[%s10145_s6 + $0x3e8] ss:$16 sps:$4 sm:$0xff]   ;;  %v6874_v28 = vld [vmem:[%s10145_s6 + $0x36c] ss:$16 sps:$4 sm:$0xff]  }
 0x5fc   : > { %v9835_v58 = vld [vmem:[#allocation4 + $0xc] ss:$16 sps:$4 sm:$0xff]   ;;  %5533 = vmatprep.subr.bf16.mxu0 %v6805_v33  ;;  %v6863_v63 = vld [vmem:[%s10145_s6 + $0x3c8] ss:$16 sps:$4 sm:$0xff]   ;;  %v10003_v13 = vld [vmem:[%s10146_s7] sm:$0xf] }
 0x5fd   : > { %4482 = vst [vmem:[#allocation4 + $0x5c] sm:$0xf] %v6265_v12  ;;  %5476 = vmatprep.mubr.bf16.mxu1 %v9835_v58  ;;  %v6866_v11 = vld [vmem:[%s10145_s6 + $0x3a8] ss:$16 sps:$4 sm:$0xff]   ;;  %v6880_v62 = vld [vmem:[%s10145_s6 + $0x32c] ss:$16 sps:$4 sm:$0xff]  }
 0x5fe   : > { %5477 = vmatmul.mubr.bf16.vlgmr.msra.gmra.mxu1 %v9833_v14  ;;  %v6872_v59 = vld [vmem:[%s10145_s6 + $0x368] ss:$16 sps:$4 sm:$0xff]  }
 0x5ff   : > { %5534 = vmatpush2.bf16.msra.mxu0 %v6803_v55  ;;  %5591 = vmatpush1.bf16.msra.mxu1 %v6806_v40  ;;  %v6878_v44 = vld [vmem:[%s10145_s6 + $0x328] ss:$16 sps:$4 sm:$0xff]   ;;  %v10382_v40 = vld [vmem:[#allocation21_spill] sm:$0xff] }
 0x600   : > { %5486 = vmatprep.mubr.bf16.mxu1 %v9845_v8  ;;  %5535 = vmatprep.subr.bf16.mxu0 %v6813_v45  ;;  %v10381_v12 = vld [vmem:[#allocation20_spill] sm:$0xff] }
 0x601   : > { %5592 = vmatprep.subr.bf16.mxu1 %v6816_v10  ;;  %v10007_v55 = vrot.slane %v10003_v13, %v10381_v12 }
 0x602   : > { %v9905_v36 = vld [vmem:[#allocation4 + $0x6c] ss:$16 sps:$4 sm:$0xff]  }
 0x603   : > { %5536 = vmatpush2.bf16.msra.mxu0 %v6811_v53  ;;  %5593 = vmatpush1.bf16.msra.mxu1 %v6814_v35 }
 0x604   : > { %5537 = vmatprep.subr.bf16.mxu0 %v6819_v5  ;;  %5594 = vmatprep.subr.bf16.mxu1 %v6822_v21  ;;  %v9875_v23 = vld [vmem:[#allocation4 + $0x4c] ss:$16 sps:$4 sm:$0xff]  }
 0x606   : > { %5487 = vmatmul.mubr.bf16.gmra.mxu1 %v9866_v54 }
 0x607   : > { %5538 = vmatpush2.bf16.msra.mxu0 %v6817_v41  ;;  %5595 = vmatpush1.bf16.msra.mxu1 %v6820_v48 }
 0x608   : > { %5496 = vmatprep.mubr.bf16.mxu1 %v9875_v23  ;;  %5539 = vmatprep.subr.bf16.mxu0 %v6828_v43 }
 0x609   : > { %5596 = vmatprep.subr.bf16.mxu1 %v6831_v18 }
 0x60b   : > { %5540 = vmatpush2.bf16.msra.mxu0 %v6826_v15  ;;  %5597 = vmatpush1.bf16.msra.mxu1 %v6829_v32 }
 0x60c   : > { %5541 = vmatprep.subr.bf16.mxu0 %v6834_v27  ;;  %5598 = vmatprep.subr.bf16.mxu1 %v6837_v19 }
 0x60e   : > { %5497 = vmatmul.mubr.bf16.gmra.mxu1 %v9896_v1 }
 0x60f   : > { %5542 = vmatpush2.bf16.msra.mxu0 %v6832_v24  ;;  %5599 = vmatpush1.bf16.msra.mxu1 %v6835_v29 }
 0x610   : > { %5506 = vmatprep.mubr.bf16.mxu1 %v9905_v36  ;;  %5543 = vmatprep.subr.bf16.mxu0 %v6843_v6 }
 0x611   : > { %5600 = vmatprep.subr.bf16.mxu1 %v6846_v49 }
 0x613   : > { %5544 = vmatpush2.bf16.msra.mxu0 %v6841_v31  ;;  %5601 = vmatpush1.bf16.msra.mxu1 %v6844_v17 }
 0x614   : > { %5545 = vmatprep.subr.bf16.mxu0 %v6849_v9  ;;  %5602 = vmatprep.subr.bf16.mxu1 %v6852_v37 }
 0x616   : > { %5507 = vmatmul.mubr.bf16.gmra.mxu1 %v6853_v38 }
 0x617   : > { %5546 = vmatpush2.bf16.msra.mxu0 %v6847_v3  ;;  %5603 = vmatpush1.bf16.msra.mxu1 %v6850_v25 }
 0x618   : > { %5622 = vmatprep.mubr.bf16.mxu1 %v9835_v58  ;;  %5547 = vmatprep.subr.bf16.mxu0 %v6856_v30 }
 0x619   : > { %5604 = vmatprep.subr.bf16.mxu1 %v6859_v2 }
 0x61b   : > { %5548 = vmatpush2.bf16.msra.mxu0 %v6854_v20  ;;  %5605 = vmatpush1.bf16.msra.mxu1 %v6857_v42 }
 0x61c   : > { %5606 = vmatprep.subr.bf16.mxu1 %v6862_v51 }
 0x61e   : > { %5550 = vmatmul.mubr.bf16.vlgmr.msra.gmra.mxu0 %v9750_v61  ;;  %v6871_v61 = vld [vmem:[%s10145_s6 + $0x38c] ss:$16 sps:$4 sm:$0xff]  }
 0x61f   : > { %5559 = vmatprep.mubr.bf16.mxu0 %v9760_v4  ;;  %5607 = vmatpush2.bf16.msra.mxu1 %v6860_v16  ;;  %v6869_v4 = vld [vmem:[%s10145_s6 + $0x388] ss:$16 sps:$4 sm:$0xff]  }
 0x620   : > { %5608 = vmatprep.subr.bf16.mxu1 %v6865_v47 }
 0x623   : > { %5609 = vmatpush2.bf16.msra.mxu1 %v6863_v63 }
 0x624   : > { %5610 = vmatprep.subr.bf16.mxu1 %v6868_v34 }
 0x626   : > { %5560 = vmatmul.mubr.bf16.gmra.mxu0 %v9776_v60  ;;  %v6877_v60 = vld [vmem:[%s10145_s6 + $0x34c] ss:$16 sps:$4 sm:$0xff]  }
 0x627   : > { %5569 = vmatprep.mubr.bf16.mxu0 %v9781_v50  ;;  %5611 = vmatpush2.bf16.msra.mxu1 %v6866_v11  ;;  %v6875_v50 = vld [vmem:[%s10145_s6 + $0x348] ss:$16 sps:$4 sm:$0xff]  }
 0x628   : > { %5612 = vmatprep.subr.bf16.mxu1 %v6871_v61 }
 0x62b   : > { %5613 = vmatpush2.bf16.msra.mxu1 %v6869_v4 }
 0x62c   : > { %5614 = vmatprep.subr.bf16.mxu1 %v6874_v28 }
 0x62e   : > { %5570 = vmatmul.mubr.bf16.gmra.mxu0 %v9796_v56  ;;  %v6883_v56 = vld [vmem:[%s10145_s6 + $0x30c] ss:$16 sps:$4 sm:$0xff]  }
 0x62f   : > { %5579 = vmatprep.mubr.bf16.mxu0 %v9801_v7  ;;  %5615 = vmatpush2.bf16.msra.mxu1 %v6872_v59  ;;  %v6881_v7 = vld [vmem:[%s10145_s6 + $0x308] ss:$16 sps:$4 sm:$0xff]  }
 0x630   : > { %5616 = vmatprep.subr.bf16.mxu1 %v6877_v60 }
 0x633   : > { %5617 = vmatpush2.bf16.msra.mxu1 %v6875_v50 }
 0x634   : > { %5618 = vmatprep.subr.bf16.mxu1 %v6880_v62 }
 0x636   : > { %5580 = vmatmul.mubr.bf16.gmra.mxu0 %v9814_v22 }
 0x637   : > { %5619 = vmatpush2.bf16.msra.mxu1 %v6878_v44 }
 0x638   : > { %5620 = vmatprep.subr.bf16.mxu1 %v6883_v56 }
 0x63b   : > { %5621 = vmatpush2.bf16.msra.mxu1 %v6881_v7 }
 0x63e   : > { %5623 = vmatmul.mubr.bf16.vlgmr.msra.gmra.mxu1 %v9833_v14  ;;  %v10011_v14 = vrot.slane %v10003_v13, %v10382_v40 }
 0x63f   : > { %5632 = vmatprep.mubr.bf16.mxu1 %v9845_v8 }
 0x646   : > { %5633 = vmatmul.mubr.bf16.gmra.mxu1 %v9866_v54 }
 0x647   : > { %5642 = vmatprep.mubr.bf16.mxu1 %v9875_v23 }
 0x64e   : > { %5643 = vmatmul.mubr.bf16.gmra.mxu1 %v9896_v1 }
 0x64f   : > { %5652 = vmatprep.mubr.bf16.mxu1 %v9905_v36 }
 0x656   : > { %5653 = vmatmul.mubr.bf16.gmra.mxu1 %v6853_v38 }
 0x69e   : > { %v5405_v22 = vpop.f32.mrf.mxu0 }
 0x69f   : > { %v5406_v45 = vadd.f32 %v5405_v22, %v10007_v55 }
 0x6a0   : > { %v5407_v52 = vpop.f32.mrf.mxu0 }
 0x6a1   : > { %v5408_v8 = vadd.f32 %v5407_v52, %v10011_v14 }
 0x6a2   : > { %v5409_v26 = vpop.f32.mrf.mxu0 }
 0x6a3   : > { %v5410_v21 = vadd.f32 %v5409_v26, %v10007_v55 }
 0x6a4   : > { %v5411_v39 = vpop.f32.mrf.mxu0 }
 0x6a5   : > { %v5412_v54 = vadd.f32 %v5411_v39, %v10011_v14 }
 0x6a6   : > { %v5415_v57 = vpop.f32.mrf.mxu0 }
 0x6a7   : > { %v5416_v15 = vadd.f32 %v5415_v57, %v10007_v55 }
 0x6a8   : > { %v5417_v0 = vpop.f32.mrf.mxu0 }
 0x6a9   : > { %v5418_v19 = vadd.f32 %v5417_v0, %v10011_v14 }
 0x6aa   : > { %v5419_v46 = vpop.f32.mrf.mxu0 }
 0x6ab   : > { %v5420_v6 = vadd.f32 %v5419_v46, %v10007_v55 }
 0x6ac   : > { %v5421_v33 = vpop.f32.mrf.mxu0 }
 0x6ad   : > { %v5422_v31 = vadd.f32 %v5421_v33, %v10011_v14 }
 0x6ae   : > { %v5425_v58 = vpop.f32.mrf.mxu0 }
 0x6af   : > { %v5426_v3 = vadd.f32 %v5425_v58, %v10007_v55 }
 0x6b0   : > { %v5427_v35 = vpop.f32.mrf.mxu0 }
 0x6b1   : > { %v5428_v30 = vadd.f32 %v5427_v35, %v10011_v14 }
 0x6b2   : > { %v5429_v18 = vpop.f32.mrf.mxu0 }
 0x6b3   : > { %v5430_v51 = vadd.f32 %v5429_v18, %v10007_v55 }
 0x6b4   : > { %v5431_v29 = vpop.f32.mrf.mxu0 }
 0x6b5   : > { %v5432_v63 = vadd.f32 %v5431_v29, %v10011_v14 }
 0x6b6   : > { %v5435_v9 = vpop.f32.mrf.mxu0 }
 0x6b7   : > { %v5436_v4 = vadd.f32 %v5435_v9, %v10007_v55 }
 0x6b8   : > { %v5437_v20 = vpop.f32.mrf.mxu0 }
 0x6b9   : > { %v5438_v60 = vadd.f32 %v5437_v20, %v10011_v14 }
 0x6ba   : > { %v5439_v11 = vpop.f32.mrf.mxu0 }
 0x6bb   : > { %v5440_v56 = vadd.f32 %v5439_v11, %v10007_v55 }
 0x6bc   : > { %v5441_v62 = vpop.f32.mrf.mxu0 }
 0x6bd   : > { %v5442_v52 = vadd.f32 %v5441_v62, %v10011_v14  ;;  %v10384_v14 = vld [vmem:[#allocation23_spill] sm:$0xff] }
 0x6be   : > { %v5478_v10 = vpop.f32.mrf.mxu1 }
 0x6bf   : > { %v5479_v53 = vadd.f32 %v5478_v10, %v5406_v45  ;;  %v10383_v10 = vld [vmem:[#allocation22_spill] sm:$0xff] }
 0x6c0   : > { %v5480_v5 = vpop.f32.mrf.mxu1 }
 0x6c1   : > { %5663 = vst [vmem:[%s10018_s30] sm:$0xff] %v5479_v53  ;;  %v5481_v41 = vadd.f32 %v5480_v5, %v5408_v8  ;;  %v10051_v8 = vrot.slane %v10003_v13, %v10383_v10  ;;  %v10055_v53 = vrot.slane %v10003_v13, %v10384_v14 }
 0x6c2   : > { %v5482_v48 = vpop.f32.mrf.mxu1 }
 0x6c3   : > { %5664 = vst [vmem:[%s10018_s30 + $0x8] sm:$0xff] %v5481_v41  ;;  %v5483_v43 = vadd.f32 %v5482_v48, %v5410_v21 }
 0x6c4   : > { %v5484_v23 = vpop.f32.mrf.mxu1 }
 0x6c5   : > { %5667 = vst [vmem:[%s10018_s30 + $0x20] sm:$0xff] %v5483_v43  ;;  %v5485_v32 = vadd.f32 %v5484_v23, %v5412_v54 }
 0x6c6   : > { %v5488_v27 = vpop.f32.mrf.mxu1 }
 0x6c7   : > { %5668 = vst [vmem:[%s10018_s30 + $0x28] sm:$0xff] %v5485_v32  ;;  %v5489_v24 = vadd.f32 %v5488_v27, %v5416_v15 }
 0x6c8   : > { %v5490_v1 = vpop.f32.mrf.mxu1 }
 0x6c9   : > { %5671 = vst [vmem:[%s10018_s30 + $0x40] sm:$0xff] %v5489_v24  ;;  %v5491_v49 = vadd.f32 %v5490_v1, %v5418_v19 }
 0x6ca   : > { %v5492_v36 = vpop.f32.mrf.mxu1 }
 0x6cb   : > { %5672 = vst [vmem:[%s10018_s30 + $0x48] sm:$0xff] %v5491_v49  ;;  %v5493_v17 = vadd.f32 %v5492_v36, %v5420_v6 }
 0x6cc   : > { %v5494_v37 = vpop.f32.mrf.mxu1 }
 0x6cd   : > { %5675 = vst [vmem:[%s10018_s30 + $0x60] sm:$0xff] %v5493_v17  ;;  %v5495_v25 = vadd.f32 %v5494_v37, %v5422_v31 }
 0x6ce   : > { %v5498_v38 = vpop.f32.mrf.mxu1 }
 0x6cf   : > { %5676 = vst [vmem:[%s10018_s30 + $0x68] sm:$0xff] %v5495_v25  ;;  %v5499_v2 = vadd.f32 %v5498_v38, %v5426_v3 }
 0x6d0   : > { %v5500_v42 = vpop.f32.mrf.mxu1 }
 0x6d1   : > { %5679 = vst [vmem:[%s10018_s30 + $0x80] sm:$0xff] %v5499_v2  ;;  %v5501_v16 = vadd.f32 %v5500_v42, %v5428_v30 }
 0x6d2   : > { %v5502_v47 = vpop.f32.mrf.mxu1 }
 0x6d3   : > { %5680 = vst [vmem:[%s10018_s30 + $0x88] sm:$0xff] %v5501_v16  ;;  %v5503_v34 = vadd.f32 %v5502_v47, %v5430_v51 }
 0x6d4   : > { %v5504_v61 = vpop.f32.mrf.mxu1 }
 0x6d5   : > { %5683 = vst [vmem:[%s10018_s30 + $0xa0] sm:$0xff] %v5503_v34  ;;  %v5505_v28 = vadd.f32 %v5504_v61, %v5432_v63 }
 0x6d6   : > { %v5508_v59 = vpop.f32.mrf.mxu1 }
 0x6d7   : > { %5684 = vst [vmem:[%s10018_s30 + $0xa8] sm:$0xff] %v5505_v28  ;;  %v5509_v50 = vadd.f32 %v5508_v59, %v5436_v4 }
 0x6d8   : > { %v5510_v44 = vpop.f32.mrf.mxu1 }
 0x6d9   : > { %5687 = vst [vmem:[%s10018_s30 + $0xc0] sm:$0xff] %v5509_v50  ;;  %v5511_v7 = vadd.f32 %v5510_v44, %v5438_v60 }
 0x6da   : > { %v5512_v22 = vpop.f32.mrf.mxu1 }
 0x6db   : > { %5688 = vst [vmem:[%s10018_s30 + $0xc8] sm:$0xff] %v5511_v7  ;;  %v5513_v26 = vadd.f32 %v5512_v22, %v5440_v56 }
 0x6dc   : > { %v5514_v39 = vpop.f32.mrf.mxu1 }
 0x6dd   : > { %5691 = vst [vmem:[%s10018_s30 + $0xe0] sm:$0xff] %v5513_v26  ;;  %v5515_v57 = vadd.f32 %v5514_v39, %v5442_v52 }
 0x6de   : > { %v5551_v0 = vpop.f32.mrf.mxu0 }
 0x6df   : > { %5692 = vst [vmem:[%s10018_s30 + $0xe8] sm:$0xff] %v5515_v57  ;;  %v5552_v5 = vadd.f32 %v5551_v0, %v10051_v8 }
 0x6e0   : > { %v5553_v46 = vpop.f32.mrf.mxu0 }
 0x6e1   : > { %v5554_v41 = vadd.f32 %v5553_v46, %v10055_v53 }
 0x6e2   : > { %v5555_v33 = vpop.f32.mrf.mxu0 }
 0x6e3   : > { %v5556_v18 = vadd.f32 %v5555_v33, %v10051_v8 }
 0x6e4   : > { %v5557_v12 = vpop.f32.mrf.mxu0 }
 0x6e5   : > { %v5558_v13 = vadd.f32 %v5557_v12, %v10055_v53 }
 0x6e6   : > { %v5561_v40 = vpop.f32.mrf.mxu0 }
 0x6e7   : > { %v5562_v24 = vadd.f32 %v5561_v40, %v10051_v8 }
 0x6e8   : > { %v5563_v58 = vpop.f32.mrf.mxu0 }
 0x6e9   : > { %v5564_v6 = vadd.f32 %v5563_v58, %v10055_v53 }
 0x6ea   : > { %v5565_v45 = vpop.f32.mrf.mxu0 }
 0x6eb   : > { %v5566_v17 = vadd.f32 %v5565_v45, %v10051_v8 }
 0x6ec   : > { %v5567_v55 = vpop.f32.mrf.mxu0 }
 0x6ed   : > { %v5568_v3 = vadd.f32 %v5567_v55, %v10055_v53 }
 0x6ee   : > { %v5571_v35 = vpop.f32.mrf.mxu0 }
 0x6ef   : > { %v5572_v2 = vadd.f32 %v5571_v35, %v10051_v8 }
 0x6f0   : > { %v5573_v54 = vpop.f32.mrf.mxu0 }
 0x6f1   : > { %v5574_v51 = vadd.f32 %v5573_v54, %v10055_v53 }
 0x6f2   : > { %v5575_v27 = vpop.f32.mrf.mxu0 }
 0x6f3   : > { %v5576_v34 = vadd.f32 %v5575_v27, %v10051_v8 }
 0x6f4   : > { %v5577_v36 = vpop.f32.mrf.mxu0 }
 0x6f5   : > { %v5578_v4 = vadd.f32 %v5577_v36, %v10055_v53 }
 0x6f6   : > { %v5581_v38 = vpop.f32.mrf.mxu0 }
 0x6f7   : > { %v5582_v50 = vadd.f32 %v5581_v38, %v10051_v8 }
 0x6f8   : > { %v5583_v47 = vpop.f32.mrf.mxu0 }
 0x6f9   : > { %v5584_v56 = vadd.f32 %v5583_v47, %v10055_v53 }
 0x6fa   : > { %v5585_v59 = vpop.f32.mrf.mxu0 }
 0x6fb   : > { %v5586_v26 = vadd.f32 %v5585_v59, %v10051_v8 }
 0x6fc   : > { %v5587_v22 = vpop.f32.mrf.mxu0 }
 0x6fd   : > { %v5588_v0 = vadd.f32 %v5587_v22, %v10055_v53 }
 0x6fe   : > { %v5624_v21 = vpop.f32.mrf.mxu1 }
 0x6ff   : > { %v5625_v48 = vadd.f32 %v5624_v21, %v5552_v5 }
 0x700   : > { %v5626_v43 = vpop.f32.mrf.mxu1 }
 0x701   : > { %5665 = vst [vmem:[%s10018_s30 + $0x10] sm:$0xff] %v5625_v48  ;;  %v5627_v23 = vadd.f32 %v5626_v43, %v5554_v41 }
 0x702   : > { %v5628_v15 = vpop.f32.mrf.mxu1 }
 0x703   : > { %5666 = vst [vmem:[%s10018_s30 + $0x18] sm:$0xff] %v5627_v23  ;;  %v5629_v32 = vadd.f32 %v5628_v15, %v5556_v18 }
 0x704   : > { %v5630_v19 = vpop.f32.mrf.mxu1 }
 0x705   : > { %5669 = vst [vmem:[%s10018_s30 + $0x30] sm:$0xff] %v5629_v32  ;;  %v5631_v29 = vadd.f32 %v5630_v19, %v5558_v13 }
 0x706   : > { %v5634_v1 = vpop.f32.mrf.mxu1 }
 0x707   : > { %5670 = vst [vmem:[%s10018_s30 + $0x38] sm:$0xff] %v5631_v29  ;;  %v5635_v49 = vadd.f32 %v5634_v1, %v5562_v24 }
 0x708   : > { %v5636_v31 = vpop.f32.mrf.mxu1 }
 0x709   : > { %5673 = vst [vmem:[%s10018_s30 + $0x50] sm:$0xff] %v5635_v49  ;;  %v5637_v9 = vadd.f32 %v5636_v31, %v5564_v6 }
 0x70a   : > { %v5638_v37 = vpop.f32.mrf.mxu1 }
 0x70b   : > { %5674 = vst [vmem:[%s10018_s30 + $0x58] sm:$0xff] %v5637_v9  ;;  %v5639_v25 = vadd.f32 %v5638_v37, %v5566_v17 }
 0x70c   : > { %v5640_v30 = vpop.f32.mrf.mxu1 }
 0x70d   : > { %5677 = vst [vmem:[%s10018_s30 + $0x70] sm:$0xff] %v5639_v25  ;;  %v5641_v20 = vadd.f32 %v5640_v30, %v5568_v3 }
 0x70e   : > { %v5644_v42 = vpop.f32.mrf.mxu1 }
 0x70f   : > { %5678 = vst [vmem:[%s10018_s30 + $0x78] sm:$0xff] %v5641_v20  ;;  %v5645_v16 = vadd.f32 %v5644_v42, %v5572_v2 }
 0x710   : > { %v5646_v63 = vpop.f32.mrf.mxu1 }
 0x711   : > { %5681 = vst [vmem:[%s10018_s30 + $0x90] sm:$0xff] %v5645_v16  ;;  %v5647_v11 = vadd.f32 %v5646_v63, %v5574_v51 }
 0x712   : > { %v5648_v61 = vpop.f32.mrf.mxu1 }
 0x713   : > { %5682 = vst [vmem:[%s10018_s30 + $0x98] sm:$0xff] %v5647_v11  ;;  %v5649_v28 = vadd.f32 %v5648_v61, %v5576_v34 }
 0x714   : > { %v5650_v60 = vpop.f32.mrf.mxu1 }
 0x715   : > { %5685 = vst [vmem:[%s10018_s30 + $0xb0] sm:$0xff] %v5649_v28  ;;  %v5651_v62 = vadd.f32 %v5650_v60, %v5578_v4 }
 0x716   : > { %v5654_v44 = vpop.f32.mrf.mxu1 }
 0x717   : > { %5686 = vst [vmem:[%s10018_s30 + $0xb8] sm:$0xff] %v5651_v62  ;;  %v5655_v7 = vadd.f32 %v5654_v44, %v5582_v50 }
 0x718   : > { %v5656_v52 = vpop.f32.mrf.mxu1 }
 0x719   : > { %5689 = vst [vmem:[%s10018_s30 + $0xd0] sm:$0xff] %v5655_v7  ;;  %v5657_v39 = vadd.f32 %v5656_v52, %v5584_v56 }
 0x71a   : > { %v5658_v57 = vpop.f32.mrf.mxu1 }
 0x71b   : > { %5690 = vst [vmem:[%s10018_s30 + $0xd8] sm:$0xff] %v5657_v39  ;;  %v5659_v46 = vadd.f32 %v5658_v57, %v5586_v26 }
 0x71c   : > { %v5660_v33 = vpop.f32.mrf.mxu1 }
 0x71d   : > { %5693 = vst [vmem:[%s10018_s30 + $0xf0] sm:$0xff] %v5659_v46  ;;  %v5661_v12 = vadd.f32 %v5660_v33, %v5588_v0 }
 0x71f   : > { %5694 = vst [vmem:[%s10018_s30 + $0xf8] sm:$0xff] %v5661_v12 }
 0x720   : > { %7176 = shalt.err (!%p7173_p4)
}
 0x721   : > { %s7177_s25 = scalar_lea.hbm %s10092_s23, 4096  ;;  %s7181_s30 = scalar_lea.hbm %s10385_s27, 8192 }
 0x722   : > { %p7178_p6 = scmp.ne.s32.totalorder %s10092_s23, %s7177_s25  ;;  %p7182_p11 = scmp.lt.s32.totalorder %s10092_s23, %s10385_s27 }
 0x723   : > { %p7183_p7 = scmp.lt.s32.totalorder %s7181_s30, %s7177_s25 }
 0x724   : > { %p7179_p8 = pnand %p7178_p6, %p10386_p12 }
 0x725   : > { %p7184_p9 = por %p7183_p7, %p7182_p11 }
 0x726   : > { %p7180_p3 = pneg %p7179_p8 }
 0x728   : > { %p7185_p10 = pnand %p7184_p9, %p7180_p3 }
 0x72a   : > { %7188 = shalt.err (!%p7185_p10)
}
 0x72b   : > { %s7240_s29 = smov 512   ;;  %s7241_s28 = smov 32  }
 0x72c   : > { %6419 = dma.vmem_to_hbm [thread:$0]  (%p10386_p12), %s10094_s22, 4096, %s10092_s23, %s5696_s21, %s7240_s29, %s7240_s29, %s7241_s28  }
 0x72d PF: > { %s10387_s11 = sld [smem:[#allocation14_spill]]  ;;  %p10390_p0 = scmp.ge.s32.totalorder %s7231_s20, 2 }
 0x72e   : > { %s10388_s14 = sld [smem:[#allocation15_spill]] }
 0x733   : > { %s5724_s24 = sand.u32 1, %s10387_s11  }
 0x734   : > { %p10389_p13 = scmp.ne.s32.totalorder %s10388_s14, 0  ;;  %s5725_s25 = scalar_lea.sflag [#allocation7], %s5724_s24 }
 0x736   : > { %p6430_p5 = pnand %p10390_p0, %p10389_p13 }
 0x738   : > { %p6431_p2 = pneg %p6430_p5 }
 0x73a   : > { %7214 = dma.done.wait (%p6431_p2), %s5725_s25, 4096  }
 0x73b   : > { %7216 = vsyncadd (%p6431_p2), %s5725_s25, 4294963200  ;;  %s10391_s20 = sld [smem:[#allocation16_spill]]  ;;  %s10392_s17 = smov %s7223_s18 }
 0x73c   : > { %s10393_s18 = smov %s7227_s19  ;;  %s10394_s19 = smov %s7376_s26 }
 0x741   : > { %p25_p1 = scmp.ge.s32.totalorder %s10391_s20, 4  }
 0x743   :  { %27 = sbr.rel (!%p25_p1) target bundleno = 9 (0x9), region = 119 }
 0x748   :  { %5730 = vsyncpa [#allocation6], 1 }
 0x749   :  { %5732 = vsyncpa [#allocation6 + $0x1], 1 }
 0x74a   :  { %5733 = vsyncpa [#allocation9], 1 }
 0x74b   :  { %5734 = vsyncpa [#allocation7], 1 }
 0x74c   :  { %5736 = vsyncpa [#allocation7 + $0x1], 1 }

</bundles_post_ra>
